<compile_context>
chip_gen: v7x
topology: tpu7x:2x2x1
jax: 0.10.0
libtpu: 0.0.40
codegen_flags: <defaults>
</compile_context>

<pallas_src>
import numpy as np
import jax
import jax.numpy as jnp
from jax.experimental import pallas as pl
from jax.experimental.pallas import tpu as pltpu

HIDDEN = 40
NUM_LAYERS = 3
INPUT_SIZE = 16
OUTPUT_SIZE = 8
SEQ = 8
BATCH = 2
G4 = 4 * HIDDEN  # 160 fused-gate width, packed gate order: i, f, o, g


def lstm_kernel(x_ref, wih0_ref, wihr_ref, whh_ref, b_ref, wlin_ref, blin_ref,
                out_ref, xp_sc, hid_sc):
    """Stacked LSTM over time + deferred Linear, all in one invocation.

    x_ref    : (SEQ*BATCH, INPUT_SIZE)        time-major, rows [t*B : (t+1)*B]
    wih0_ref : (INPUT_SIZE, 4H)               layer-0 input weights (i,f,o,g)
    wihr_ref : (NUM_LAYERS-1, HIDDEN, 4H)     layers 1.. input weights
    whh_ref  : (NUM_LAYERS, HIDDEN, 4H)       recurrent weights
    b_ref    : (NUM_LAYERS, 1, 4H)            b_ih + b_hh, packed gate order
    wlin_ref : (HIDDEN, OUTPUT_SIZE)
    blin_ref : (1, OUTPUT_SIZE)
    out_ref  : (SEQ*BATCH, OUTPUT_SIZE)
    xp_sc    : (SEQ*BATCH, 4H)   VMEM scratch -- hoisted layer-0 x projection
    hid_sc   : (SEQ*BATCH, HIDDEN) VMEM scratch -- top-layer h per timestep
    """
    H = HIDDEN

    # ---- hoisted, loop-invariant work -------------------------------------
    bs = [b_ref[l] for l in range(NUM_LAYERS)]          # each (1, 4H)

    # Layer-0 input projection for ALL timesteps in a single MXU call,
    # stashed in VMEM scratch (off the recurrence critical path).
    xp_sc[...] = (jnp.dot(x_ref[...], wih0_ref[...],
                          preferred_element_type=jnp.float32) + bs[0])

    # Recurrent state lives in vregs (Python-carried values), not VMEM.
    h = [jnp.zeros((BATCH, H), jnp.float32) for _ in range(NUM_LAYERS)]
    c = [jnp.zeros((BATCH, H), jnp.float32) for _ in range(NUM_LAYERS)]

    def cell(gates, c_prev):
        # Packed gate order (i, f, o, g): one sigmoid over a 3H-lane slab,
        # one tanh over H lanes, plus tanh(c_new).
        sig = jax.nn.sigmoid(gates[:, :3 * H])
        g_g = jnp.tanh(gates[:, 3 * H:])
        i_g = sig[:, 0 * H:1 * H]
        f_g = sig[:, 1 * H:2 * H]
        o_g = sig[:, 2 * H:3 * H]
        c_new = f_g * c_prev + i_g * g_g
        h_new = o_g * jnp.tanh(c_new)
        return h_new, c_new

    # ---- fully static-unrolled recurrence (SEQ=8, all indices static) -----
    for t in range(SEQ):
        r = slice(t * BATCH, (t + 1) * BATCH)

        # layer 0: x-part precomputed; only the recurrent matmul is in-loop.
        gates = xp_sc[r, :] + jnp.dot(h[0], whh_ref[0],
                                      preferred_element_type=jnp.float32)
        h[0], c[0] = cell(gates, c[0])

        # layers 1..L-1: fused 4-gate matmuls (2 MXU issues per layer).
        for l in range(1, NUM_LAYERS):
            gates = (jnp.dot(h[l - 1], wihr_ref[l - 1],
                             preferred_element_type=jnp.float32)
                     + jnp.dot(h[l], whh_ref[l],
                               preferred_element_type=jnp.float32)
                     + bs[l])
            h[l], c[l] = cell(gates, c[l])

        hid_sc[r, :] = h[NUM_LAYERS - 1]

    # ---- deferred output projection: one (SEQ*BATCH, H) @ (H, OUT) --------
    out_ref[...] = (jnp.dot(hid_sc[...], wlin_ref[...],
                            preferred_element_type=jnp.float32)
                    + blin_ref[...]).astype(out_ref.dtype)


def custom_lstm_forward(x, wih0, wihr, whh, b, wlin, blin):
    x2d = x.reshape(SEQ * BATCH, INPUT_SIZE)
    vmem = pl.BlockSpec(memory_space=pltpu.MemorySpace.VMEM)
    out2d = pl.pallas_call(
        lstm_kernel,
        out_shape=jax.ShapeDtypeStruct((SEQ * BATCH, OUTPUT_SIZE), jnp.float32),
        in_specs=[vmem] * 7,
        out_specs=vmem,
        scratch_shapes=[
            pltpu.VMEM((SEQ * BATCH, G4), jnp.float32),      # xp_sc
            pltpu.VMEM((SEQ * BATCH, HIDDEN), jnp.float32),  # hid_sc
        ],
    )(x2d, wih0, wihr, whh, b, wlin, blin)
    return out2d.reshape(SEQ, BATCH, OUTPUT_SIZE)


# --------------------------------------------------------------------------
# Parameter init (PyTorch-style U(-1/sqrt(H), 1/sqrt(H)), raw torch layout),
# host-side packing into the fused-gate layout the kernel expects, and a
# pure-JAX reference for the correctness check.
# --------------------------------------------------------------------------
def init_raw_params(key):
    k = 1.0 / np.sqrt(HIDDEN)
    keys = jax.random.split(key, 4 * NUM_LAYERS + 2)
    ki = 0

    def u(shape):
        nonlocal ki
        out = jax.random.uniform(keys[ki], shape, jnp.float32, -k, k)
        ki += 1
        return out

    layers = []
    for l in range(NUM_LAYERS):
        in_dim = INPUT_SIZE if l == 0 else HIDDEN
        w_ih = u((4 * HIDDEN, in_dim))     # PyTorch layout, gate order i,f,g,o
        w_hh = u((4 * HIDDEN, HIDDEN))
        b_ih = u((4 * HIDDEN,))
        b_hh = u((4 * HIDDEN,))
        layers.append((w_ih, w_hh, b_ih, b_hh))
    wlin = u((OUTPUT_SIZE, HIDDEN))
    blin = u((OUTPUT_SIZE,))
    return layers, wlin, blin


def pack_params(layers, wlin, blin):
    """PyTorch (i,f,g,o) rows -> fused (i,f,o,g) columns for x @ W."""
    def reord(a):  # a: (4H, ...) in i,f,g,o order along axis 0
        i_, f_, g_, o_ = jnp.split(a, 4, axis=0)
        return jnp.concatenate([i_, f_, o_, g_], axis=0)

    wih_list, whh_list, b_list = [], [], []
    for (w_ih, w_hh, b_ih, b_hh) in layers:
        wih_list.append(reord(w_ih).T)                          # (in, 4H)
        whh_list.append(reord(w_hh).T)                          # (H, 4H)
        b_list.append(reord(b_ih + b_hh).reshape(1, G4))        # (1, 4H)

    wih0 = wih_list[0]                         # (IN, 4H)
    wihr = jnp.stack(wih_list[1:])             # (L-1, H, 4H)
    whh = jnp.stack(whh_list)                  # (L, H, 4H)
    b = jnp.stack(b_list)                      # (L, 1, 4H)
    return wih0, wihr, whh, b, wlin.T, blin.reshape(1, OUTPUT_SIZE)


def reference(x, layers, wlin, blin):
    """Pure-JAX forward pass on the raw PyTorch-layout weights."""
    h = [jnp.zeros((BATCH, HIDDEN), jnp.float32) for _ in range(NUM_LAYERS)]
    c = [jnp.zeros((BATCH, HIDDEN), jnp.float32) for _ in range(NUM_LAYERS)]
    outs = []
    for t in range(SEQ):
        inp = x[t]
        for l, (w_ih, w_hh, b_ih, b_hh) in enumerate(layers):
            z = inp @ w_ih.T + h[l] @ w_hh.T + b_ih + b_hh   # (B,4H) i,f,g,o
            i_, f_, g_, o_ = jnp.split(z, 4, axis=1)
            i_ = jax.nn.sigmoid(i_)
            f_ = jax.nn.sigmoid(f_)
            g_ = jnp.tanh(g_)
            o_ = jax.nn.sigmoid(o_)
            c[l] = f_ * c[l] + i_ * g_
            h[l] = o_ * jnp.tanh(c[l])
            inp = h[l]
        outs.append(inp @ wlin.T + blin)
    return jnp.stack(outs)


if __name__ == "__main__":
    key = jax.random.PRNGKey(0)
    kx, kp = jax.random.split(key)
    x = jax.random.normal(kx, (SEQ, BATCH, INPUT_SIZE), jnp.float32)

    layers, wlin, blin = init_raw_params(kp)
    packed = pack_params(layers, wlin, blin)

    out = custom_lstm_forward(x, *packed)
    out = jax.block_until_ready(out)

    ref = reference(x, layers, wlin, blin)
    np.testing.assert_allclose(np.asarray(out), np.asarray(ref),
                               rtol=1e-5, atol=1e-5)
    assert out.shape == (SEQ, BATCH, OUTPUT_SIZE)
    print("KERNEL_OK")
</pallas_src>

<mosaic_0001>
module attributes {stable_mosaic.version = 11 : i64} {
  func.func @lstm_kernel(%arg0: memref<16x16xf32, #tpu.memory_space<vmem>>, %arg1: memref<16x160xf32, #tpu.memory_space<vmem>>, %arg2: memref<2x40x160xf32, #tpu.memory_space<vmem>>, %arg3: memref<3x40x160xf32, #tpu.memory_space<vmem>>, %arg4: memref<3x1x160xf32, #tpu.memory_space<vmem>>, %arg5: memref<40x8xf32, #tpu.memory_space<vmem>>, %arg6: memref<1x8xf32, #tpu.memory_space<vmem>>, %arg7: memref<16x8xf32, #tpu.memory_space<vmem>>, %arg8: memref<16x160xf32, #tpu.memory_space<vmem>>, %arg9: memref<16x40xf32, #tpu.memory_space<vmem>>) attributes {dimension_semantics = [], scalar_prefetch = 0 : i64, scratch_operands = 2 : i64, tpu.core_type = #tpu.core_type<tc>} {
    %c0 = arith.constant 0 : index
    %c0_0 = arith.constant 0 : index
    %c0_1 = arith.constant 0 : index
    %0 = vector.load %arg4[%c0, %c0_0, %c0_1] : memref<3x1x160xf32, #tpu.memory_space<vmem>>, vector<1x1x160xf32>
    %1 = vector.shape_cast %0 : vector<1x1x160xf32> to vector<1x160xf32>
    %c1 = arith.constant 1 : index
    %c0_2 = arith.constant 0 : index
    %c0_3 = arith.constant 0 : index
    %2 = vector.load %arg4[%c1, %c0_2, %c0_3] : memref<3x1x160xf32, #tpu.memory_space<vmem>>, vector<1x1x160xf32>
    %3 = vector.shape_cast %2 : vector<1x1x160xf32> to vector<1x160xf32>
    %c2 = arith.constant 2 : index
    %c0_4 = arith.constant 0 : index
    %c0_5 = arith.constant 0 : index
    %4 = vector.load %arg4[%c2, %c0_4, %c0_5] : memref<3x1x160xf32, #tpu.memory_space<vmem>>, vector<1x1x160xf32>
    %5 = vector.shape_cast %4 : vector<1x1x160xf32> to vector<1x160xf32>
    %c0_6 = arith.constant 0 : index
    %c0_7 = arith.constant 0 : index
    %6 = vector.load %arg0[%c0_6, %c0_7] : memref<16x16xf32, #tpu.memory_space<vmem>>, vector<16x16xf32>
    %c0_8 = arith.constant 0 : index
    %c0_9 = arith.constant 0 : index
    %7 = vector.load %arg1[%c0_8, %c0_9] : memref<16x160xf32, #tpu.memory_space<vmem>>, vector<16x160xf32>
    %cst = arith.constant dense<0.000000e+00> : vector<16x160xf32>
    %8 = tpu.matmul %6, %7, %cst {dimension_numbers = #tpu.dot_dimension_numbers<[1], [0], [0], [1], [0, 0, 1, 1], [], []>} : vector<16x16xf32>, vector<16x160xf32>, vector<16x160xf32> -> vector<16x160xf32>
    %9 = vector.broadcast %1 : vector<1x160xf32> to vector<16x160xf32>
    %10 = arith.addf %8, %9 : vector<16x160xf32>
    %c0_10 = arith.constant 0 : index
    %c0_11 = arith.constant 0 : index
    %11 = vector.load %arg8[%c0_10, %c0_11] : memref<16x160xf32, #tpu.memory_space<vmem>>, vector<16x160xf32>
    tpu.vector_store %arg8[%c0_10, %c0_11], %10 {strides = array<i32>} : memref<16x160xf32, #tpu.memory_space<vmem>>, vector<16x160xf32>,
    %cst_12 = arith.constant 0.000000e+00 : f32
    %12 = vector.broadcast %cst_12 : f32 to vector<2x40xf32>
    %cst_13 = arith.constant 0.000000e+00 : f32
    %13 = vector.broadcast %cst_13 : f32 to vector<2x40xf32>
    %cst_14 = arith.constant 0.000000e+00 : f32
    %14 = vector.broadcast %cst_14 : f32 to vector<2x40xf32>
    %cst_15 = arith.constant 0.000000e+00 : f32
    %15 = vector.broadcast %cst_15 : f32 to vector<2x40xf32>
    %cst_16 = arith.constant 0.000000e+00 : f32
    %16 = vector.broadcast %cst_16 : f32 to vector<2x40xf32>
    %cst_17 = arith.constant 0.000000e+00 : f32
    %17 = vector.broadcast %cst_17 : f32 to vector<2x40xf32>
    %c0_18 = arith.constant 0 : index
    %c0_19 = arith.constant 0 : index
    %18 = vector.load %arg8[%c0_18, %c0_19] : memref<16x160xf32, #tpu.memory_space<vmem>>, vector<2x160xf32>
    %c0_20 = arith.constant 0 : index
    %c0_21 = arith.constant 0 : index
    %c0_22 = arith.constant 0 : index
    %19 = vector.load %arg3[%c0_20, %c0_21, %c0_22] : memref<3x40x160xf32, #tpu.memory_space<vmem>>, vector<1x40x160xf32>
    %20 = vector.shape_cast %19 : vector<1x40x160xf32> to vector<40x160xf32>
    %cst_23 = arith.constant dense<0.000000e+00> : vector<2x160xf32>
    %21 = tpu.matmul %12, %20, %cst_23 {dimension_numbers = #tpu.dot_dimension_numbers<[1], [0], [0], [1], [0, 0, 1, 1], [], []>} : vector<2x40xf32>, vector<40x160xf32>, vector<2x160xf32> -> vector<2x160xf32>
    %22 = arith.addf %18, %21 : vector<2x160xf32>
    %23 = vector.extract_strided_slice %22 {offsets = [0, 0], sizes = [2, 120], strides = [1, 1]} : vector<2x160xf32> to vector<2x120xf32>
    %24 = arith.negf %23 : vector<2x120xf32>
    %25 = math.exp %24 : vector<2x120xf32>
    %cst_24 = arith.constant 1.000000e+00 : f32
    %26 = vector.broadcast %cst_24 : f32 to vector<2x120xf32>
    %27 = arith.addf %26, %25 : vector<2x120xf32>
    %28 = arith.divf %26, %27 : vector<2x120xf32>
    %29 = vector.extract_strided_slice %22 {offsets = [0, 120], sizes = [2, 40], strides = [1, 1]} : vector<2x160xf32> to vector<2x40xf32>
    %30 = math.tanh %29 : vector<2x40xf32>
    %31 = vector.extract_strided_slice %28 {offsets = [0, 0], sizes = [2, 40], strides = [1, 1]} : vector<2x120xf32> to vector<2x40xf32>
    %32 = vector.extract_strided_slice %28 {offsets = [0, 40], sizes = [2, 40], strides = [1, 1]} : vector<2x120xf32> to vector<2x40xf32>
    %33 = vector.extract_strided_slice %28 {offsets = [0, 80], sizes = [2, 40], strides = [1, 1]} : vector<2x120xf32> to vector<2x40xf32>
    %34 = arith.mulf %32, %15 : vector<2x40xf32>
    %35 = arith.mulf %31, %30 : vector<2x40xf32>
    %36 = arith.addf %34, %35 : vector<2x40xf32>
    %37 = math.tanh %36 : vector<2x40xf32>
    %38 = arith.mulf %33, %37 : vector<2x40xf32>
    %c0_25 = arith.constant 0 : index
    %c0_26 = arith.constant 0 : index
    %c0_27 = arith.constant 0 : index
    %39 = vector.load %arg2[%c0_25, %c0_26, %c0_27] : memref<2x40x160xf32, #tpu.memory_space<vmem>>, vector<1x40x160xf32>
    %40 = vector.shape_cast %39 : vector<1x40x160xf32> to vector<40x160xf32>
    %cst_28 = arith.constant dense<0.000000e+00> : vector<2x160xf32>
    %41 = tpu.matmul %38, %40, %cst_28 {dimension_numbers = #tpu.dot_dimension_numbers<[1], [0], [0], [1], [0, 0, 1, 1], [], []>} : vector<2x40xf32>, vector<40x160xf32>, vector<2x160xf32> -> vector<2x160xf32>
    %c1_29 = arith.constant 1 : index
    %c0_30 = arith.constant 0 : index
    %c0_31 = arith.constant 0 : index
    %42 = vector.load %arg3[%c1_29, %c0_30, %c0_31] : memref<3x40x160xf32, #tpu.memory_space<vmem>>, vector<1x40x160xf32>
    %43 = vector.shape_cast %42 : vector<1x40x160xf32> to vector<40x160xf32>
    %cst_32 = arith.constant dense<0.000000e+00> : vector<2x160xf32>
    %44 = tpu.matmul %13, %43, %cst_32 {dimension_numbers = #tpu.dot_dimension_numbers<[1], [0], [0], [1], [0, 0, 1, 1], [], []>} : vector<2x40xf32>, vector<40x160xf32>, vector<2x160xf32> -> vector<2x160xf32>
    %45 = arith.addf %41, %44 : vector<2x160xf32>
    %46 = vector.broadcast %3 : vector<1x160xf32> to vector<2x160xf32>
    %47 = arith.addf %45, %46 : vector<2x160xf32>
    %48 = vector.extract_strided_slice %47 {offsets = [0, 0], sizes = [2, 120], strides = [1, 1]} : vector<2x160xf32> to vector<2x120xf32>
    %49 = arith.negf %48 : vector<2x120xf32>
    %50 = math.exp %49 : vector<2x120xf32>
    %cst_33 = arith.constant 1.000000e+00 : f32
    %51 = vector.broadcast %cst_33 : f32 to vector<2x120xf32>
    %52 = arith.addf %51, %50 : vector<2x120xf32>
    %53 = arith.divf %51, %52 : vector<2x120xf32>
    %54 = vector.extract_strided_slice %47 {offsets = [0, 120], sizes = [2, 40], strides = [1, 1]} : vector<2x160xf32> to vector<2x40xf32>
    %55 = math.tanh %54 : vector<2x40xf32>
    %56 = vector.extract_strided_slice %53 {offsets = [0, 0], sizes = [2, 40], strides = [1, 1]} : vector<2x120xf32> to vector<2x40xf32>
    %57 = vector.extract_strided_slice %53 {offsets = [0, 40], sizes = [2, 40], strides = [1, 1]} : vector<2x120xf32> to vector<2x40xf32>
    %58 = vector.extract_strided_slice %53 {offsets = [0, 80], sizes = [2, 40], strides = [1, 1]} : vector<2x120xf32> to vector<2x40xf32>
    %59 = arith.mulf %57, %16 : vector<2x40xf32>
    %60 = arith.mulf %56, %55 : vector<2x40xf32>
    %61 = arith.addf %59, %60 : vector<2x40xf32>
    %62 = math.tanh %61 : vector<2x40xf32>
    %63 = arith.mulf %58, %62 : vector<2x40xf32>
    %c1_34 = arith.constant 1 : index
    %c0_35 = arith.constant 0 : index
    %c0_36 = arith.constant 0 : index
    %64 = vector.load %arg2[%c1_34, %c0_35, %c0_36] : memref<2x40x160xf32, #tpu.memory_space<vmem>>, vector<1x40x160xf32>
    %65 = vector.shape_cast %64 : vector<1x40x160xf32> to vector<40x160xf32>
    %cst_37 = arith.constant dense<0.000000e+00> : vector<2x160xf32>
    %66 = tpu.matmul %63, %65, %cst_37 {dimension_numbers = #tpu.dot_dimension_numbers<[1], [0], [0], [1], [0, 0, 1, 1], [], []>} : vector<2x40xf32>, vector<40x160xf32>, vector<2x160xf32> -> vector<2x160xf32>
    %c2_38 = arith.constant 2 : index
    %c0_39 = arith.constant 0 : index
    %c0_40 = arith.constant 0 : index
    %67 = vector.load %arg3[%c2_38, %c0_39, %c0_40] : memref<3x40x160xf32, #tpu.memory_space<vmem>>, vector<1x40x160xf32>
    %68 = vector.shape_cast %67 : vector<1x40x160xf32> to vector<40x160xf32>
    %cst_41 = arith.constant dense<0.000000e+00> : vector<2x160xf32>
    %69 = tpu.matmul %14, %68, %cst_41 {dimension_numbers = #tpu.dot_dimension_numbers<[1], [0], [0], [1], [0, 0, 1, 1], [], []>} : vector<2x40xf32>, vector<40x160xf32>, vector<2x160xf32> -> vector<2x160xf32>
    %70 = arith.addf %66, %69 : vector<2x160xf32>
    %71 = vector.broadcast %5 : vector<1x160xf32> to vector<2x160xf32>
    %72 = arith.addf %70, %71 : vector<2x160xf32>
    %73 = vector.extract_strided_slice %72 {offsets = [0, 0], sizes = [2, 120], strides = [1, 1]} : vector<2x160xf32> to vector<2x120xf32>
    %74 = arith.negf %73 : vector<2x120xf32>
    %75 = math.exp %74 : vector<2x120xf32>
    %cst_42 = arith.constant 1.000000e+00 : f32
    %76 = vector.broadcast %cst_42 : f32 to vector<2x120xf32>
    %77 = arith.addf %76, %75 : vector<2x120xf32>
    %78 = arith.divf %76, %77 : vector<2x120xf32>
    %79 = vector.extract_strided_slice %72 {offsets = [0, 120], sizes = [2, 40], strides = [1, 1]} : vector<2x160xf32> to vector<2x40xf32>
    %80 = math.tanh %79 : vector<2x40xf32>
    %81 = vector.extract_strided_slice %78 {offsets = [0, 0], sizes = [2, 40], strides = [1, 1]} : vector<2x120xf32> to vector<2x40xf32>
    %82 = vector.extract_strided_slice %78 {offsets = [0, 40], sizes = [2, 40], strides = [1, 1]} : vector<2x120xf32> to vector<2x40xf32>
    %83 = vector.extract_strided_slice %78 {offsets = [0, 80], sizes = [2, 40], strides = [1, 1]} : vector<2x120xf32> to vector<2x40xf32>
    %84 = arith.mulf %82, %17 : vector<2x40xf32>
    %85 = arith.mulf %81, %80 : vector<2x40xf32>
    %86 = arith.addf %84, %85 : vector<2x40xf32>
    %87 = math.tanh %86 : vector<2x40xf32>
    %88 = arith.mulf %83, %87 : vector<2x40xf32>
    %c0_43 = arith.constant 0 : index
    %c0_44 = arith.constant 0 : index
    %89 = vector.load %arg9[%c0_43, %c0_44] : memref<16x40xf32, #tpu.memory_space<vmem>>, vector<2x40xf32>
    tpu.vector_store %arg9[%c0_43, %c0_44], %88 {strides = array<i32>} : memref<16x40xf32, #tpu.memory_space<vmem>>, vector<2x40xf32>,
    %c2_45 = arith.constant 2 : index
    %c0_46 = arith.constant 0 : index
    %90 = vector.load %arg8[%c2_45, %c0_46] : memref<16x160xf32, #tpu.memory_space<vmem>>, vector<2x160xf32>
    %c0_47 = arith.constant 0 : index
    %c0_48 = arith.constant 0 : index
    %c0_49 = arith.constant 0 : index
    %91 = vector.load %arg3[%c0_47, %c0_48, %c0_49] : memref<3x40x160xf32, #tpu.memory_space<vmem>>, vector<1x40x160xf32>
    %92 = vector.shape_cast %91 : vector<1x40x160xf32> to vector<40x160xf32>
    %cst_50 = arith.constant dense<0.000000e+00> : vector<2x160xf32>
    %93 = tpu.matmul %38, %92, %cst_50 {dimension_numbers = #tpu.dot_dimension_numbers<[1], [0], [0], [1], [0, 0, 1, 1], [], []>} : vector<2x40xf32>, vector<40x160xf32>, vector<2x160xf32> -> vector<2x160xf32>
    %94 = arith.addf %90, %93 : vector<2x160xf32>
    %95 = vector.extract_strided_slice %94 {offsets = [0, 0], sizes = [2, 120], strides = [1, 1]} : vector<2x160xf32> to vector<2x120xf32>
    %96 = arith.negf %95 : vector<2x120xf32>
    %97 = math.exp %96 : vector<2x120xf32>
    %cst_51 = arith.constant 1.000000e+00 : f32
    %98 = vector.broadcast %cst_51 : f32 to vector<2x120xf32>
    %99 = arith.addf %98, %97 : vector<2x120xf32>
    %100 = arith.divf %98, %99 : vector<2x120xf32>
    %101 = vector.extract_strided_slice %94 {offsets = [0, 120], sizes = [2, 40], strides = [1, 1]} : vector<2x160xf32> to vector<2x40xf32>
    %102 = math.tanh %101 : vector<2x40xf32>
    %103 = vector.extract_strided_slice %100 {offsets = [0, 0], sizes = [2, 40], strides = [1, 1]} : vector<2x120xf32> to vector<2x40xf32>
    %104 = vector.extract_strided_slice %100 {offsets = [0, 40], sizes = [2, 40], strides = [1, 1]} : vector<2x120xf32> to vector<2x40xf32>
    %105 = vector.extract_strided_slice %100 {offsets = [0, 80], sizes = [2, 40], strides = [1, 1]} : vector<2x120xf32> to vector<2x40xf32>
    %106 = arith.mulf %104, %36 : vector<2x40xf32>
    %107 = arith.mulf %103, %102 : vector<2x40xf32>
    %108 = arith.addf %106, %107 : vector<2x40xf32>
    %109 = math.tanh %108 : vector<2x40xf32>
    %110 = arith.mulf %105, %109 : vector<2x40xf32>
    %c0_52 = arith.constant 0 : index
    %c0_53 = arith.constant 0 : index
    %c0_54 = arith.constant 0 : index
    %111 = vector.load %arg2[%c0_52, %c0_53, %c0_54] : memref<2x40x160xf32, #tpu.memory_space<vmem>>, vector<1x40x160xf32>
    %112 = vector.shape_cast %111 : vector<1x40x160xf32> to vector<40x160xf32>
    %cst_55 = arith.constant dense<0.000000e+00> : vector<2x160xf32>
    %113 = tpu.matmul %110, %112, %cst_55 {dimension_numbers = #tpu.dot_dimension_numbers<[1], [0], [0], [1], [0, 0, 1, 1], [], []>} : vector<2x40xf32>, vector<40x160xf32>, vector<2x160xf32> -> vector<2x160xf32>
    %c1_56 = arith.constant 1 : index
    %c0_57 = arith.constant 0 : index
    %c0_58 = arith.constant 0 : index
    %114 = vector.load %arg3[%c1_56, %c0_57, %c0_58] : memref<3x40x160xf32, #tpu.memory_space<vmem>>, vector<1x40x160xf32>
    %115 = vector.shape_cast %114 : vector<1x40x160xf32> to vector<40x160xf32>
    %cst_59 = arith.constant dense<0.000000e+00> : vector<2x160xf32>
    %116 = tpu.matmul %63, %115, %cst_59 {dimension_numbers = #tpu.dot_dimension_numbers<[1], [0], [0], [1], [0, 0, 1, 1], [], []>} : vector<2x40xf32>, vector<40x160xf32>, vector<2x160xf32> -> vector<2x160xf32>
    %117 = arith.addf %113, %116 : vector<2x160xf32>
    %118 = vector.broadcast %3 : vector<1x160xf32> to vector<2x160xf32>
    %119 = arith.addf %117, %118 : vector<2x160xf32>
    %120 = vector.extract_strided_slice %119 {offsets = [0, 0], sizes = [2, 120], strides = [1, 1]} : vector<2x160xf32> to vector<2x120xf32>
    %121 = arith.negf %120 : vector<2x120xf32>
    %122 = math.exp %121 : vector<2x120xf32>
    %cst_60 = arith.constant 1.000000e+00 : f32
    %123 = vector.broadcast %cst_60 : f32 to vector<2x120xf32>
    %124 = arith.addf %123, %122 : vector<2x120xf32>
    %125 = arith.divf %123, %124 : vector<2x120xf32>
    %126 = vector.extract_strided_slice %119 {offsets = [0, 120], sizes = [2, 40], strides = [1, 1]} : vector<2x160xf32> to vector<2x40xf32>
    %127 = math.tanh %126 : vector<2x40xf32>
    %128 = vector.extract_strided_slice %125 {offsets = [0, 0], sizes = [2, 40], strides = [1, 1]} : vector<2x120xf32> to vector<2x40xf32>
    %129 = vector.extract_strided_slice %125 {offsets = [0, 40], sizes = [2, 40], strides = [1, 1]} : vector<2x120xf32> to vector<2x40xf32>
    %130 = vector.extract_strided_slice %125 {offsets = [0, 80], sizes = [2, 40], strides = [1, 1]} : vector<2x120xf32> to vector<2x40xf32>
    %131 = arith.mulf %129, %61 : vector<2x40xf32>
    %132 = arith.mulf %128, %127 : vector<2x40xf32>
    %133 = arith.addf %131, %132 : vector<2x40xf32>
    %134 = math.tanh %133 : vector<2x40xf32>
    %135 = arith.mulf %130, %134 : vector<2x40xf32>
    %c1_61 = arith.constant 1 : index
    %c0_62 = arith.constant 0 : index
    %c0_63 = arith.constant 0 : index
    %136 = vector.load %arg2[%c1_61, %c0_62, %c0_63] : memref<2x40x160xf32, #tpu.memory_space<vmem>>, vector<1x40x160xf32>
    %137 = vector.shape_cast %136 : vector<1x40x160xf32> to vector<40x160xf32>
    %cst_64 = arith.constant dense<0.000000e+00> : vector<2x160xf32>
    %138 = tpu.matmul %135, %137, %cst_64 {dimension_numbers = #tpu.dot_dimension_numbers<[1], [0], [0], [1], [0, 0, 1, 1], [], []>} : vector<2x40xf32>, vector<40x160xf32>, vector<2x160xf32> -> vector<2x160xf32>
    %c2_65 = arith.constant 2 : index
    %c0_66 = arith.constant 0 : index
    %c0_67 = arith.constant 0 : index
    %139 = vector.load %arg3[%c2_65, %c0_66, %c0_67] : memref<3x40x160xf32, #tpu.memory_space<vmem>>, vector<1x40x160xf32>
    %140 = vector.shape_cast %139 : vector<1x40x160xf32> to vector<40x160xf32>
    %cst_68 = arith.constant dense<0.000000e+00> : vector<2x160xf32>
    %141 = tpu.matmul %88, %140, %cst_68 {dimension_numbers = #tpu.dot_dimension_numbers<[1], [0], [0], [1], [0, 0, 1, 1], [], []>} : vector<2x40xf32>, vector<40x160xf32>, vector<2x160xf32> -> vector<2x160xf32>
    %142 = arith.addf %138, %141 : vector<2x160xf32>
    %143 = vector.broadcast %5 : vector<1x160xf32> to vector<2x160xf32>
    %144 = arith.addf %142, %143 : vector<2x160xf32>
    %145 = vector.extract_strided_slice %144 {offsets = [0, 0], sizes = [2, 120], strides = [1, 1]} : vector<2x160xf32> to vector<2x120xf32>
    %146 = arith.negf %145 : vector<2x120xf32>
    %147 = math.exp %146 : vector<2x120xf32>
    %cst_69 = arith.constant 1.000000e+00 : f32
    %148 = vector.broadcast %cst_69 : f32 to vector<2x120xf32>
    %149 = arith.addf %148, %147 : vector<2x120xf32>
    %150 = arith.divf %148, %149 : vector<2x120xf32>
    %151 = vector.extract_strided_slice %144 {offsets = [0, 120], sizes = [2, 40], strides = [1, 1]} : vector<2x160xf32> to vector<2x40xf32>
    %152 = math.tanh %151 : vector<2x40xf32>
    %153 = vector.extract_strided_slice %150 {offsets = [0, 0], sizes = [2, 40], strides = [1, 1]} : vector<2x120xf32> to vector<2x40xf32>
    %154 = vector.extract_strided_slice %150 {offsets = [0, 40], sizes = [2, 40], strides = [1, 1]} : vector<2x120xf32> to vector<2x40xf32>
    %155 = vector.extract_strided_slice %150 {offsets = [0, 80], sizes = [2, 40], strides = [1, 1]} : vector<2x120xf32> to vector<2x40xf32>
    %156 = arith.mulf %154, %86 : vector<2x40xf32>
    %157 = arith.mulf %153, %152 : vector<2x40xf32>
    %158 = arith.addf %156, %157 : vector<2x40xf32>
    %159 = math.tanh %158 : vector<2x40xf32>
    %160 = arith.mulf %155, %159 : vector<2x40xf32>
    %c2_70 = arith.constant 2 : index
    %c0_71 = arith.constant 0 : index
    %161 = vector.load %arg9[%c2_70, %c0_71] : memref<16x40xf32, #tpu.memory_space<vmem>>, vector<2x40xf32>
    tpu.vector_store %arg9[%c2_70, %c0_71], %160 {strides = array<i32>} : memref<16x40xf32, #tpu.memory_space<vmem>>, vector<2x40xf32>,
    %c4 = arith.constant 4 : index
    %c0_72 = arith.constant 0 : index
    %162 = vector.load %arg8[%c4, %c0_72] : memref<16x160xf32, #tpu.memory_space<vmem>>, vector<2x160xf32>
    %c0_73 = arith.constant 0 : index
    %c0_74 = arith.constant 0 : index
    %c0_75 = arith.constant 0 : index
    %163 = vector.load %arg3[%c0_73, %c0_74, %c0_75] : memref<3x40x160xf32, #tpu.memory_space<vmem>>, vector<1x40x160xf32>
    %164 = vector.shape_cast %163 : vector<1x40x160xf32> to vector<40x160xf32>
    %cst_76 = arith.constant dense<0.000000e+00> : vector<2x160xf32>
    %165 = tpu.matmul %110, %164, %cst_76 {dimension_numbers = #tpu.dot_dimension_numbers<[1], [0], [0], [1], [0, 0, 1, 1], [], []>} : vector<2x40xf32>, vector<40x160xf32>, vector<2x160xf32> -> vector<2x160xf32>
    %166 = arith.addf %162, %165 : vector<2x160xf32>
    %167 = vector.extract_strided_slice %166 {offsets = [0, 0], sizes = [2, 120], strides = [1, 1]} : vector<2x160xf32> to vector<2x120xf32>
    %168 = arith.negf %167 : vector<2x120xf32>
    %169 = math.exp %168 : vector<2x120xf32>
    %cst_77 = arith.constant 1.000000e+00 : f32
    %170 = vector.broadcast %cst_77 : f32 to vector<2x120xf32>
    %171 = arith.addf %170, %169 : vector<2x120xf32>
    %172 = arith.divf %170, %171 : vector<2x120xf32>
    %173 = vector.extract_strided_slice %166 {offsets = [0, 120], sizes = [2, 40], strides = [1, 1]} : vector<2x160xf32> to vector<2x40xf32>
    %174 = math.tanh %173 : vector<2x40xf32>
    %175 = vector.extract_strided_slice %172 {offsets = [0, 0], sizes = [2, 40], strides = [1, 1]} : vector<2x120xf32> to vector<2x40xf32>
    %176 = vector.extract_strided_slice %172 {offsets = [0, 40], sizes = [2, 40], strides = [1, 1]} : vector<2x120xf32> to vector<2x40xf32>
    %177 = vector.extract_strided_slice %172 {offsets = [0, 80], sizes = [2, 40], strides = [1, 1]} : vector<2x120xf32> to vector<2x40xf32>
    %178 = arith.mulf %176, %108 : vector<2x40xf32>
    %179 = arith.mulf %175, %174 : vector<2x40xf32>
    %180 = arith.addf %178, %179 : vector<2x40xf32>
    %181 = math.tanh %180 : vector<2x40xf32>
    %182 = arith.mulf %177, %181 : vector<2x40xf32>
    %c0_78 = arith.constant 0 : index
    %c0_79 = arith.constant 0 : index
    %c0_80 = arith.constant 0 : index
    %183 = vector.load %arg2[%c0_78, %c0_79, %c0_80] : memref<2x40x160xf32, #tpu.memory_space<vmem>>, vector<1x40x160xf32>
    %184 = vector.shape_cast %183 : vector<1x40x160xf32> to vector<40x160xf32>
    %cst_81 = arith.constant dense<0.000000e+00> : vector<2x160xf32>
    %185 = tpu.matmul %182, %184, %cst_81 {dimension_numbers = #tpu.dot_dimension_numbers<[1], [0], [0], [1], [0, 0, 1, 1], [], []>} : vector<2x40xf32>, vector<40x160xf32>, vector<2x160xf32> -> vector<2x160xf32>
    %c1_82 = arith.constant 1 : index
    %c0_83 = arith.constant 0 : index
    %c0_84 = arith.constant 0 : index
    %186 = vector.load %arg3[%c1_82, %c0_83, %c0_84] : memref<3x40x160xf32, #tpu.memory_space<vmem>>, vector<1x40x160xf32>
    %187 = vector.shape_cast %186 : vector<1x40x160xf32> to vector<40x160xf32>
    %cst_85 = arith.constant dense<0.000000e+00> : vector<2x160xf32>
    %188 = tpu.matmul %135, %187, %cst_85 {dimension_numbers = #tpu.dot_dimension_numbers<[1], [0], [0], [1], [0, 0, 1, 1], [], []>} : vector<2x40xf32>, vector<40x160xf32>, vector<2x160xf32> -> vector<2x160xf32>
    %189 = arith.addf %185, %188 : vector<2x160xf32>
    %190 = vector.broadcast %3 : vector<1x160xf32> to vector<2x160xf32>
    %191 = arith.addf %189, %190 : vector<2x160xf32>
    %192 = vector.extract_strided_slice %191 {offsets = [0, 0], sizes = [2, 120], strides = [1, 1]} : vector<2x160xf32> to vector<2x120xf32>
    %193 = arith.negf %192 : vector<2x120xf32>
    %194 = math.exp %193 : vector<2x120xf32>
    %cst_86 = arith.constant 1.000000e+00 : f32
    %195 = vector.broadcast %cst_86 : f32 to vector<2x120xf32>
    %196 = arith.addf %195, %194 : vector<2x120xf32>
    %197 = arith.divf %195, %196 : vector<2x120xf32>
    %198 = vector.extract_strided_slice %191 {offsets = [0, 120], sizes = [2, 40], strides = [1, 1]} : vector<2x160xf32> to vector<2x40xf32>
    %199 = math.tanh %198 : vector<2x40xf32>
    %200 = vector.extract_strided_slice %197 {offsets = [0, 0], sizes = [2, 40], strides = [1, 1]} : vector<2x120xf32> to vector<2x40xf32>
    %201 = vector.extract_strided_slice %197 {offsets = [0, 40], sizes = [2, 40], strides = [1, 1]} : vector<2x120xf32> to vector<2x40xf32>
    %202 = vector.extract_strided_slice %197 {offsets = [0, 80], sizes = [2, 40], strides = [1, 1]} : vector<2x120xf32> to vector<2x40xf32>
    %203 = arith.mulf %201, %133 : vector<2x40xf32>
    %204 = arith.mulf %200, %199 : vector<2x40xf32>
    %205 = arith.addf %203, %204 : vector<2x40xf32>
    %206 = math.tanh %205 : vector<2x40xf32>
    %207 = arith.mulf %202, %206 : vector<2x40xf32>
    %c1_87 = arith.constant 1 : index
    %c0_88 = arith.constant 0 : index
    %c0_89 = arith.constant 0 : index
    %208 = vector.load %arg2[%c1_87, %c0_88, %c0_89] : memref<2x40x160xf32, #tpu.memory_space<vmem>>, vector<1x40x160xf32>
    %209 = vector.shape_cast %208 : vector<1x40x160xf32> to vector<40x160xf32>
    %cst_90 = arith.constant dense<0.000000e+00> : vector<2x160xf32>
    %210 = tpu.matmul %207, %209, %cst_90 {dimension_numbers = #tpu.dot_dimension_numbers<[1], [0], [0], [1], [0, 0, 1, 1], [], []>} : vector<2x40xf32>, vector<40x160xf32>, vector<2x160xf32> -> vector<2x160xf32>
    %c2_91 = arith.constant 2 : index
    %c0_92 = arith.constant 0 : index
    %c0_93 = arith.constant 0 : index
    %211 = vector.load %arg3[%c2_91, %c0_92, %c0_93] : memref<3x40x160xf32, #tpu.memory_space<vmem>>, vector<1x40x160xf32>
    %212 = vector.shape_cast %211 : vector<1x40x160xf32> to vector<40x160xf32>
    %cst_94 = arith.constant dense<0.000000e+00> : vector<2x160xf32>
    %213 = tpu.matmul %160, %212, %cst_94 {dimension_numbers = #tpu.dot_dimension_numbers<[1], [0], [0], [1], [0, 0, 1, 1], [], []>} : vector<2x40xf32>, vector<40x160xf32>, vector<2x160xf32> -> vector<2x160xf32>
    %214 = arith.addf %210, %213 : vector<2x160xf32>
    %215 = vector.broadcast %5 : vector<1x160xf32> to vector<2x160xf32>
    %216 = arith.addf %214, %215 : vector<2x160xf32>
    %217 = vector.extract_strided_slice %216 {offsets = [0, 0], sizes = [2, 120], strides = [1, 1]} : vector<2x160xf32> to vector<2x120xf32>
    %218 = arith.negf %217 : vector<2x120xf32>
    %219 = math.exp %218 : vector<2x120xf32>
    %cst_95 = arith.constant 1.000000e+00 : f32
    %220 = vector.broadcast %cst_95 : f32 to vector<2x120xf32>
    %221 = arith.addf %220, %219 : vector<2x120xf32>
    %222 = arith.divf %220, %221 : vector<2x120xf32>
    %223 = vector.extract_strided_slice %216 {offsets = [0, 120], sizes = [2, 40], strides = [1, 1]} : vector<2x160xf32> to vector<2x40xf32>
    %224 = math.tanh %223 : vector<2x40xf32>
    %225 = vector.extract_strided_slice %222 {offsets = [0, 0], sizes = [2, 40], strides = [1, 1]} : vector<2x120xf32> to vector<2x40xf32>
    %226 = vector.extract_strided_slice %222 {offsets = [0, 40], sizes = [2, 40], strides = [1, 1]} : vector<2x120xf32> to vector<2x40xf32>
    %227 = vector.extract_strided_slice %222 {offsets = [0, 80], sizes = [2, 40], strides = [1, 1]} : vector<2x120xf32> to vector<2x40xf32>
    %228 = arith.mulf %226, %158 : vector<2x40xf32>
    %229 = arith.mulf %225, %224 : vector<2x40xf32>
    %230 = arith.addf %228, %229 : vector<2x40xf32>
    %231 = math.tanh %230 : vector<2x40xf32>
    %232 = arith.mulf %227, %231 : vector<2x40xf32>
    %c4_96 = arith.constant 4 : index
    %c0_97 = arith.constant 0 : index
    %233 = vector.load %arg9[%c4_96, %c0_97] : memref<16x40xf32, #tpu.memory_space<vmem>>, vector<2x40xf32>
    tpu.vector_store %arg9[%c4_96, %c0_97], %232 {strides = array<i32>} : memref<16x40xf32, #tpu.memory_space<vmem>>, vector<2x40xf32>,
    %c6 = arith.constant 6 : index
    %c0_98 = arith.constant 0 : index
    %234 = vector.load %arg8[%c6, %c0_98] : memref<16x160xf32, #tpu.memory_space<vmem>>, vector<2x160xf32>
    %c0_99 = arith.constant 0 : index
    %c0_100 = arith.constant 0 : index
    %c0_101 = arith.constant 0 : index
    %235 = vector.load %arg3[%c0_99, %c0_100, %c0_101] : memref<3x40x160xf32, #tpu.memory_space<vmem>>, vector<1x40x160xf32>
    %236 = vector.shape_cast %235 : vector<1x40x160xf32> to vector<40x160xf32>
    %cst_102 = arith.constant dense<0.000000e+00> : vector<2x160xf32>
    %237 = tpu.matmul %182, %236, %cst_102 {dimension_numbers = #tpu.dot_dimension_numbers<[1], [0], [0], [1], [0, 0, 1, 1], [], []>} : vector<2x40xf32>, vector<40x160xf32>, vector<2x160xf32> -> vector<2x160xf32>
    %238 = arith.addf %234, %237 : vector<2x160xf32>
    %239 = vector.extract_strided_slice %238 {offsets = [0, 0], sizes = [2, 120], strides = [1, 1]} : vector<2x160xf32> to vector<2x120xf32>
    %240 = arith.negf %239 : vector<2x120xf32>
    %241 = math.exp %240 : vector<2x120xf32>
    %cst_103 = arith.constant 1.000000e+00 : f32
    %242 = vector.broadcast %cst_103 : f32 to vector<2x120xf32>
    %243 = arith.addf %242, %241 : vector<2x120xf32>
    %244 = arith.divf %242, %243 : vector<2x120xf32>
    %245 = vector.extract_strided_slice %238 {offsets = [0, 120], sizes = [2, 40], strides = [1, 1]} : vector<2x160xf32> to vector<2x40xf32>
    %246 = math.tanh %245 : vector<2x40xf32>
    %247 = vector.extract_strided_slice %244 {offsets = [0, 0], sizes = [2, 40], strides = [1, 1]} : vector<2x120xf32> to vector<2x40xf32>
    %248 = vector.extract_strided_slice %244 {offsets = [0, 40], sizes = [2, 40], strides = [1, 1]} : vector<2x120xf32> to vector<2x40xf32>
    %249 = vector.extract_strided_slice %244 {offsets = [0, 80], sizes = [2, 40], strides = [1, 1]} : vector<2x120xf32> to vector<2x40xf32>
    %250 = arith.mulf %248, %180 : vector<2x40xf32>
    %251 = arith.mulf %247, %246 : vector<2x40xf32>
    %252 = arith.addf %250, %251 : vector<2x40xf32>
    %253 = math.tanh %252 : vector<2x40xf32>
    %254 = arith.mulf %249, %253 : vector<2x40xf32>
    %c0_104 = arith.constant 0 : index
    %c0_105 = arith.constant 0 : index
    %c0_106 = arith.constant 0 : index
    %255 = vector.load %arg2[%c0_104, %c0_105, %c0_106] : memref<2x40x160xf32, #tpu.memory_space<vmem>>, vector<1x40x160xf32>
    %256 = vector.shape_cast %255 : vector<1x40x160xf32> to vector<40x160xf32>
    %cst_107 = arith.constant dense<0.000000e+00> : vector<2x160xf32>
    %257 = tpu.matmul %254, %256, %cst_107 {dimension_numbers = #tpu.dot_dimension_numbers<[1], [0], [0], [1], [0, 0, 1, 1], [], []>} : vector<2x40xf32>, vector<40x160xf32>, vector<2x160xf32> -> vector<2x160xf32>
    %c1_108 = arith.constant 1 : index
    %c0_109 = arith.constant 0 : index
    %c0_110 = arith.constant 0 : index
    %258 = vector.load %arg3[%c1_108, %c0_109, %c0_110] : memref<3x40x160xf32, #tpu.memory_space<vmem>>, vector<1x40x160xf32>
    %259 = vector.shape_cast %258 : vector<1x40x160xf32> to vector<40x160xf32>
    %cst_111 = arith.constant dense<0.000000e+00> : vector<2x160xf32>
    %260 = tpu.matmul %207, %259, %cst_111 {dimension_numbers = #tpu.dot_dimension_numbers<[1], [0], [0], [1], [0, 0, 1, 1], [], []>} : vector<2x40xf32>, vector<40x160xf32>, vector<2x160xf32> -> vector<2x160xf32>
    %261 = arith.addf %257, %260 : vector<2x160xf32>
    %262 = vector.broadcast %3 : vector<1x160xf32> to vector<2x160xf32>
    %263 = arith.addf %261, %262 : vector<2x160xf32>
    %264 = vector.extract_strided_slice %263 {offsets = [0, 0], sizes = [2, 120], strides = [1, 1]} : vector<2x160xf32> to vector<2x120xf32>
    %265 = arith.negf %264 : vector<2x120xf32>
    %266 = math.exp %265 : vector<2x120xf32>
    %cst_112 = arith.constant 1.000000e+00 : f32
    %267 = vector.broadcast %cst_112 : f32 to vector<2x120xf32>
    %268 = arith.addf %267, %266 : vector<2x120xf32>
    %269 = arith.divf %267, %268 : vector<2x120xf32>
    %270 = vector.extract_strided_slice %263 {offsets = [0, 120], sizes = [2, 40], strides = [1, 1]} : vector<2x160xf32> to vector<2x40xf32>
    %271 = math.tanh %270 : vector<2x40xf32>
    %272 = vector.extract_strided_slice %269 {offsets = [0, 0], sizes = [2, 40], strides = [1, 1]} : vector<2x120xf32> to vector<2x40xf32>
    %273 = vector.extract_strided_slice %269 {offsets = [0, 40], sizes = [2, 40], strides = [1, 1]} : vector<2x120xf32> to vector<2x40xf32>
    %274 = vector.extract_strided_slice %269 {offsets = [0, 80], sizes = [2, 40], strides = [1, 1]} : vector<2x120xf32> to vector<2x40xf32>
    %275 = arith.mulf %273, %205 : vector<2x40xf32>
    %276 = arith.mulf %272, %271 : vector<2x40xf32>
    %277 = arith.addf %275, %276 : vector<2x40xf32>
    %278 = math.tanh %277 : vector<2x40xf32>
    %279 = arith.mulf %274, %278 : vector<2x40xf32>
    %c1_113 = arith.constant 1 : index
    %c0_114 = arith.constant 0 : index
    %c0_115 = arith.constant 0 : index
    %280 = vector.load %arg2[%c1_113, %c0_114, %c0_115] : memref<2x40x160xf32, #tpu.memory_space<vmem>>, vector<1x40x160xf32>
    %281 = vector.shape_cast %280 : vector<1x40x160xf32> to vector<40x160xf32>
    %cst_116 = arith.constant dense<0.000000e+00> : vector<2x160xf32>
    %282 = tpu.matmul %279, %281, %cst_116 {dimension_numbers = #tpu.dot_dimension_numbers<[1], [0], [0], [1], [0, 0, 1, 1], [], []>} : vector<2x40xf32>, vector<40x160xf32>, vector<2x160xf32> -> vector<2x160xf32>
    %c2_117 = arith.constant 2 : index
    %c0_118 = arith.constant 0 : index
    %c0_119 = arith.constant 0 : index
    %283 = vector.load %arg3[%c2_117, %c0_118, %c0_119] : memref<3x40x160xf32, #tpu.memory_space<vmem>>, vector<1x40x160xf32>
    %284 = vector.shape_cast %283 : vector<1x40x160xf32> to vector<40x160xf32>
    %cst_120 = arith.constant dense<0.000000e+00> : vector<2x160xf32>
    %285 = tpu.matmul %232, %284, %cst_120 {dimension_numbers = #tpu.dot_dimension_numbers<[1], [0], [0], [1], [0, 0, 1, 1], [], []>} : vector<2x40xf32>, vector<40x160xf32>, vector<2x160xf32> -> vector<2x160xf32>
    %286 = arith.addf %282, %285 : vector<2x160xf32>
    %287 = vector.broadcast %5 : vector<1x160xf32> to vector<2x160xf32>
    %288 = arith.addf %286, %287 : vector<2x160xf32>
    %289 = vector.extract_strided_slice %288 {offsets = [0, 0], sizes = [2, 120], strides = [1, 1]} : vector<2x160xf32> to vector<2x120xf32>
    %290 = arith.negf %289 : vector<2x120xf32>
    %291 = math.exp %290 : vector<2x120xf32>
    %cst_121 = arith.constant 1.000000e+00 : f32
    %292 = vector.broadcast %cst_121 : f32 to vector<2x120xf32>
    %293 = arith.addf %292, %291 : vector<2x120xf32>
    %294 = arith.divf %292, %293 : vector<2x120xf32>
    %295 = vector.extract_strided_slice %288 {offsets = [0, 120], sizes = [2, 40], strides = [1, 1]} : vector<2x160xf32> to vector<2x40xf32>
    %296 = math.tanh %295 : vector<2x40xf32>
    %297 = vector.extract_strided_slice %294 {offsets = [0, 0], sizes = [2, 40], strides = [1, 1]} : vector<2x120xf32> to vector<2x40xf32>
    %298 = vector.extract_strided_slice %294 {offsets = [0, 40], sizes = [2, 40], strides = [1, 1]} : vector<2x120xf32> to vector<2x40xf32>
    %299 = vector.extract_strided_slice %294 {offsets = [0, 80], sizes = [2, 40], strides = [1, 1]} : vector<2x120xf32> to vector<2x40xf32>
    %300 = arith.mulf %298, %230 : vector<2x40xf32>
    %301 = arith.mulf %297, %296 : vector<2x40xf32>
    %302 = arith.addf %300, %301 : vector<2x40xf32>
    %303 = math.tanh %302 : vector<2x40xf32>
    %304 = arith.mulf %299, %303 : vector<2x40xf32>
    %c6_122 = arith.constant 6 : index
    %c0_123 = arith.constant 0 : index
    %305 = vector.load %arg9[%c6_122, %c0_123] : memref<16x40xf32, #tpu.memory_space<vmem>>, vector<2x40xf32>
    tpu.vector_store %arg9[%c6_122, %c0_123], %304 {strides = array<i32>} : memref<16x40xf32, #tpu.memory_space<vmem>>, vector<2x40xf32>,
    %c8 = arith.constant 8 : index
    %c0_124 = arith.constant 0 : index
    %306 = vector.load %arg8[%c8, %c0_124] : memref<16x160xf32, #tpu.memory_space<vmem>>, vector<2x160xf32>
    %c0_125 = arith.constant 0 : index
    %c0_126 = arith.constant 0 : index
    %c0_127 = arith.constant 0 : index
    %307 = vector.load %arg3[%c0_125, %c0_126, %c0_127] : memref<3x40x160xf32, #tpu.memory_space<vmem>>, vector<1x40x160xf32>
    %308 = vector.shape_cast %307 : vector<1x40x160xf32> to vector<40x160xf32>
    %cst_128 = arith.constant dense<0.000000e+00> : vector<2x160xf32>
    %309 = tpu.matmul %254, %308, %cst_128 {dimension_numbers = #tpu.dot_dimension_numbers<[1], [0], [0], [1], [0, 0, 1, 1], [], []>} : vector<2x40xf32>, vector<40x160xf32>, vector<2x160xf32> -> vector<2x160xf32>
    %310 = arith.addf %306, %309 : vector<2x160xf32>
    %311 = vector.extract_strided_slice %310 {offsets = [0, 0], sizes = [2, 120], strides = [1, 1]} : vector<2x160xf32> to vector<2x120xf32>
    %312 = arith.negf %311 : vector<2x120xf32>
    %313 = math.exp %312 : vector<2x120xf32>
    %cst_129 = arith.constant 1.000000e+00 : f32
    %314 = vector.broadcast %cst_129 : f32 to vector<2x120xf32>
    %315 = arith.addf %314, %313 : vector<2x120xf32>
    %316 = arith.divf %314, %315 : vector<2x120xf32>
    %317 = vector.extract_strided_slice %310 {offsets = [0, 120], sizes = [2, 40], strides = [1, 1]} : vector<2x160xf32> to vector<2x40xf32>
    %318 = math.tanh %317 : vector<2x40xf32>
    %319 = vector.extract_strided_slice %316 {offsets = [0, 0], sizes = [2, 40], strides = [1, 1]} : vector<2x120xf32> to vector<2x40xf32>
    %320 = vector.extract_strided_slice %316 {offsets = [0, 40], sizes = [2, 40], strides = [1, 1]} : vector<2x120xf32> to vector<2x40xf32>
    %321 = vector.extract_strided_slice %316 {offsets = [0, 80], sizes = [2, 40], strides = [1, 1]} : vector<2x120xf32> to vector<2x40xf32>
    %322 = arith.mulf %320, %252 : vector<2x40xf32>
    %323 = arith.mulf %319, %318 : vector<2x40xf32>
    %324 = arith.addf %322, %323 : vector<2x40xf32>
    %325 = math.tanh %324 : vector<2x40xf32>
    %326 = arith.mulf %321, %325 : vector<2x40xf32>
    %c0_130 = arith.constant 0 : index
    %c0_131 = arith.constant 0 : index
    %c0_132 = arith.constant 0 : index
    %327 = vector.load %arg2[%c0_130, %c0_131, %c0_132] : memref<2x40x160xf32, #tpu.memory_space<vmem>>, vector<1x40x160xf32>
    %328 = vector.shape_cast %327 : vector<1x40x160xf32> to vector<40x160xf32>
    %cst_133 = arith.constant dense<0.000000e+00> : vector<2x160xf32>
    %329 = tpu.matmul %326, %328, %cst_133 {dimension_numbers = #tpu.dot_dimension_numbers<[1], [0], [0], [1], [0, 0, 1, 1], [], []>} : vector<2x40xf32>, vector<40x160xf32>, vector<2x160xf32> -> vector<2x160xf32>
    %c1_134 = arith.constant 1 : index
    %c0_135 = arith.constant 0 : index
    %c0_136 = arith.constant 0 : index
    %330 = vector.load %arg3[%c1_134, %c0_135, %c0_136] : memref<3x40x160xf32, #tpu.memory_space<vmem>>, vector<1x40x160xf32>
    %331 = vector.shape_cast %330 : vector<1x40x160xf32> to vector<40x160xf32>
    %cst_137 = arith.constant dense<0.000000e+00> : vector<2x160xf32>
    %332 = tpu.matmul %279, %331, %cst_137 {dimension_numbers = #tpu.dot_dimension_numbers<[1], [0], [0], [1], [0, 0, 1, 1], [], []>} : vector<2x40xf32>, vector<40x160xf32>, vector<2x160xf32> -> vector<2x160xf32>
    %333 = arith.addf %329, %332 : vector<2x160xf32>
    %334 = vector.broadcast %3 : vector<1x160xf32> to vector<2x160xf32>
    %335 = arith.addf %333, %334 : vector<2x160xf32>
    %336 = vector.extract_strided_slice %335 {offsets = [0, 0], sizes = [2, 120], strides = [1, 1]} : vector<2x160xf32> to vector<2x120xf32>
    %337 = arith.negf %336 : vector<2x120xf32>
    %338 = math.exp %337 : vector<2x120xf32>
    %cst_138 = arith.constant 1.000000e+00 : f32
    %339 = vector.broadcast %cst_138 : f32 to vector<2x120xf32>
    %340 = arith.addf %339, %338 : vector<2x120xf32>
    %341 = arith.divf %339, %340 : vector<2x120xf32>
    %342 = vector.extract_strided_slice %335 {offsets = [0, 120], sizes = [2, 40], strides = [1, 1]} : vector<2x160xf32> to vector<2x40xf32>
    %343 = math.tanh %342 : vector<2x40xf32>
    %344 = vector.extract_strided_slice %341 {offsets = [0, 0], sizes = [2, 40], strides = [1, 1]} : vector<2x120xf32> to vector<2x40xf32>
    %345 = vector.extract_strided_slice %341 {offsets = [0, 40], sizes = [2, 40], strides = [1, 1]} : vector<2x120xf32> to vector<2x40xf32>
    %346 = vector.extract_strided_slice %341 {offsets = [0, 80], sizes = [2, 40], strides = [1, 1]} : vector<2x120xf32> to vector<2x40xf32>
    %347 = arith.mulf %345, %277 : vector<2x40xf32>
    %348 = arith.mulf %344, %343 : vector<2x40xf32>
    %349 = arith.addf %347, %348 : vector<2x40xf32>
    %350 = math.tanh %349 : vector<2x40xf32>
    %351 = arith.mulf %346, %350 : vector<2x40xf32>
    %c1_139 = arith.constant 1 : index
    %c0_140 = arith.constant 0 : index
    %c0_141 = arith.constant 0 : index
    %352 = vector.load %arg2[%c1_139, %c0_140, %c0_141] : memref<2x40x160xf32, #tpu.memory_space<vmem>>, vector<1x40x160xf32>
    %353 = vector.shape_cast %352 : vector<1x40x160xf32> to vector<40x160xf32>
    %cst_142 = arith.constant dense<0.000000e+00> : vector<2x160xf32>
    %354 = tpu.matmul %351, %353, %cst_142 {dimension_numbers = #tpu.dot_dimension_numbers<[1], [0], [0], [1], [0, 0, 1, 1], [], []>} : vector<2x40xf32>, vector<40x160xf32>, vector<2x160xf32> -> vector<2x160xf32>
    %c2_143 = arith.constant 2 : index
    %c0_144 = arith.constant 0 : index
    %c0_145 = arith.constant 0 : index
    %355 = vector.load %arg3[%c2_143, %c0_144, %c0_145] : memref<3x40x160xf32, #tpu.memory_space<vmem>>, vector<1x40x160xf32>
    %356 = vector.shape_cast %355 : vector<1x40x160xf32> to vector<40x160xf32>
    %cst_146 = arith.constant dense<0.000000e+00> : vector<2x160xf32>
    %357 = tpu.matmul %304, %356, %cst_146 {dimension_numbers = #tpu.dot_dimension_numbers<[1], [0], [0], [1], [0, 0, 1, 1], [], []>} : vector<2x40xf32>, vector<40x160xf32>, vector<2x160xf32> -> vector<2x160xf32>
    %358 = arith.addf %354, %357 : vector<2x160xf32>
    %359 = vector.broadcast %5 : vector<1x160xf32> to vector<2x160xf32>
    %360 = arith.addf %358, %359 : vector<2x160xf32>
    %361 = vector.extract_strided_slice %360 {offsets = [0, 0], sizes = [2, 120], strides = [1, 1]} : vector<2x160xf32> to vector<2x120xf32>
    %362 = arith.negf %361 : vector<2x120xf32>
    %363 = math.exp %362 : vector<2x120xf32>
    %cst_147 = arith.constant 1.000000e+00 : f32
    %364 = vector.broadcast %cst_147 : f32 to vector<2x120xf32>
    %365 = arith.addf %364, %363 : vector<2x120xf32>
    %366 = arith.divf %364, %365 : vector<2x120xf32>
    %367 = vector.extract_strided_slice %360 {offsets = [0, 120], sizes = [2, 40], strides = [1, 1]} : vector<2x160xf32> to vector<2x40xf32>
    %368 = math.tanh %367 : vector<2x40xf32>
    %369 = vector.extract_strided_slice %366 {offsets = [0, 0], sizes = [2, 40], strides = [1, 1]} : vector<2x120xf32> to vector<2x40xf32>
    %370 = vector.extract_strided_slice %366 {offsets = [0, 40], sizes = [2, 40], strides = [1, 1]} : vector<2x120xf32> to vector<2x40xf32>
    %371 = vector.extract_strided_slice %366 {offsets = [0, 80], sizes = [2, 40], strides = [1, 1]} : vector<2x120xf32> to vector<2x40xf32>
    %372 = arith.mulf %370, %302 : vector<2x40xf32>
    %373 = arith.mulf %369, %368 : vector<2x40xf32>
    %374 = arith.addf %372, %373 : vector<2x40xf32>
    %375 = math.tanh %374 : vector<2x40xf32>
    %376 = arith.mulf %371, %375 : vector<2x40xf32>
    %c8_148 = arith.constant 8 : index
    %c0_149 = arith.constant 0 : index
    %377 = vector.load %arg9[%c8_148, %c0_149] : memref<16x40xf32, #tpu.memory_space<vmem>>, vector<2x40xf32>
    tpu.vector_store %arg9[%c8_148, %c0_149], %376 {strides = array<i32>} : memref<16x40xf32, #tpu.memory_space<vmem>>, vector<2x40xf32>,
    %c10 = arith.constant 10 : index
    %c0_150 = arith.constant 0 : index
    %378 = vector.load %arg8[%c10, %c0_150] : memref<16x160xf32, #tpu.memory_space<vmem>>, vector<2x160xf32>
    %c0_151 = arith.constant 0 : index
    %c0_152 = arith.constant 0 : index
    %c0_153 = arith.constant 0 : index
    %379 = vector.load %arg3[%c0_151, %c0_152, %c0_153] : memref<3x40x160xf32, #tpu.memory_space<vmem>>, vector<1x40x160xf32>
    %380 = vector.shape_cast %379 : vector<1x40x160xf32> to vector<40x160xf32>
    %cst_154 = arith.constant dense<0.000000e+00> : vector<2x160xf32>
    %381 = tpu.matmul %326, %380, %cst_154 {dimension_numbers = #tpu.dot_dimension_numbers<[1], [0], [0], [1], [0, 0, 1, 1], [], []>} : vector<2x40xf32>, vector<40x160xf32>, vector<2x160xf32> -> vector<2x160xf32>
    %382 = arith.addf %378, %381 : vector<2x160xf32>
    %383 = vector.extract_strided_slice %382 {offsets = [0, 0], sizes = [2, 120], strides = [1, 1]} : vector<2x160xf32> to vector<2x120xf32>
    %384 = arith.negf %383 : vector<2x120xf32>
    %385 = math.exp %384 : vector<2x120xf32>
    %cst_155 = arith.constant 1.000000e+00 : f32
    %386 = vector.broadcast %cst_155 : f32 to vector<2x120xf32>
    %387 = arith.addf %386, %385 : vector<2x120xf32>
    %388 = arith.divf %386, %387 : vector<2x120xf32>
    %389 = vector.extract_strided_slice %382 {offsets = [0, 120], sizes = [2, 40], strides = [1, 1]} : vector<2x160xf32> to vector<2x40xf32>
    %390 = math.tanh %389 : vector<2x40xf32>
    %391 = vector.extract_strided_slice %388 {offsets = [0, 0], sizes = [2, 40], strides = [1, 1]} : vector<2x120xf32> to vector<2x40xf32>
    %392 = vector.extract_strided_slice %388 {offsets = [0, 40], sizes = [2, 40], strides = [1, 1]} : vector<2x120xf32> to vector<2x40xf32>
    %393 = vector.extract_strided_slice %388 {offsets = [0, 80], sizes = [2, 40], strides = [1, 1]} : vector<2x120xf32> to vector<2x40xf32>
    %394 = arith.mulf %392, %324 : vector<2x40xf32>
    %395 = arith.mulf %391, %390 : vector<2x40xf32>
    %396 = arith.addf %394, %395 : vector<2x40xf32>
    %397 = math.tanh %396 : vector<2x40xf32>
    %398 = arith.mulf %393, %397 : vector<2x40xf32>
    %c0_156 = arith.constant 0 : index
    %c0_157 = arith.constant 0 : index
    %c0_158 = arith.constant 0 : index
    %399 = vector.load %arg2[%c0_156, %c0_157, %c0_158] : memref<2x40x160xf32, #tpu.memory_space<vmem>>, vector<1x40x160xf32>
    %400 = vector.shape_cast %399 : vector<1x40x160xf32> to vector<40x160xf32>
    %cst_159 = arith.constant dense<0.000000e+00> : vector<2x160xf32>
    %401 = tpu.matmul %398, %400, %cst_159 {dimension_numbers = #tpu.dot_dimension_numbers<[1], [0], [0], [1], [0, 0, 1, 1], [], []>} : vector<2x40xf32>, vector<40x160xf32>, vector<2x160xf32> -> vector<2x160xf32>
    %c1_160 = arith.constant 1 : index
    %c0_161 = arith.constant 0 : index
    %c0_162 = arith.constant 0 : index
    %402 = vector.load %arg3[%c1_160, %c0_161, %c0_162] : memref<3x40x160xf32, #tpu.memory_space<vmem>>, vector<1x40x160xf32>
    %403 = vector.shape_cast %402 : vector<1x40x160xf32> to vector<40x160xf32>
    %cst_163 = arith.constant dense<0.000000e+00> : vector<2x160xf32>
    %404 = tpu.matmul %351, %403, %cst_163 {dimension_numbers = #tpu.dot_dimension_numbers<[1], [0], [0], [1], [0, 0, 1, 1], [], []>} : vector<2x40xf32>, vector<40x160xf32>, vector<2x160xf32> -> vector<2x160xf32>
    %405 = arith.addf %401, %404 : vector<2x160xf32>
    %406 = vector.broadcast %3 : vector<1x160xf32> to vector<2x160xf32>
    %407 = arith.addf %405, %406 : vector<2x160xf32>
    %408 = vector.extract_strided_slice %407 {offsets = [0, 0], sizes = [2, 120], strides = [1, 1]} : vector<2x160xf32> to vector<2x120xf32>
    %409 = arith.negf %408 : vector<2x120xf32>
    %410 = math.exp %409 : vector<2x120xf32>
    %cst_164 = arith.constant 1.000000e+00 : f32
    %411 = vector.broadcast %cst_164 : f32 to vector<2x120xf32>
    %412 = arith.addf %411, %410 : vector<2x120xf32>
    %413 = arith.divf %411, %412 : vector<2x120xf32>
    %414 = vector.extract_strided_slice %407 {offsets = [0, 120], sizes = [2, 40], strides = [1, 1]} : vector<2x160xf32> to vector<2x40xf32>
    %415 = math.tanh %414 : vector<2x40xf32>
    %416 = vector.extract_strided_slice %413 {offsets = [0, 0], sizes = [2, 40], strides = [1, 1]} : vector<2x120xf32> to vector<2x40xf32>
    %417 = vector.extract_strided_slice %413 {offsets = [0, 40], sizes = [2, 40], strides = [1, 1]} : vector<2x120xf32> to vector<2x40xf32>
    %418 = vector.extract_strided_slice %413 {offsets = [0, 80], sizes = [2, 40], strides = [1, 1]} : vector<2x120xf32> to vector<2x40xf32>
    %419 = arith.mulf %417, %349 : vector<2x40xf32>
    %420 = arith.mulf %416, %415 : vector<2x40xf32>
    %421 = arith.addf %419, %420 : vector<2x40xf32>
    %422 = math.tanh %421 : vector<2x40xf32>
    %423 = arith.mulf %418, %422 : vector<2x40xf32>
    %c1_165 = arith.constant 1 : index
    %c0_166 = arith.constant 0 : index
    %c0_167 = arith.constant 0 : index
    %424 = vector.load %arg2[%c1_165, %c0_166, %c0_167] : memref<2x40x160xf32, #tpu.memory_space<vmem>>, vector<1x40x160xf32>
    %425 = vector.shape_cast %424 : vector<1x40x160xf32> to vector<40x160xf32>
    %cst_168 = arith.constant dense<0.000000e+00> : vector<2x160xf32>
    %426 = tpu.matmul %423, %425, %cst_168 {dimension_numbers = #tpu.dot_dimension_numbers<[1], [0], [0], [1], [0, 0, 1, 1], [], []>} : vector<2x40xf32>, vector<40x160xf32>, vector<2x160xf32> -> vector<2x160xf32>
    %c2_169 = arith.constant 2 : index
    %c0_170 = arith.constant 0 : index
    %c0_171 = arith.constant 0 : index
    %427 = vector.load %arg3[%c2_169, %c0_170, %c0_171] : memref<3x40x160xf32, #tpu.memory_space<vmem>>, vector<1x40x160xf32>
    %428 = vector.shape_cast %427 : vector<1x40x160xf32> to vector<40x160xf32>
    %cst_172 = arith.constant dense<0.000000e+00> : vector<2x160xf32>
    %429 = tpu.matmul %376, %428, %cst_172 {dimension_numbers = #tpu.dot_dimension_numbers<[1], [0], [0], [1], [0, 0, 1, 1], [], []>} : vector<2x40xf32>, vector<40x160xf32>, vector<2x160xf32> -> vector<2x160xf32>
    %430 = arith.addf %426, %429 : vector<2x160xf32>
    %431 = vector.broadcast %5 : vector<1x160xf32> to vector<2x160xf32>
    %432 = arith.addf %430, %431 : vector<2x160xf32>
    %433 = vector.extract_strided_slice %432 {offsets = [0, 0], sizes = [2, 120], strides = [1, 1]} : vector<2x160xf32> to vector<2x120xf32>
    %434 = arith.negf %433 : vector<2x120xf32>
    %435 = math.exp %434 : vector<2x120xf32>
    %cst_173 = arith.constant 1.000000e+00 : f32
    %436 = vector.broadcast %cst_173 : f32 to vector<2x120xf32>
    %437 = arith.addf %436, %435 : vector<2x120xf32>
    %438 = arith.divf %436, %437 : vector<2x120xf32>
    %439 = vector.extract_strided_slice %432 {offsets = [0, 120], sizes = [2, 40], strides = [1, 1]} : vector<2x160xf32> to vector<2x40xf32>
    %440 = math.tanh %439 : vector<2x40xf32>
    %441 = vector.extract_strided_slice %438 {offsets = [0, 0], sizes = [2, 40], strides = [1, 1]} : vector<2x120xf32> to vector<2x40xf32>
    %442 = vector.extract_strided_slice %438 {offsets = [0, 40], sizes = [2, 40], strides = [1, 1]} : vector<2x120xf32> to vector<2x40xf32>
    %443 = vector.extract_strided_slice %438 {offsets = [0, 80], sizes = [2, 40], strides = [1, 1]} : vector<2x120xf32> to vector<2x40xf32>
    %444 = arith.mulf %442, %374 : vector<2x40xf32>
    %445 = arith.mulf %441, %440 : vector<2x40xf32>
    %446 = arith.addf %444, %445 : vector<2x40xf32>
    %447 = math.tanh %446 : vector<2x40xf32>
    %448 = arith.mulf %443, %447 : vector<2x40xf32>
    %c10_174 = arith.constant 10 : index
    %c0_175 = arith.constant 0 : index
    %449 = vector.load %arg9[%c10_174, %c0_175] : memref<16x40xf32, #tpu.memory_space<vmem>>, vector<2x40xf32>
    tpu.vector_store %arg9[%c10_174, %c0_175], %448 {strides = array<i32>} : memref<16x40xf32, #tpu.memory_space<vmem>>, vector<2x40xf32>,
    %c12 = arith.constant 12 : index
    %c0_176 = arith.constant 0 : index
    %450 = vector.load %arg8[%c12, %c0_176] : memref<16x160xf32, #tpu.memory_space<vmem>>, vector<2x160xf32>
    %c0_177 = arith.constant 0 : index
    %c0_178 = arith.constant 0 : index
    %c0_179 = arith.constant 0 : index
    %451 = vector.load %arg3[%c0_177, %c0_178, %c0_179] : memref<3x40x160xf32, #tpu.memory_space<vmem>>, vector<1x40x160xf32>
    %452 = vector.shape_cast %451 : vector<1x40x160xf32> to vector<40x160xf32>
    %cst_180 = arith.constant dense<0.000000e+00> : vector<2x160xf32>
    %453 = tpu.matmul %398, %452, %cst_180 {dimension_numbers = #tpu.dot_dimension_numbers<[1], [0], [0], [1], [0, 0, 1, 1], [], []>} : vector<2x40xf32>, vector<40x160xf32>, vector<2x160xf32> -> vector<2x160xf32>
    %454 = arith.addf %450, %453 : vector<2x160xf32>
    %455 = vector.extract_strided_slice %454 {offsets = [0, 0], sizes = [2, 120], strides = [1, 1]} : vector<2x160xf32> to vector<2x120xf32>
    %456 = arith.negf %455 : vector<2x120xf32>
    %457 = math.exp %456 : vector<2x120xf32>
    %cst_181 = arith.constant 1.000000e+00 : f32
    %458 = vector.broadcast %cst_181 : f32 to vector<2x120xf32>
    %459 = arith.addf %458, %457 : vector<2x120xf32>
    %460 = arith.divf %458, %459 : vector<2x120xf32>
    %461 = vector.extract_strided_slice %454 {offsets = [0, 120], sizes = [2, 40], strides = [1, 1]} : vector<2x160xf32> to vector<2x40xf32>
    %462 = math.tanh %461 : vector<2x40xf32>
    %463 = vector.extract_strided_slice %460 {offsets = [0, 0], sizes = [2, 40], strides = [1, 1]} : vector<2x120xf32> to vector<2x40xf32>
    %464 = vector.extract_strided_slice %460 {offsets = [0, 40], sizes = [2, 40], strides = [1, 1]} : vector<2x120xf32> to vector<2x40xf32>
    %465 = vector.extract_strided_slice %460 {offsets = [0, 80], sizes = [2, 40], strides = [1, 1]} : vector<2x120xf32> to vector<2x40xf32>
    %466 = arith.mulf %464, %396 : vector<2x40xf32>
    %467 = arith.mulf %463, %462 : vector<2x40xf32>
    %468 = arith.addf %466, %467 : vector<2x40xf32>
    %469 = math.tanh %468 : vector<2x40xf32>
    %470 = arith.mulf %465, %469 : vector<2x40xf32>
    %c0_182 = arith.constant 0 : index
    %c0_183 = arith.constant 0 : index
    %c0_184 = arith.constant 0 : index
    %471 = vector.load %arg2[%c0_182, %c0_183, %c0_184] : memref<2x40x160xf32, #tpu.memory_space<vmem>>, vector<1x40x160xf32>
    %472 = vector.shape_cast %471 : vector<1x40x160xf32> to vector<40x160xf32>
    %cst_185 = arith.constant dense<0.000000e+00> : vector<2x160xf32>
    %473 = tpu.matmul %470, %472, %cst_185 {dimension_numbers = #tpu.dot_dimension_numbers<[1], [0], [0], [1], [0, 0, 1, 1], [], []>} : vector<2x40xf32>, vector<40x160xf32>, vector<2x160xf32> -> vector<2x160xf32>
    %c1_186 = arith.constant 1 : index
    %c0_187 = arith.constant 0 : index
    %c0_188 = arith.constant 0 : index
    %474 = vector.load %arg3[%c1_186, %c0_187, %c0_188] : memref<3x40x160xf32, #tpu.memory_space<vmem>>, vector<1x40x160xf32>
    %475 = vector.shape_cast %474 : vector<1x40x160xf32> to vector<40x160xf32>
    %cst_189 = arith.constant dense<0.000000e+00> : vector<2x160xf32>
    %476 = tpu.matmul %423, %475, %cst_189 {dimension_numbers = #tpu.dot_dimension_numbers<[1], [0], [0], [1], [0, 0, 1, 1], [], []>} : vector<2x40xf32>, vector<40x160xf32>, vector<2x160xf32> -> vector<2x160xf32>
    %477 = arith.addf %473, %476 : vector<2x160xf32>
    %478 = vector.broadcast %3 : vector<1x160xf32> to vector<2x160xf32>
    %479 = arith.addf %477, %478 : vector<2x160xf32>
    %480 = vector.extract_strided_slice %479 {offsets = [0, 0], sizes = [2, 120], strides = [1, 1]} : vector<2x160xf32> to vector<2x120xf32>
    %481 = arith.negf %480 : vector<2x120xf32>
    %482 = math.exp %481 : vector<2x120xf32>
    %cst_190 = arith.constant 1.000000e+00 : f32
    %483 = vector.broadcast %cst_190 : f32 to vector<2x120xf32>
    %484 = arith.addf %483, %482 : vector<2x120xf32>
    %485 = arith.divf %483, %484 : vector<2x120xf32>
    %486 = vector.extract_strided_slice %479 {offsets = [0, 120], sizes = [2, 40], strides = [1, 1]} : vector<2x160xf32> to vector<2x40xf32>
    %487 = math.tanh %486 : vector<2x40xf32>
    %488 = vector.extract_strided_slice %485 {offsets = [0, 0], sizes = [2, 40], strides = [1, 1]} : vector<2x120xf32> to vector<2x40xf32>
    %489 = vector.extract_strided_slice %485 {offsets = [0, 40], sizes = [2, 40], strides = [1, 1]} : vector<2x120xf32> to vector<2x40xf32>
    %490 = vector.extract_strided_slice %485 {offsets = [0, 80], sizes = [2, 40], strides = [1, 1]} : vector<2x120xf32> to vector<2x40xf32>
    %491 = arith.mulf %489, %421 : vector<2x40xf32>
    %492 = arith.mulf %488, %487 : vector<2x40xf32>
    %493 = arith.addf %491, %492 : vector<2x40xf32>
    %494 = math.tanh %493 : vector<2x40xf32>
    %495 = arith.mulf %490, %494 : vector<2x40xf32>
    %c1_191 = arith.constant 1 : index
    %c0_192 = arith.constant 0 : index
    %c0_193 = arith.constant 0 : index
    %496 = vector.load %arg2[%c1_191, %c0_192, %c0_193] : memref<2x40x160xf32, #tpu.memory_space<vmem>>, vector<1x40x160xf32>
    %497 = vector.shape_cast %496 : vector<1x40x160xf32> to vector<40x160xf32>
    %cst_194 = arith.constant dense<0.000000e+00> : vector<2x160xf32>
    %498 = tpu.matmul %495, %497, %cst_194 {dimension_numbers = #tpu.dot_dimension_numbers<[1], [0], [0], [1], [0, 0, 1, 1], [], []>} : vector<2x40xf32>, vector<40x160xf32>, vector<2x160xf32> -> vector<2x160xf32>
    %c2_195 = arith.constant 2 : index
    %c0_196 = arith.constant 0 : index
    %c0_197 = arith.constant 0 : index
    %499 = vector.load %arg3[%c2_195, %c0_196, %c0_197] : memref<3x40x160xf32, #tpu.memory_space<vmem>>, vector<1x40x160xf32>
    %500 = vector.shape_cast %499 : vector<1x40x160xf32> to vector<40x160xf32>
    %cst_198 = arith.constant dense<0.000000e+00> : vector<2x160xf32>
    %501 = tpu.matmul %448, %500, %cst_198 {dimension_numbers = #tpu.dot_dimension_numbers<[1], [0], [0], [1], [0, 0, 1, 1], [], []>} : vector<2x40xf32>, vector<40x160xf32>, vector<2x160xf32> -> vector<2x160xf32>
    %502 = arith.addf %498, %501 : vector<2x160xf32>
    %503 = vector.broadcast %5 : vector<1x160xf32> to vector<2x160xf32>
    %504 = arith.addf %502, %503 : vector<2x160xf32>
    %505 = vector.extract_strided_slice %504 {offsets = [0, 0], sizes = [2, 120], strides = [1, 1]} : vector<2x160xf32> to vector<2x120xf32>
    %506 = arith.negf %505 : vector<2x120xf32>
    %507 = math.exp %506 : vector<2x120xf32>
    %cst_199 = arith.constant 1.000000e+00 : f32
    %508 = vector.broadcast %cst_199 : f32 to vector<2x120xf32>
    %509 = arith.addf %508, %507 : vector<2x120xf32>
    %510 = arith.divf %508, %509 : vector<2x120xf32>
    %511 = vector.extract_strided_slice %504 {offsets = [0, 120], sizes = [2, 40], strides = [1, 1]} : vector<2x160xf32> to vector<2x40xf32>
    %512 = math.tanh %511 : vector<2x40xf32>
    %513 = vector.extract_strided_slice %510 {offsets = [0, 0], sizes = [2, 40], strides = [1, 1]} : vector<2x120xf32> to vector<2x40xf32>
    %514 = vector.extract_strided_slice %510 {offsets = [0, 40], sizes = [2, 40], strides = [1, 1]} : vector<2x120xf32> to vector<2x40xf32>
    %515 = vector.extract_strided_slice %510 {offsets = [0, 80], sizes = [2, 40], strides = [1, 1]} : vector<2x120xf32> to vector<2x40xf32>
    %516 = arith.mulf %514, %446 : vector<2x40xf32>
    %517 = arith.mulf %513, %512 : vector<2x40xf32>
    %518 = arith.addf %516, %517 : vector<2x40xf32>
    %519 = math.tanh %518 : vector<2x40xf32>
    %520 = arith.mulf %515, %519 : vector<2x40xf32>
    %c12_200 = arith.constant 12 : index
    %c0_201 = arith.constant 0 : index
    %521 = vector.load %arg9[%c12_200, %c0_201] : memref<16x40xf32, #tpu.memory_space<vmem>>, vector<2x40xf32>
    tpu.vector_store %arg9[%c12_200, %c0_201], %520 {strides = array<i32>} : memref<16x40xf32, #tpu.memory_space<vmem>>, vector<2x40xf32>,
    %c14 = arith.constant 14 : index
    %c0_202 = arith.constant 0 : index
    %522 = vector.load %arg8[%c14, %c0_202] : memref<16x160xf32, #tpu.memory_space<vmem>>, vector<2x160xf32>
    %c0_203 = arith.constant 0 : index
    %c0_204 = arith.constant 0 : index
    %c0_205 = arith.constant 0 : index
    %523 = vector.load %arg3[%c0_203, %c0_204, %c0_205] : memref<3x40x160xf32, #tpu.memory_space<vmem>>, vector<1x40x160xf32>
    %524 = vector.shape_cast %523 : vector<1x40x160xf32> to vector<40x160xf32>
    %cst_206 = arith.constant dense<0.000000e+00> : vector<2x160xf32>
    %525 = tpu.matmul %470, %524, %cst_206 {dimension_numbers = #tpu.dot_dimension_numbers<[1], [0], [0], [1], [0, 0, 1, 1], [], []>} : vector<2x40xf32>, vector<40x160xf32>, vector<2x160xf32> -> vector<2x160xf32>
    %526 = arith.addf %522, %525 : vector<2x160xf32>
    %527 = vector.extract_strided_slice %526 {offsets = [0, 0], sizes = [2, 120], strides = [1, 1]} : vector<2x160xf32> to vector<2x120xf32>
    %528 = arith.negf %527 : vector<2x120xf32>
    %529 = math.exp %528 : vector<2x120xf32>
    %cst_207 = arith.constant 1.000000e+00 : f32
    %530 = vector.broadcast %cst_207 : f32 to vector<2x120xf32>
    %531 = arith.addf %530, %529 : vector<2x120xf32>
    %532 = arith.divf %530, %531 : vector<2x120xf32>
    %533 = vector.extract_strided_slice %526 {offsets = [0, 120], sizes = [2, 40], strides = [1, 1]} : vector<2x160xf32> to vector<2x40xf32>
    %534 = math.tanh %533 : vector<2x40xf32>
    %535 = vector.extract_strided_slice %532 {offsets = [0, 0], sizes = [2, 40], strides = [1, 1]} : vector<2x120xf32> to vector<2x40xf32>
    %536 = vector.extract_strided_slice %532 {offsets = [0, 40], sizes = [2, 40], strides = [1, 1]} : vector<2x120xf32> to vector<2x40xf32>
    %537 = vector.extract_strided_slice %532 {offsets = [0, 80], sizes = [2, 40], strides = [1, 1]} : vector<2x120xf32> to vector<2x40xf32>
    %538 = arith.mulf %536, %468 : vector<2x40xf32>
    %539 = arith.mulf %535, %534 : vector<2x40xf32>
    %540 = arith.addf %538, %539 : vector<2x40xf32>
    %541 = math.tanh %540 : vector<2x40xf32>
    %542 = arith.mulf %537, %541 : vector<2x40xf32>
    %c0_208 = arith.constant 0 : index
    %c0_209 = arith.constant 0 : index
    %c0_210 = arith.constant 0 : index
    %543 = vector.load %arg2[%c0_208, %c0_209, %c0_210] : memref<2x40x160xf32, #tpu.memory_space<vmem>>, vector<1x40x160xf32>
    %544 = vector.shape_cast %543 : vector<1x40x160xf32> to vector<40x160xf32>
    %cst_211 = arith.constant dense<0.000000e+00> : vector<2x160xf32>
    %545 = tpu.matmul %542, %544, %cst_211 {dimension_numbers = #tpu.dot_dimension_numbers<[1], [0], [0], [1], [0, 0, 1, 1], [], []>} : vector<2x40xf32>, vector<40x160xf32>, vector<2x160xf32> -> vector<2x160xf32>
    %c1_212 = arith.constant 1 : index
    %c0_213 = arith.constant 0 : index
    %c0_214 = arith.constant 0 : index
    %546 = vector.load %arg3[%c1_212, %c0_213, %c0_214] : memref<3x40x160xf32, #tpu.memory_space<vmem>>, vector<1x40x160xf32>
    %547 = vector.shape_cast %546 : vector<1x40x160xf32> to vector<40x160xf32>
    %cst_215 = arith.constant dense<0.000000e+00> : vector<2x160xf32>
    %548 = tpu.matmul %495, %547, %cst_215 {dimension_numbers = #tpu.dot_dimension_numbers<[1], [0], [0], [1], [0, 0, 1, 1], [], []>} : vector<2x40xf32>, vector<40x160xf32>, vector<2x160xf32> -> vector<2x160xf32>
    %549 = arith.addf %545, %548 : vector<2x160xf32>
    %550 = vector.broadcast %3 : vector<1x160xf32> to vector<2x160xf32>
    %551 = arith.addf %549, %550 : vector<2x160xf32>
    %552 = vector.extract_strided_slice %551 {offsets = [0, 0], sizes = [2, 120], strides = [1, 1]} : vector<2x160xf32> to vector<2x120xf32>
    %553 = arith.negf %552 : vector<2x120xf32>
    %554 = math.exp %553 : vector<2x120xf32>
    %cst_216 = arith.constant 1.000000e+00 : f32
    %555 = vector.broadcast %cst_216 : f32 to vector<2x120xf32>
    %556 = arith.addf %555, %554 : vector<2x120xf32>
    %557 = arith.divf %555, %556 : vector<2x120xf32>
    %558 = vector.extract_strided_slice %551 {offsets = [0, 120], sizes = [2, 40], strides = [1, 1]} : vector<2x160xf32> to vector<2x40xf32>
    %559 = math.tanh %558 : vector<2x40xf32>
    %560 = vector.extract_strided_slice %557 {offsets = [0, 0], sizes = [2, 40], strides = [1, 1]} : vector<2x120xf32> to vector<2x40xf32>
    %561 = vector.extract_strided_slice %557 {offsets = [0, 40], sizes = [2, 40], strides = [1, 1]} : vector<2x120xf32> to vector<2x40xf32>
    %562 = vector.extract_strided_slice %557 {offsets = [0, 80], sizes = [2, 40], strides = [1, 1]} : vector<2x120xf32> to vector<2x40xf32>
    %563 = arith.mulf %561, %493 : vector<2x40xf32>
    %564 = arith.mulf %560, %559 : vector<2x40xf32>
    %565 = arith.addf %563, %564 : vector<2x40xf32>
    %566 = math.tanh %565 : vector<2x40xf32>
    %567 = arith.mulf %562, %566 : vector<2x40xf32>
    %c1_217 = arith.constant 1 : index
    %c0_218 = arith.constant 0 : index
    %c0_219 = arith.constant 0 : index
    %568 = vector.load %arg2[%c1_217, %c0_218, %c0_219] : memref<2x40x160xf32, #tpu.memory_space<vmem>>, vector<1x40x160xf32>
    %569 = vector.shape_cast %568 : vector<1x40x160xf32> to vector<40x160xf32>
    %cst_220 = arith.constant dense<0.000000e+00> : vector<2x160xf32>
    %570 = tpu.matmul %567, %569, %cst_220 {dimension_numbers = #tpu.dot_dimension_numbers<[1], [0], [0], [1], [0, 0, 1, 1], [], []>} : vector<2x40xf32>, vector<40x160xf32>, vector<2x160xf32> -> vector<2x160xf32>
    %c2_221 = arith.constant 2 : index
    %c0_222 = arith.constant 0 : index
    %c0_223 = arith.constant 0 : index
    %571 = vector.load %arg3[%c2_221, %c0_222, %c0_223] : memref<3x40x160xf32, #tpu.memory_space<vmem>>, vector<1x40x160xf32>
    %572 = vector.shape_cast %571 : vector<1x40x160xf32> to vector<40x160xf32>
    %cst_224 = arith.constant dense<0.000000e+00> : vector<2x160xf32>
    %573 = tpu.matmul %520, %572, %cst_224 {dimension_numbers = #tpu.dot_dimension_numbers<[1], [0], [0], [1], [0, 0, 1, 1], [], []>} : vector<2x40xf32>, vector<40x160xf32>, vector<2x160xf32> -> vector<2x160xf32>
    %574 = arith.addf %570, %573 : vector<2x160xf32>
    %575 = vector.broadcast %5 : vector<1x160xf32> to vector<2x160xf32>
    %576 = arith.addf %574, %575 : vector<2x160xf32>
    %577 = vector.extract_strided_slice %576 {offsets = [0, 0], sizes = [2, 120], strides = [1, 1]} : vector<2x160xf32> to vector<2x120xf32>
    %578 = arith.negf %577 : vector<2x120xf32>
    %579 = math.exp %578 : vector<2x120xf32>
    %cst_225 = arith.constant 1.000000e+00 : f32
    %580 = vector.broadcast %cst_225 : f32 to vector<2x120xf32>
    %581 = arith.addf %580, %579 : vector<2x120xf32>
    %582 = arith.divf %580, %581 : vector<2x120xf32>
    %583 = vector.extract_strided_slice %576 {offsets = [0, 120], sizes = [2, 40], strides = [1, 1]} : vector<2x160xf32> to vector<2x40xf32>
    %584 = math.tanh %583 : vector<2x40xf32>
    %585 = vector.extract_strided_slice %582 {offsets = [0, 0], sizes = [2, 40], strides = [1, 1]} : vector<2x120xf32> to vector<2x40xf32>
    %586 = vector.extract_strided_slice %582 {offsets = [0, 40], sizes = [2, 40], strides = [1, 1]} : vector<2x120xf32> to vector<2x40xf32>
    %587 = vector.extract_strided_slice %582 {offsets = [0, 80], sizes = [2, 40], strides = [1, 1]} : vector<2x120xf32> to vector<2x40xf32>
    %588 = arith.mulf %586, %518 : vector<2x40xf32>
    %589 = arith.mulf %585, %584 : vector<2x40xf32>
    %590 = arith.addf %588, %589 : vector<2x40xf32>
    %591 = math.tanh %590 : vector<2x40xf32>
    %592 = arith.mulf %587, %591 : vector<2x40xf32>
    %c14_226 = arith.constant 14 : index
    %c0_227 = arith.constant 0 : index
    %593 = vector.load %arg9[%c14_226, %c0_227] : memref<16x40xf32, #tpu.memory_space<vmem>>, vector<2x40xf32>
    tpu.vector_store %arg9[%c14_226, %c0_227], %592 {strides = array<i32>} : memref<16x40xf32, #tpu.memory_space<vmem>>, vector<2x40xf32>,
    %c0_228 = arith.constant 0 : index
    %c0_229 = arith.constant 0 : index
    %594 = vector.load %arg9[%c0_228, %c0_229] : memref<16x40xf32, #tpu.memory_space<vmem>>, vector<16x40xf32>
    %c0_230 = arith.constant 0 : index
    %c0_231 = arith.constant 0 : index
    %595 = vector.load %arg5[%c0_230, %c0_231] : memref<40x8xf32, #tpu.memory_space<vmem>>, vector<40x8xf32>
    %cst_232 = arith.constant dense<0.000000e+00> : vector<16x8xf32>
    %596 = tpu.matmul %594, %595, %cst_232 {dimension_numbers = #tpu.dot_dimension_numbers<[1], [0], [0], [1], [0, 0, 1, 1], [], []>} : vector<16x40xf32>, vector<40x8xf32>, vector<16x8xf32> -> vector<16x8xf32>
    %c0_233 = arith.constant 0 : index
    %c0_234 = arith.constant 0 : index
    %597 = vector.load %arg6[%c0_233, %c0_234] : memref<1x8xf32, #tpu.memory_space<vmem>>, vector<1x8xf32>
    %598 = vector.broadcast %597 : vector<1x8xf32> to vector<16x8xf32>
    %599 = arith.addf %596, %598 : vector<16x8xf32>
    %c0_235 = arith.constant 0 : index
    %c0_236 = arith.constant 0 : index
    %600 = vector.load %arg7[%c0_235, %c0_236] : memref<16x8xf32, #tpu.memory_space<vmem>>, vector<16x8xf32>
    tpu.vector_store %arg7[%c0_235, %c0_236], %599 {strides = array<i32>} : memref<16x8xf32, #tpu.memory_space<vmem>>, vector<16x8xf32>,
    return
  }
}

</mosaic_0001>

<bundles_post_ra>
// kernel: tpu_custom_call.1
= control target key start
LH: loop header
LB: loop body
LE: loop exit
PB: predicated region body
PF: predicated region fallthrough
CT: control target
= control target key end

     0   :  { %12 = vsyncpa [#allocation5], 0  ;;  %s6141_s0 = inlined_call_operand.vmem [shape: f32[16,16], index: 0, kind: input, shape index: {}]   ;;  %s6142_s1 = inlined_call_operand.vmem [shape: f32[16,160], index: 1, kind: input, shape index: {}]   ;;  %s6143_s2 = inlined_call_operand.hbm [shape: f32[2,40,160], index: 2, kind: input, shape index: {}]   ;;  %s6144_s3 = inlined_call_operand.hbm [shape: f32[3,40,160], index: 3, kind: input, shape index: {}]   ;;  %s6145_s4 = inlined_call_operand.vmem [shape: f32[3,1,160], index: 4, kind: input, shape index: {}]   ;;  %s6146_s5 = inlined_call_operand.vmem [shape: f32[40,8], index: 5, kind: input, shape index: {}]   ;;  %s6147_s6 = inlined_call_operand.vmem [shape: f32[1,8], index: 6, kind: input, shape index: {}]   ;;  %s6148_s7 = inlined_call_operand.vmem [shape: f32[16,8], index: 7, kind: output, shape index: {}]  }
   0x1   :  { %13 = vsyncpa [#allocation7], 0  ;;  %s5244_s24 = smov [#allocation4]   ;;  %s5196_s28 = scalar_lea.hbm %s6143_s2, 2560 }
   0x2   :  { %s23_s25 = sshll.u32 %s5244_s24, 4  ;;  %p5197_p0 = scmp.ne.s32.totalorder %s6143_s2, %s5196_s28  ;;  %s24_s25 = int_to_ptr.vmem [resolvable:$true] %s23_s25 }
   0x3   :  { %p5200_p1 = scmp.lt.u32.totalorder %s5196_s28, %s6143_s2 }
   0x5   :  { %p5202_p2 = pnand %p5200_p1, %p5197_p0 }
   0x7   :  { %5205 = shalt.err (!%p5202_p2)
}
   0x8   :  { %s5206_s10 = scalar_lea.vmem %s24_s25, 2560  ;;  %p5211_p4 = scmp.lt.s32.totalorder %s24_s25, %s24_s25 }
   0x9   :  { %p5207_p3 = scmp.ne.s32.totalorder %s24_s25, %s5206_s10  ;;  %p5212_p5 = scmp.lt.s32.totalorder %s5206_s10, %s5206_s10 }
   0xb   :  { %p5213_p6 = por %p5212_p5, %p5211_p4 }
   0xd   :  { %p5214_p7 = pnand %p5213_p6, %p5207_p3 }
   0xf   :  { %5217 = shalt.err (!%p5214_p7)
}
  0x10   :  { %s5245_s11 = smov 256   ;;  %s5246_s12 = smov 16  }
  0x11   :  { %29 = dma.hbm_to_vmem [thread:$0]  %s6143_s2, 2560, %s24_s25, [#allocation5], %s5245_s11, %s5245_s11, %s5246_s12  }
  0x12   :  { %s5247_s15 = smov [#allocation6]   ;;  %s5218_s19 = scalar_lea.hbm %s6144_s3, 3840 }
  0x13   :  { %s35_s16 = sshll.u32 %s5247_s15, 4  ;;  %p5219_p8 = scmp.ne.s32.totalorder %s6144_s3, %s5218_s19  ;;  %s36_s16 = int_to_ptr.vmem [resolvable:$true] %s35_s16 }
  0x14   :  { %p5222_p9 = scmp.lt.u32.totalorder %s5218_s19, %s6144_s3 }
  0x16   :  { %p5224_p10 = pnand %p5222_p9, %p5219_p8 }
  0x18   :  { %5227 = shalt.err (!%p5224_p10)
}
  0x19   :  { %s5228_s24 = scalar_lea.vmem %s36_s16, 3840  ;;  %p5233_p12 = scmp.lt.s32.totalorder %s36_s16, %s36_s16 }
  0x1a   :  { %p5229_p11 = scmp.ne.s32.totalorder %s36_s16, %s5228_s24  ;;  %p5234_p13 = scmp.lt.s32.totalorder %s5228_s24, %s5228_s24 }
  0x1c   :  { %p5235_p0 = por %p5234_p13, %p5233_p12 }
  0x1e   :  { %p5236_p1 = pnand %p5235_p0, %p5229_p11 }
  0x20   :  { %5239 = shalt.err (!%p5236_p1)
}
  0x21   :  { %41 = dma.hbm_to_vmem [thread:$0]  %s6144_s3, 3840, %s36_s16, [#allocation7], %s5245_s11, %s5245_s11, %s5246_s12  }
  0x22   :  { %5240 = dma.done.wait [#allocation5], 2560  }
  0x23   :  { %5241 = vsyncadd [#allocation5], 4294964736 }
  0x24   :  { %5242 = dma.done.wait [#allocation7], 3840  }
  0x25   :  { %5243 = vsyncadd [#allocation7], 4294963456  ;;  %v5248_v0 = vmov 0.0   ;;  %v62_v1 = vld [vmem:[%s6142_s1 + $0x8] sm:$0xff]  ;;  %v64_v2 = vld [vmem:[%s6142_s1 + $0x18] sm:$0xff]  ;;  %vm76_vm0 = vcmask 130048   ;;  %v66_v22 = vlaneseq }
  0x26   :  { %147 = vmatprep.mubr.f32.mxu0 %v5248_v0  ;;  %245 = vmatprep.mubr.f32.mxu1 %v5248_v0  ;;  %v61_v3 = vld [vmem:[%s6142_s1] sm:$0xff]  ;;  %v4584_v4 = vpack.c.bf16 %v64_v2, %v62_v1  ;;  %v63_v5 = vld [vmem:[%s6142_s1 + $0x10] sm:$0xff]  ;;  %v168_v6 = vld [vmem:[#allocation6 + $0x8] sm:$0xff]  ;;  %vm161_vm1 = vcmask 261120   ;;  %s5249_s13 = smov 8   ;;  %vm269_vm2 = vcmask 64512  }
  0x27   :  { %v170_v7 = vld [vmem:[#allocation6 + $0x18] sm:$0xff]  ;;  %v4586_v8 = vpack.c.bf16 %v63_v5, %v61_v3  ;;  %v167_v10 = vld [vmem:[#allocation6] sm:$0xff]  ;;  %v169_v11 = vld [vmem:[#allocation6 + $0x10] sm:$0xff]  ;;  %v67_v23 = vshrl.u32 %v66_v22, 7  ;;  %s5250_s14 = smov 40   ;;  %vm177_vm3 = vcmask 326656  }
  0x28   :  { %v5330_v9 = vpack.c.bf16 %v170_v7, %v168_v6  ;;  %4585 = vmatprep.subr.bf16.mxu0 %v4584_v4  ;;  %v5332_v12 = vpack.c.bf16 %v169_v11, %v167_v10  ;;  %v172_v13 = vld [vmem:[#allocation6 + $0x28] sm:$0xff]  ;;  %v174_v14 = vld [vmem:[#allocation6 + $0x38] sm:$0xff]  ;;  %v171_v15 = vld [vmem:[#allocation6 + $0x20] sm:$0xff]  ;;  %vm709_vm4 = vcmask 320512  }
  0x29   :  { %4587 = vmatpush1.bf16.msra.mxu0 %v4586_v8  ;;  %v59_v16 = vld [vmem:[%s6141_s0] sm:$0xff]  ;;  %v5338_v17 = vpack.c.bf16 %v174_v14, %v172_v13  ;;  %v5345_v20 = vld [vmem:[#allocation6 + $0x48] sm:$0xff]  ;;  %v5350_v21 = vld [vmem:[#allocation6 + $0x40] sm:$0xff]  ;;  %v5355_v24 = vsub.s32 0, %v67_v23  ;;  %v5360_v26 = vsub.s32 1, %v67_v23 }
  0x2a   :  { %4589 = vmatprep.subr.bf16.mxu1 %v5330_v9  ;;  %v173_v18 = vld [vmem:[#allocation6 + $0x30] sm:$0xff]  ;;  %v296_v52 = vld [vmem:[#allocation6 + $0x58] sm:$0xff]  ;;  %v298_v53 = vld [vmem:[#allocation6 + $0x68] sm:$0xff] }
  0x2b   :  { %4591 = vmatpush1.bf16.msra.mxu1 %v5332_v12  ;;  %v5341_v19 = vpack.c.bf16 %v173_v18, %v171_v15  ;;  %v54_v25 = vld [vmem:[%s6145_s4] sm:$0x3]  ;;  %v5378_v55 = vpack.c.bf16 %v298_v53, %v296_v52  ;;  %v297_v56 = vld [vmem:[#allocation6 + $0x60] sm:$0xff]  ;;  %v300_v57 = vld [vmem:[#allocation6 + $0x78] sm:$0xff] }
  0x2c   :  { %4593 = vmatprep.subr.bf16.mxu1 %v5338_v17  ;;  %4498 = vmatmul.mubr.msk.f32.vlgmr.msra.gmra.mrb[0].mxu0 %vm76_vm0, %v59_v16  ;;  %v5363_v27 = vrot.slane %v54_v25, %v5355_v24  ;;  %v5366_v28 = vrot.slane %v54_v25, %v5360_v26  ;;  %v295_v54 = vld [vmem:[#allocation6 + $0x50] sm:$0xff]  ;;  %v302_v58 = vld [vmem:[#allocation6 + $0x88] sm:$0xff]  ;;  %v301_v62 = vld [vmem:[#allocation6 + $0x80] sm:$0xff] }
  0x2d   :  { %153 = vmatprep.mubr.f32.mxu0 %v5248_v0  ;;  %v5380_v59 = vpack.c.bf16 %v297_v56, %v295_v54  ;;  %v5382_v60 = vpack.c.bf16 %v302_v58, %v300_v57  ;;  %v299_v61 = vld [vmem:[#allocation6 + $0x70] sm:$0xff]  ;;  %v60_v63 = vld [vmem:[%s6141_s0 + $0x8] sm:$0xff]  ;;  %4597 = vmatprep.subr.bf16.mxu0 %v5378_v55  ;;  %v285_v3 = vld [vmem:[#allocation4 + $0x8] sm:$0xff]  ;;  %s5251_s0 = smov 48  }
  0x2e   :  { %v5390_v1 = vpack.c.bf16 %v301_v62, %v299_v61  ;;  %v5394_v2 = vld [vmem:[#allocation6 + $0x98] sm:$0xff]  ;;  %v284_v5 = vld [vmem:[#allocation4] sm:$0xff]  ;;  %v286_v6 = vld [vmem:[#allocation4 + $0x10] sm:$0xff] }
  0x2f   :  { %4595 = vmatpush1.bf16.msra.mxu1 %v5341_v19  ;;  %4599 = vmatpush1.bf16.msra.mxu0 %v5380_v59  ;;  %v287_v4 = vld [vmem:[#allocation4 + $0x18] sm:$0xff]  ;;  %v289_v7 = vld [vmem:[#allocation4 + $0x28] sm:$0xff]  ;;  %v5398_v10 = vld [vmem:[#allocation6 + $0x90] sm:$0xff]  ;;  %v5402_v14 = vpack.c.bf16 %v286_v6, %v284_v5 }
  0x30   :  { %189 = vmatprep.subr.mxu1 %v5345_v20  ;;  %4499 = vmatmul.mubr.msk.f32.gmra.mrb[2].mxu0 %vm76_vm0, %v60_v63  ;;  %v291_v8 = vld [vmem:[#allocation4 + $0x38] sm:$0xff]  ;;  %v5400_v11 = vpack.c.bf16 %v287_v4, %v285_v3  ;;  %v288_v16 = vld [vmem:[#allocation4 + $0x20] sm:$0xff]  ;;  %v290_v18 = vld [vmem:[#allocation4 + $0x30] sm:$0xff] }
  0x31   :  { %369 = vmatprep.mubr.f32.mxu0 %v5248_v0  ;;  %4601 = vmatprep.subr.bf16.mxu0 %v5382_v60  ;;  %v5405_v15 = vpack.c.bf16 %v291_v8, %v289_v7  ;;  %v5411_v22 = vpack.c.bf16 %v290_v18, %v288_v16  ;;  %v5415_v23 = vld [vmem:[#allocation4 + $0x48] sm:$0xff]  ;;  %v5419_v25 = vld [vmem:[#allocation4 + $0x40] sm:$0xff] }
  0x33   :  { %190 = vmatpush1.msra.mxu1 %v5350_v21  ;;  %4603 = vmatpush1.bf16.msra.mxu0 %v5390_v1 }
  0x34   :  { %246 = vmatmul.mubr.f32.vlgmr.msra.gmra.mrb[0].mxu1 %v5248_v0  ;;  %313 = vmatprep.subr.mxu0 %v5394_v2 }
  0x35   :  { %580 = vmatprep.mubr.f32.mxu1 %v5248_v0 }
  0x37   :  { %314 = vmatpush1.msra.mxu0 %v5398_v10 }
  0x38   :  { %4605 = vmatprep.subr.bf16.mxu0 %v5400_v11  ;;  %370 = vmatmul.mubr.f32.vlgmr.msra.gmra.mrb[4].mxu0 %v5248_v0 }
  0x39   :  { %4607 = vmatpush1.bf16.msra.mxu0 %v5402_v14  ;;  %445 = vmatprep.mubr.f32.mxu0 %v5248_v0 }
  0x3a   :  { %4609 = vmatprep.subr.bf16.mxu0 %v5405_v15 }
  0x3d   :  { %4611 = vmatpush1.bf16.msra.mxu0 %v5411_v22 }
  0x3e   :  { %389 = vmatprep.subr.mxu0 %v5415_v23 }
  0x41   :  { %390 = vmatpush1.msra.mxu0 %v5419_v25 }
  0x42   :  { %4629 = vmatprep.subr.bf16.mxu0 %v5330_v9 }
  0xff   :  { %v149_v29 = vpop.f32.mrb[0].mxu0 }
 0x100   :  { %v150_v30 = vadd.f32 %v149_v29, %v5363_v27  ;;  %v151_v31 = vpop.f32.mrb[1].mxu0 }
 0x101   :  { %v152_v32 = vadd.f32 %v151_v31, %v5366_v28 }
 0x102   :  { %160 = vst [vmem:[#allocation2] sm:$0xff] %v150_v30 }
 0x103   :  { %162 = vst.msk [vmem:[#allocation2 + $0x8] sm:$0xff] %vm161_vm1, %v152_v32  ;;  %v155_v31 = vpop.f32.mrb[2].mxu0 }
 0x104   :  { %v156_v32 = vadd.f32 %v155_v31, %v5363_v27  ;;  %v4496_v27 = vld [vmem:[%s6145_s4 + $0x2] sm:$0x3] }
 0x106   :  { %163 = vst [vmem:[#allocation2 + $0x10] sm:$0xff] %v156_v32 }
 0x107   :  { %v247_v33 = vpop.f32.mrb[0].mxu1 }
 0x108   :  { %v249_v34 = vpop.f32.mrb[1].mxu1 }
 0x109   :  { %v165_v35 = vld [vmem:[#allocation2] sm:$0x3] }
 0x10a   :  { %v252_v36 = vadd.f32 %v247_v33, %v165_v35  ;;  %v166_v37 = vld [vmem:[#allocation2 + $0x8] sm:$0x3]  ;;  %v157_v33 = vpop.f32.mrb[3].mxu0 }
 0x10b   :  { %v253_v38 = vadd.f32 %v249_v34, %v166_v37  ;;  %v158_v34 = vadd.f32 %v157_v33, %v5366_v28  ;;  %v5440_v28 = vrot.slane %v4496_v27, %v5355_v24 }
 0x10c   :  { %4956 = vtanh.f32 %v252_v36  ;;  %v4500_v41 = vmul.f32 -1.442695, %v252_v36  ;;  %v5443_v36 = vrot.slane %v4496_v27, %v5360_v26 }
 0x10d   :  { %4958 = vtanh.f32 %v253_v38  ;;  %164 = vst.msk [vmem:[#allocation2 + $0x18] sm:$0xff] %vm161_vm1, %v158_v34 }
 0x10e   :  { %4960 = vpow2.f32 %v4500_v41 }
 0x116   :  { %v4957_v39 = vpop.eup %4956 }
 0x117   :  { %265 = vrot.lane.b32.xlu0 %v4957_v39, %s5249_s13  ;;  %v4959_v40 = vpop.eup %4958 }
 0x118   :  { %v4961_v42 = vpop.eup %4960 }
 0x119   :  { %v257_v43 = vadd.f32 1.0, %v4961_v42 }
 0x11b   :  { %267 = vrot.lane.b32.xlu0 %v4959_v40, %s5249_s13  ;;  %4962 = vrcp.f32 %v257_v43 }
 0x125   :  { %v4963_v46 = vpop.eup %4962 }
 0x126   :  { %v262_v49 = vmul.f32 0.0, %v4963_v46 }
 0x189   :  { %v266_v44 = vpop.permute.xlu0 %265 }
 0x18d   :  { %v268_v45 = vpop.permute.xlu0 %267 }
 0x18e   :  { %v270_v47 = vsel %vm269_vm2, %v266_v44, %v268_v45  ;;  %v711_v44 = vld [vmem:[#allocation2] sm:$0xc] }
 0x18f   :  { %v272_v48 = vmul.f32 %v4963_v46, %v270_v47 }
 0x191   :  { %274 = vrot.lane.b32.xlu1 %v272_v48, %s5250_s14  ;;  %v712_v48 = vld [vmem:[#allocation2 + $0x8] sm:$0xc] }
 0x203   :  { %v275_v50 = vpop.permute.xlu1 %274 }
 0x204   :  { %v5375_v51 = vadd.f32 %v275_v50, %v262_v49 }
 0x206   :  { %4964 = vtanh.f32 %v5375_v51  ;;  %v811_v32 = vrot.slane %v5375_v51, 6 }
 0x210   :  { %v4965_v13 = vpop.eup %4964 }
 0x211   :  { %280 = vrot.lane.b32.xlu1 %v4965_v13, %s5250_s14 }
 0x283   :  { %v281_v29 = vpop.permute.xlu1 %280 }
 0x284   :  { %v283_v30 = vmul.f32 %v4963_v46, %v281_v29 }
 0x286   :  { %377 = vrot.lane.b32.xlu0 %v283_v30, %s5251_s0 }
 0x2f8   :  { %v378_v35 = vpop.permute.xlu0 %377 }
 0x2f9   :  { %4501 = vmatmul.mubr.msk.f32.vlgmr.msra.gmra.mrb[4].mxu0 %vm177_vm3, %v378_v35 }
 0x2fa   :  { %4631 = vmatpush1.bf16.msra.mxu0 %v5332_v12  ;;  %787 = vmatprep.mubr.f32.mxu0 %v5248_v0 }
 0x2fb   :  { %4633 = vmatprep.subr.bf16.mxu0 %v5338_v17 }
 0x2fe   :  { %4635 = vmatpush1.bf16.msra.mxu0 %v5341_v19 }
 0x2ff   :  { %731 = vmatprep.subr.mxu0 %v5345_v20 }
 0x302   :  { %732 = vmatpush1.msra.mxu0 %v5350_v21 }
 0x303   :  { %4505 = vmatmul.mubr.msk.f32.vlgmr.msra.gmra.mrb[6].mxu0 %vm177_vm3, %v378_v35 }
 0x304   :  { %1119 = vmatprep.mubr.f32.mxu0 %v5248_v0 }
 0x3cc   :  { %v447_v37 = vpop.f32.mrb[4].mxu0 }
 0x3cd   :  { %v463_v38 = vadd.f32 %v5440_v28, %v447_v37  ;;  %v449_v39 = vpop.f32.mrb[5].mxu0  ;;  %v507_v37 = vld [vmem:[#allocation6 + $0xa8] sm:$0xff] }
 0x3ce   :  { %v464_v40 = vadd.f32 %v5443_v36, %v449_v39  ;;  %v506_v39 = vld [vmem:[#allocation6 + $0xa0] sm:$0xff] }
 0x3cf   :  { %4966 = vtanh.f32 %v463_v38  ;;  %v4502_v54 = vmul.f32 -1.442695, %v463_v38  ;;  %v509_v38 = vld [vmem:[#allocation6 + $0xb8] sm:$0xff] }
 0x3d0   :  { %4968 = vtanh.f32 %v464_v40  ;;  %v5471_v40 = vpack.c.bf16 %v509_v38, %v507_v37 }
 0x3d2   :  { %4613 = vmatprep.subr.bf16.mxu1 %v5471_v40  ;;  %4653 = vmatprep.subr.bf16.mxu0 %v5471_v40 }
 0x3d6   :  { %v789_v41 = vpop.f32.mrb[6].mxu0 }
 0x3d7   :  { %v796_v42 = vrot.slane %v789_v41, 6  ;;  %v791_v43 = vpop.f32.mrb[7].mxu0  ;;  %v508_v41 = vld [vmem:[#allocation6 + $0xb0] sm:$0xff] }
 0x3d8   :  { %v797_v45 = vrot.slane %v791_v43, 6  ;;  %v513_v43 = vld [vmem:[#allocation6 + $0xd8] sm:$0xff] }
 0x3d9   :  { %v4967_v46 = vpop.eup %4966  ;;  %v800_v47 = vadd.f32 %v796_v42, %v711_v44  ;;  %v511_v42 = vld [vmem:[#allocation6 + $0xc8] sm:$0xff]  ;;  %v5473_v44 = vpack.c.bf16 %v508_v41, %v506_v39 }
 0x3da   :  { %v4969_v49 = vpop.eup %4968  ;;  %v801_v50 = vadd.f32 %v797_v45, %v712_v48  ;;  %476 = vrot.lane.b32.xlu1 %v4967_v46, %s5249_s13  ;;  %v5475_v51 = vpack.c.bf16 %v513_v43, %v511_v42  ;;  %v510_v45 = vld [vmem:[#allocation6 + $0xc0] sm:$0xff]  ;;  %v512_v46 = vld [vmem:[#allocation6 + $0xd0] sm:$0xff]  ;;  %v5485_v48 = vld [vmem:[#allocation6 + $0xe8] sm:$0xff] }
 0x3db   :  { %4970 = vtanh.f32 %v800_v47  ;;  %478 = vrot.lane.b32.xlu0 %v4969_v49, %s5249_s13  ;;  %v4506_v56 = vmul.f32 -1.442695, %v800_v47  ;;  %4615 = vmatpush1.bf16.msra.mxu1 %v5473_v44  ;;  %v5480_v47 = vpack.c.bf16 %v512_v46, %v510_v45  ;;  %v496_v49 = vld [vmem:[#allocation4 + $0x58] sm:$0xff] }
 0x3dc   :  { %4972 = vtanh.f32 %v801_v50  ;;  %4655 = vmatpush1.bf16.msra.mxu0 %v5473_v44  ;;  %4617 = vmatprep.subr.bf16.mxu1 %v5475_v51  ;;  %v498_v50 = vld [vmem:[#allocation4 + $0x68] sm:$0xff] }
 0x3dd   :  { %4974 = vpow2.f32 %v4502_v54  ;;  %4657 = vmatprep.subr.bf16.mxu0 %v5475_v51 }
 0x3de   :  { %4976 = vpow2.f32 %v4506_v56  ;;  %v500_v56 = vld [vmem:[#allocation4 + $0x78] sm:$0xff] }
 0x3df   :  { %4619 = vmatpush1.bf16.msra.mxu1 %v5480_v47 }
 0x3e0   :  { %4659 = vmatpush1.bf16.msra.mxu0 %v5480_v47  ;;  %524 = vmatprep.subr.mxu1 %v5485_v48 }
 0x3e1   :  { %1063 = vmatprep.subr.mxu0 %v5485_v48 }
 0x3e5   :  { %v4971_v52 = vpop.eup %4970 }
 0x3e6   :  { %v4973_v53 = vpop.eup %4972  ;;  %816 = vrot.lane.b32.xlu1 %v4971_v52, %s5249_s13  ;;  %v495_v52 = vld [vmem:[#allocation4 + $0x50] sm:$0xff] }
 0x3e7   :  { %818 = vrot.lane.b32.xlu0 %v4973_v53, %s5249_s13  ;;  %v4975_v57 = vpop.eup %4974  ;;  %v497_v53 = vld [vmem:[#allocation4 + $0x60] sm:$0xff] }
 0x3e8   :  { %v468_v58 = vadd.f32 1.0, %v4975_v57  ;;  %v4977_v61 = vpop.eup %4976  ;;  %v502_v57 = vld [vmem:[#allocation4 + $0x88] sm:$0xff] }
 0x3e9   :  { %v805_v62 = vadd.f32 1.0, %v4977_v61  ;;  %v4620_v61 = vpack.c.bf16 %v498_v50, %v496_v49 }
 0x3ea   :  { %4978 = vrcp.f32 %v468_v58  ;;  %v514_v58 = vld [vmem:[#allocation6 + $0xe0] sm:$0xff] }
 0x3eb   :  { %4980 = vrcp.f32 %v805_v62  ;;  %v5491_v62 = vpack.c.bf16 %v497_v53, %v495_v52  ;;  %525 = vmatpush1.msra.mxu1 %v514_v58  ;;  %1064 = vmatpush1.msra.mxu0 %v514_v58  ;;  %v1239_v52 = vld [vmem:[#allocation2 + $0x8] sm:$0x30] }
 0x3ec   :  { %4621 = vmatprep.subr.bf16.mxu1 %v4620_v61  ;;  %581 = vmatmul.mubr.f32.vlgmr.msra.gmra.mrb[2].mxu1 %v5248_v0 }
 0x3ed   :  { %4623 = vmatpush1.bf16.msra.mxu1 %v5491_v62  ;;  %656 = vmatprep.mubr.f32.mxu1 %v5248_v0 }
 0x3ee   :  { %4661 = vmatprep.subr.bf16.mxu0 %v4620_v61 }
 0x3f4   :  { %v5451_v4 = vpop.eup %4978 }
 0x3f5   :  { %v5456_v13 = vpop.eup %4980  ;;  %v473_v29 = vmul.f32 0.0, %v5451_v4 }
 0x3f6   :  { %v813_v33 = vmul.f32 %v5456_v13, %v811_v32 }
 0x44c   :  { %v477_v63 = vpop.permute.xlu1 %476 }
 0x44d   :  { %v479_v3 = vpop.permute.xlu0 %478 }
 0x44e   :  { %v480_v5 = vsel %vm269_vm2, %v477_v63, %v479_v3  ;;  %v5494_v63 = vpack.c.bf16 %v502_v57, %v500_v56  ;;  %v499_v3 = vld [vmem:[#allocation4 + $0x70] sm:$0xff] }
 0x44f   :  { %v482_v6 = vmul.f32 %v5451_v4, %v480_v5  ;;  %v501_v5 = vld [vmem:[#allocation4 + $0x80] sm:$0xff] }
 0x450   :  { %4625 = vmatprep.subr.bf16.mxu1 %v5494_v63 }
 0x451   :  { %484 = vrot.lane.b32.xlu1 %v482_v6, %s5250_s14  ;;  %v5498_v6 = vpack.c.bf16 %v501_v5, %v499_v3 }
 0x453   :  { %4627 = vmatpush1.bf16.msra.mxu1 %v5498_v6 }
 0x458   :  { %v817_v7 = vpop.permute.xlu1 %816 }
 0x459   :  { %v819_v8 = vpop.permute.xlu0 %818 }
 0x45a   :  { %v820_v16 = vsel %vm269_vm2, %v817_v7, %v819_v8  ;;  %v5502_v7 = vld [vmem:[#allocation4 + $0x98] sm:$0xff]  ;;  %v5506_v8 = vld [vmem:[#allocation4 + $0x90] sm:$0xff] }
 0x45b   :  { %v822_v18 = vmul.f32 %v5456_v13, %v820_v16  ;;  %600 = vmatprep.subr.mxu1 %v5502_v7 }
 0x45c   :  { %601 = vmatpush1.msra.mxu1 %v5506_v8 }
 0x45d   :  { %824 = vrot.lane.b32.xlu0 %v822_v18, %s5250_s14  ;;  %4637 = vmatprep.subr.bf16.mxu1 %v5378_v55 }
 0x4c3   :  { %v485_v30 = vpop.permute.xlu1 %484 }
 0x4c4   :  { %v5462_v31 = vadd.f32 %v485_v30, %v473_v29 }
 0x4c6   :  { %4982 = vtanh.f32 %v5462_v31 }
 0x4cf   :  { %v825_v34 = vpop.permute.xlu0 %824 }
 0x4d0   :  { %v4983_v35 = vpop.eup %4982  ;;  %v5467_v27 = vadd.f32 %v825_v34, %v813_v33 }
 0x4d1   :  { %490 = vrot.lane.b32.xlu1 %v4983_v35, %s5250_s14 }
 0x4d2   :  { %4984 = vtanh.f32 %v5467_v27 }
 0x4dc   :  { %v4985_v54 = vpop.eup %4984 }
 0x4dd   :  { %830 = vrot.lane.b32.xlu0 %v4985_v54, %s5250_s14 }
 0x543   :  { %v491_v16 = vpop.permute.xlu1 %490 }
 0x544   :  { %v493_v18 = vmul.f32 %v5451_v4, %v491_v16 }
 0x546   :  { %588 = vrot.lane.b32.xlu1 %v493_v18, %s5251_s0 }
 0x54f   :  { %v831_v29 = vpop.permute.xlu0 %830 }
 0x550   :  { %v833_v30 = vmul.f32 %v5456_v13, %v831_v29  ;;  %v4497_v13 = vld [vmem:[%s6145_s4 + $0x4] sm:$0x3] }
 0x551   :  { %v5548_v34 = vrot.slane %v4497_v13, %v5355_v24  ;;  %v5551_v35 = vrot.slane %v4497_v13, %v5360_v26 }
 0x552   :  { %v926_v32 = vrot.slane %v833_v30, 2 }
 0x554   :  { %927 = vrot.lane.b32.xlu0 %v926_v32, %s5251_s0 }
 0x5b8   :  { %v589_v33 = vpop.permute.xlu1 %588 }
 0x5b9   :  { %4503 = vmatmul.mubr.msk.f32.vlgmr.msra.gmra.mrb[2].mxu1 %vm177_vm3, %v589_v33 }
 0x5ba   :  { %4639 = vmatpush1.bf16.msra.mxu1 %v5380_v59  ;;  %918 = vmatprep.mubr.f32.mxu1 %v5248_v0 }
 0x5bb   :  { %4641 = vmatprep.subr.bf16.mxu1 %v5382_v60 }
 0x5be   :  { %4643 = vmatpush1.bf16.msra.mxu1 %v5390_v1 }
 0x5bf   :  { %862 = vmatprep.subr.mxu1 %v5394_v2 }
 0x5c2   :  { %863 = vmatpush1.msra.mxu1 %v5398_v10 }
 0x5c3   :  { %4507 = vmatmul.mubr.msk.f32.vlgmr.msra.gmra.mrb[4].mxu1 %vm177_vm3, %v589_v33  ;;  %4645 = vmatprep.subr.bf16.mxu1 %v5400_v11 }
 0x5c4   :  { %4647 = vmatpush1.bf16.msra.mxu1 %v5402_v14  ;;  %995 = vmatprep.mubr.f32.mxu1 %v5248_v0 }
 0x5c5   :  { %4649 = vmatprep.subr.bf16.mxu1 %v5405_v15 }
 0x5c6   :  { %v928_v4 = vpop.permute.xlu0 %927 }
 0x5c8   :  { %4651 = vmatpush1.bf16.msra.mxu1 %v5411_v22 }
 0x5c9   :  { %939 = vmatprep.subr.mxu1 %v5415_v23 }
 0x5cc   :  { %940 = vmatpush1.msra.mxu1 %v5419_v25 }
 0x5cd   :  { %4508 = vmatmul.mubr.msk.f32.vlgmr.msra.gmra.mrb[4].mxu1 %vm177_vm3, %v928_v4  ;;  %4669 = vmatprep.subr.bf16.mxu1 %v5330_v9 }
 0x5ce   :  { %4671 = vmatpush1.bf16.msra.mxu1 %v5332_v12  ;;  %1314 = vmatprep.mubr.f32.mxu1 %v5248_v0 }
 0x5cf   :  { %4673 = vmatprep.subr.bf16.mxu1 %v5338_v17 }
 0x5d2   :  { %4675 = vmatpush1.bf16.msra.mxu1 %v5341_v19 }
 0x5d3   :  { %1258 = vmatprep.subr.mxu1 %v5345_v20 }
 0x5d6   :  { %1259 = vmatpush1.msra.mxu1 %v5350_v21 }
 0x5d7   :  { %4513 = vmatmul.mubr.msk.f32.vlgmr.msra.gmra.mrb[6].mxu1 %vm177_vm3, %v928_v4  ;;  %4693 = vmatprep.subr.bf16.mxu1 %v5471_v40 }
 0x5d8   :  { %4695 = vmatpush1.bf16.msra.mxu1 %v5473_v44  ;;  %1646 = vmatprep.mubr.f32.mxu1 %v5248_v0 }
 0x5d9   :  { %4697 = vmatprep.subr.bf16.mxu1 %v5475_v51 }
 0x5dc   :  { %4699 = vmatpush1.bf16.msra.mxu1 %v5480_v47  ;;  %v1238_v47 = vld [vmem:[#allocation2] sm:$0x30] }
 0x5dd   :  { %1590 = vmatprep.subr.mxu1 %v5485_v48 }
 0x5e0   :  { %1591 = vmatpush1.msra.mxu1 %v514_v58 }
 0x5e1   :  { %4701 = vmatprep.subr.bf16.mxu1 %v4620_v61 }
 0x68c   :  { %v658_v37 = vpop.f32.mrb[2].mxu1 }
 0x68d   :  { %v674_v38 = vadd.f32 %v5548_v34, %v658_v37  ;;  %v660_v39 = vpop.f32.mrb[3].mxu1 }
 0x68e   :  { %v675_v40 = vadd.f32 %v5551_v35, %v660_v39 }
 0x68f   :  { %4986 = vtanh.f32 %v674_v38  ;;  %v4504_v58 = vmul.f32 -1.442695, %v674_v38 }
 0x690   :  { %4988 = vtanh.f32 %v675_v40 }
 0x699   :  { %v4987_v41 = vpop.eup %4986 }
 0x69a   :  { %v4989_v42 = vpop.eup %4988  ;;  %687 = vrot.lane.b32.xlu1 %v4987_v41, %s5249_s13 }
 0x69b   :  { %689 = vrot.lane.b32.xlu0 %v4989_v42, %s5249_s13 }
 0x6a0   :  { %v997_v43 = vpop.f32.mrb[4].mxu1 }
 0x6a1   :  { %v1002_v24 = vadd.f32 %v997_v43, %v5440_v28  ;;  %v999_v44 = vpop.f32.mrb[5].mxu1 }
 0x6a2   :  { %v1003_v26 = vadd.f32 %v999_v44, %v5443_v36 }
 0x6a3   :  { %4990 = vtanh.f32 %v1002_v24  ;;  %v4509_v5 = vmul.f32 -1.442695, %v1002_v24 }
 0x6a4   :  { %4992 = vtanh.f32 %v1003_v26 }
 0x6aa   :  { %v1316_v51 = vpop.f32.mrb[6].mxu1 }
 0x6ab   :  { %v1323_v45 = vrot.slane %v1316_v51, 4  ;;  %v1318_v46 = vpop.f32.mrb[7].mxu1 }
 0x6ac   :  { %v1324_v48 = vrot.slane %v1318_v46, 4 }
 0x6ad   :  { %v4991_v49 = vpop.eup %4990  ;;  %v1327_v50 = vadd.f32 %v1323_v45, %v1238_v47 }
 0x6ae   :  { %v4993_v53 = vpop.eup %4992  ;;  %v1328_v54 = vadd.f32 %v1324_v48, %v1239_v52  ;;  %1015 = vrot.lane.b32.xlu1 %v4991_v49, %s5249_s13 }
 0x6af   :  { %4994 = vtanh.f32 %v1327_v50  ;;  %1017 = vrot.lane.b32.xlu0 %v4993_v53, %s5249_s13  ;;  %v4514_v32 = vmul.f32 -1.442695, %v1327_v50 }
 0x6b0   :  { %4996 = vtanh.f32 %v1328_v54  ;;  %v1338_v54 = vrot.slane %v5467_v27, 6 }
 0x6b1   :  { %4998 = vpow2.f32 %v4504_v58 }
 0x6b9   :  { %v4995_v56 = vpop.eup %4994 }
 0x6ba   :  { %v4997_v57 = vpop.eup %4996  ;;  %1343 = vrot.lane.b32.xlu1 %v4995_v56, %s5249_s13 }
 0x6bb   :  { %1345 = vrot.lane.b32.xlu0 %v4997_v57, %s5249_s13  ;;  %v4999_v61 = vpop.eup %4998 }
 0x6bc   :  { %v679_v3 = vadd.f32 1.0, %v4999_v61 }
 0x6be   :  { %5000 = vrcp.f32 %v679_v3 }
 0x6bf   :  { %5002 = vpow2.f32 %v4509_v5 }
 0x6c0   :  { %5004 = vpow2.f32 %v4514_v32 }
 0x6c8   :  { %v5001_v29 = vpop.eup %5000 }
 0x6c9   :  { %v5003_v4 = vpop.eup %5002  ;;  %v684_v46 = vmul.f32 0.0, %v5001_v29 }
 0x6ca   :  { %v1007_v13 = vadd.f32 1.0, %v5003_v4  ;;  %v5005_v37 = vpop.eup %5004  ;;  %v1766_v4 = vld [vmem:[#allocation2 + $0x8] sm:$0xc0] }
 0x6cb   :  { %v1332_v38 = vadd.f32 1.0, %v5005_v37 }
 0x6cc   :  { %5006 = vrcp.f32 %v1007_v13 }
 0x6cd   :  { %5008 = vrcp.f32 %v1332_v38 }
 0x6d6   :  { %v5007_v41 = vpop.eup %5006 }
 0x6d7   :  { %v5009_v26 = vpop.eup %5008  ;;  %v1012_v50 = vmul.f32 %v5007_v41, %v5462_v31 }
 0x6d8   :  { %v1340_v56 = vmul.f32 %v5009_v26, %v1338_v54 }
 0x70c   :  { %v688_v16 = vpop.permute.xlu1 %687 }
 0x70d   :  { %v690_v18 = vpop.permute.xlu0 %689 }
 0x70e   :  { %v691_v30 = vsel %vm269_vm2, %v688_v16, %v690_v18 }
 0x70f   :  { %v693_v33 = vmul.f32 %v5001_v29, %v691_v30 }
 0x711   :  { %695 = vrot.lane.b32.xlu1 %v693_v33, %s5250_s14 }
 0x720   :  { %v1016_v39 = vpop.permute.xlu1 %1015 }
 0x721   :  { %v1018_v40 = vpop.permute.xlu0 %1017 }
 0x722   :  { %v1019_v42 = vsel %vm269_vm2, %v1016_v39, %v1018_v40 }
 0x723   :  { %v1021_v43 = vmul.f32 %v5007_v41, %v1019_v42 }
 0x725   :  { %1023 = vrot.lane.b32.xlu0 %v1021_v43, %s5250_s14 }
 0x72c   :  { %v1344_v24 = vpop.permute.xlu1 %1343 }
 0x72d   :  { %v1346_v44 = vpop.permute.xlu0 %1345 }
 0x72e   :  { %v1347_v51 = vsel %vm269_vm2, %v1344_v24, %v1346_v44 }
 0x72f   :  { %v1349_v45 = vmul.f32 %v5009_v26, %v1347_v51 }
 0x731   :  { %1351 = vrot.lane.b32.xlu1 %v1349_v45, %s5250_s14 }
 0x783   :  { %v696_v47 = vpop.permute.xlu1 %695 }
 0x784   :  { %v5569_v48 = vadd.f32 %v696_v47, %v684_v46 }
 0x786   :  { %5010 = vtanh.f32 %v5569_v48 }
 0x790   :  { %v5011_v49 = vpop.eup %5010 }
 0x791   :  { %701 = vrot.lane.b32.xlu0 %v5011_v49, %s5250_s14 }
 0x797   :  { %v1024_v52 = vpop.permute.xlu0 %1023 }
 0x798   :  { %v5574_v53 = vadd.f32 %v1024_v52, %v1012_v50 }
 0x79a   :  { %5012 = vtanh.f32 %v5574_v53 }
 0x7a3   :  { %v1352_v57 = vpop.permute.xlu1 %1351 }
 0x7a4   :  { %v5013_v58 = vpop.eup %5012  ;;  %v5578_v61 = vadd.f32 %v1352_v57, %v1340_v56 }
 0x7a5   :  { %1029 = vrot.lane.b32.xlu1 %v5013_v58, %s5250_s14 }
 0x7a6   :  { %5014 = vtanh.f32 %v5578_v61 }
 0x7b0   :  { %v5015_v3 = vpop.eup %5014 }
 0x7b1   :  { %1357 = vrot.lane.b32.xlu0 %v5015_v3, %s5250_s14 }
 0x803   :  { %v702_v31 = vpop.permute.xlu0 %701 }
 0x804   :  { %v704_v5 = vmul.f32 %v5001_v29, %v702_v31 }
 0x806   :  { %706 = vrot.lane.b32.xlu1 %v704_v5, %s5251_s0 }
 0x817   :  { %v1030_v16 = vpop.permute.xlu1 %1029 }
 0x818   :  { %v1032_v18 = vmul.f32 %v5007_v41, %v1030_v16 }
 0x81a   :  { %1127 = vrot.lane.b32.xlu0 %v1032_v18, %s5251_s0 }
 0x823   :  { %v1358_v27 = vpop.permute.xlu0 %1357 }
 0x824   :  { %v1360_v30 = vmul.f32 %v5009_v26, %v1358_v27 }
 0x826   :  { %v1453_v32 = vrot.slane %v1360_v30, 4 }
 0x828   :  { %1454 = vrot.lane.b32.xlu1 %v1453_v32, %s5251_s0 }
 0x878   :  { %v707_v33 = vpop.permute.xlu1 %706 }
 0x879   :  { %710 = vst.msk [vmem:[#allocation3] sm:$0x3] %vm709_vm4, %v707_v33  ;;  %4510 = vmatmul.mubr.msk.f32.vlgmr.msra.gmra.mrb[8].mxu0 %vm177_vm3, %v707_v33 }
 0x87a   :  { %4663 = vmatpush1.bf16.msra.mxu0 %v5491_v62  ;;  %1195 = vmatprep.mubr.f32.mxu0 %v5248_v0 }
 0x87b   :  { %4665 = vmatprep.subr.bf16.mxu0 %v5494_v63 }
 0x87e   :  { %4667 = vmatpush1.bf16.msra.mxu0 %v5498_v6 }
 0x87f   :  { %1139 = vmatprep.subr.mxu0 %v5502_v7 }
 0x882   :  { %1140 = vmatpush1.msra.mxu0 %v5506_v8 }
 0x883   :  { %4677 = vmatprep.subr.bf16.mxu0 %v5378_v55 }
 0x88c   :  { %v1128_v29 = vpop.permute.xlu0 %1127 }
 0x88d   :  { %4511 = vmatmul.mubr.msk.f32.vlgmr.msra.gmra.mrb[8].mxu0 %vm177_vm3, %v1128_v29 }
 0x88e   :  { %4679 = vmatpush1.bf16.msra.mxu0 %v5380_v59  ;;  %1445 = vmatprep.mubr.f32.mxu0 %v5248_v0 }
 0x88f   :  { %4681 = vmatprep.subr.bf16.mxu0 %v5382_v60 }
 0x892   :  { %4683 = vmatpush1.bf16.msra.mxu0 %v5390_v1 }
 0x893   :  { %1389 = vmatprep.subr.mxu0 %v5394_v2 }
 0x896   :  { %1390 = vmatpush1.msra.mxu0 %v5398_v10 }
 0x897   :  { %4515 = vmatmul.mubr.msk.f32.vlgmr.msra.gmra.mrb[10].mxu0 %vm177_vm3, %v1128_v29  ;;  %4685 = vmatprep.subr.bf16.mxu0 %v5400_v11 }
 0x898   :  { %4687 = vmatpush1.bf16.msra.mxu0 %v5402_v14  ;;  %1522 = vmatprep.mubr.f32.mxu0 %v5248_v0 }
 0x899   :  { %4689 = vmatprep.subr.bf16.mxu0 %v5405_v15  ;;  %v1765_v15 = vld [vmem:[#allocation2] sm:$0xc0] }
 0x89a   :  { %v1455_v55 = vpop.permute.xlu1 %1454 }
 0x89c   :  { %4691 = vmatpush1.bf16.msra.mxu0 %v5411_v22 }
 0x89d   :  { %1466 = vmatprep.subr.mxu0 %v5415_v23 }
 0x8a0   :  { %1467 = vmatpush1.msra.mxu0 %v5419_v25 }
 0x8a1   :  { %4516 = vmatmul.mubr.msk.f32.vlgmr.msra.gmra.mrb[10].mxu0 %vm177_vm3, %v1455_v55  ;;  %4709 = vmatprep.subr.bf16.mxu0 %v5330_v9 }
 0x8a2   :  { %4711 = vmatpush1.bf16.msra.mxu0 %v5332_v12  ;;  %1841 = vmatprep.mubr.f32.mxu0 %v5248_v0 }
 0x8a3   :  { %4713 = vmatprep.subr.bf16.mxu0 %v5338_v17 }
 0x8a6   :  { %4715 = vmatpush1.bf16.msra.mxu0 %v5341_v19 }
 0x8a7   :  { %1785 = vmatprep.subr.mxu0 %v5345_v20 }
 0x8aa   :  { %1786 = vmatpush1.msra.mxu0 %v5350_v21 }
 0x8ab   :  { %4521 = vmatmul.mubr.msk.f32.vlgmr.msra.gmra.mrb[12].mxu0 %vm177_vm3, %v1455_v55 }
 0x8ac   :  { %2173 = vmatprep.mubr.f32.mxu0 %v5248_v0 }
 0x960   :  { %v1197_v59 = vpop.f32.mrb[8].mxu0 }
 0x961   :  { %v1202_v60 = vadd.f32 %v1197_v59, %v5548_v34  ;;  %v1199_v9 = vpop.f32.mrb[9].mxu0 }
 0x962   :  { %v1203_v12 = vadd.f32 %v1199_v9, %v5551_v35  ;;  %v1865_v9 = vrot.slane %v5578_v61, 6 }
 0x963   :  { %5016 = vtanh.f32 %v1202_v60  ;;  %v4512_v40 = vmul.f32 -1.442695, %v1202_v60 }
 0x964   :  { %5018 = vtanh.f32 %v1203_v12 }
 0x96d   :  { %v5017_v1 = vpop.eup %5016 }
 0x96e   :  { %v5019_v17 = vpop.eup %5018  ;;  %1215 = vrot.lane.b32.xlu0 %v5017_v1, %s5249_s13 }
 0x96f   :  { %1217 = vrot.lane.b32.xlu1 %v5019_v17, %s5249_s13 }
 0x974   :  { %v1524_v19 = vpop.f32.mrb[10].mxu0 }
 0x975   :  { %v1529_v20 = vadd.f32 %v1524_v19, %v5440_v28  ;;  %v1526_v21 = vpop.f32.mrb[11].mxu0 }
 0x976   :  { %v1530_v2 = vadd.f32 %v1526_v21, %v5443_v36 }
 0x977   :  { %5020 = vtanh.f32 %v1529_v20  ;;  %v4517_v43 = vmul.f32 -1.442695, %v1529_v20 }
 0x978   :  { %5022 = vtanh.f32 %v1530_v2 }
 0x97e   :  { %v1843_v10 = vpop.f32.mrb[12].mxu0 }
 0x97f   :  { %v1850_v11 = vrot.slane %v1843_v10, 2  ;;  %v1845_v14 = vpop.f32.mrb[13].mxu0 }
 0x980   :  { %v1851_v22 = vrot.slane %v1845_v14, 2 }
 0x981   :  { %v5021_v23 = vpop.eup %5020  ;;  %v1854_v25 = vadd.f32 %v1850_v11, %v1765_v15  ;;  %v1899_v15 = vld [vmem:[#allocation6 + $0x58] sm:$0xff] }
 0x982   :  { %v5023_v13 = vpop.eup %5022  ;;  %v1855_v37 = vadd.f32 %v1851_v22, %v1766_v4  ;;  %1542 = vrot.lane.b32.xlu0 %v5021_v23, %s5249_s13  ;;  %v1901_v22 = vld [vmem:[#allocation6 + $0x68] sm:$0xff]  ;;  %v1900_v4 = vld [vmem:[#allocation6 + $0x60] sm:$0xff] }
 0x983   :  { %5024 = vtanh.f32 %v1854_v25  ;;  %1544 = vrot.lane.b32.xlu1 %v5023_v13, %s5249_s13  ;;  %v4522_v45 = vmul.f32 -1.442695, %v1854_v25  ;;  %v5661_v23 = vpack.c.bf16 %v1901_v22, %v1899_v15  ;;  %v1898_v25 = vld [vmem:[#allocation6 + $0x50] sm:$0xff]  ;;  %v1903_v13 = vld [vmem:[#allocation6 + $0x78] sm:$0xff]  ;;  %v2293_v22 = vld [vmem:[#allocation2 + $0x18] sm:$0x3] }
 0x984   :  { %5026 = vtanh.f32 %v1855_v37  ;;  %v5665_v37 = vpack.c.bf16 %v1900_v4, %v1898_v25 }
 0x985   :  { %5028 = vpow2.f32 %v4512_v40 }
 0x98d   :  { %v5025_v38 = vpop.eup %5024 }
 0x98e   :  { %v5027_v39 = vpop.eup %5026  ;;  %1870 = vrot.lane.b32.xlu0 %v5025_v38, %s5249_s13 }
 0x98f   :  { %1872 = vrot.lane.b32.xlu1 %v5027_v39, %s5249_s13  ;;  %v5029_v41 = vpop.eup %5028  ;;  %v1904_v39 = vld [vmem:[#allocation6 + $0x80] sm:$0xff] }
 0x990   :  { %v1207_v42 = vadd.f32 1.0, %v5029_v41  ;;  %v1891_v41 = vld [vmem:[#allocation4 + $0x18] sm:$0xff] }
 0x992   :  { %5030 = vrcp.f32 %v1207_v42  ;;  %v1888_v42 = vld [vmem:[#allocation4] sm:$0xff] }
 0x993   :  { %5032 = vpow2.f32 %v4517_v43  ;;  %v1890_v43 = vld [vmem:[#allocation4 + $0x10] sm:$0xff] }
 0x994   :  { %5034 = vpow2.f32 %v4522_v45  ;;  %v5683_v45 = vpack.c.bf16 %v1890_v43, %v1888_v42 }
 0x99c   :  { %v5031_v26 = vpop.eup %5030 }
 0x99d   :  { %v5033_v47 = vpop.eup %5032  ;;  %v1212_v30 = vmul.f32 %v5031_v26, %v5569_v48 }
 0x99e   :  { %v1534_v49 = vadd.f32 1.0, %v5033_v47  ;;  %v5035_v50 = vpop.eup %5034  ;;  %v1892_v47 = vld [vmem:[#allocation4 + $0x20] sm:$0xff] }
 0x99f   :  { %v1859_v52 = vadd.f32 1.0, %v5035_v50 }
 0x9a0   :  { %5036 = vrcp.f32 %v1534_v49  ;;  %v1894_v49 = vld [vmem:[#allocation4 + $0x30] sm:$0xff] }
 0x9a1   :  { %5038 = vrcp.f32 %v1859_v52  ;;  %v5691_v50 = vpack.c.bf16 %v1894_v49, %v1892_v47  ;;  %v5695_v52 = vld [vmem:[#allocation4 + $0x48] sm:$0xff] }
 0x9aa   :  { %v5037_v57 = vpop.eup %5036 }
 0x9ab   :  { %v5039_v16 = vpop.eup %5038  ;;  %v1539_v55 = vmul.f32 %v5037_v57, %v5574_v53 }
 0x9ac   :  { %v1867_v12 = vmul.f32 %v5039_v16, %v1865_v9  ;;  %v5719_v9 = vld [vmem:[#allocation6 + $0x40] sm:$0xff] }
 0x9e0   :  { %v1216_v24 = vpop.permute.xlu0 %1215 }
 0x9e1   :  { %v1218_v44 = vpop.permute.xlu1 %1217 }
 0x9e2   :  { %v1219_v51 = vsel %vm269_vm2, %v1216_v24, %v1218_v44  ;;  %v1893_v24 = vld [vmem:[#allocation4 + $0x28] sm:$0xff]  ;;  %v1895_v44 = vld [vmem:[#allocation4 + $0x38] sm:$0xff] }
 0x9e3   :  { %v1221_v46 = vmul.f32 %v5031_v26, %v1219_v51 }
 0x9e5   :  { %1223 = vrot.lane.b32.xlu0 %v1221_v46, %s5250_s14  ;;  %v5685_v46 = vpack.c.bf16 %v1895_v44, %v1893_v24 }
 0x9f4   :  { %v1543_v54 = vpop.permute.xlu0 %1542 }
 0x9f5   :  { %v1545_v56 = vpop.permute.xlu1 %1544 }
 0x9f6   :  { %v1546_v58 = vsel %vm269_vm2, %v1543_v54, %v1545_v56  ;;  %v2295_v54 = vld [vmem:[#allocation6 + $0x8] sm:$0xff]  ;;  %v2297_v56 = vld [vmem:[#allocation6 + $0x18] sm:$0xff] }
 0x9f7   :  { %v1548_v3 = vmul.f32 %v5037_v57, %v1546_v58  ;;  %v2296_v58 = vld [vmem:[#allocation6 + $0x10] sm:$0xff] }
 0x9f9   :  { %1550 = vrot.lane.b32.xlu1 %v1548_v3, %s5250_s14  ;;  %v2299_v3 = vld [vmem:[#allocation6 + $0x28] sm:$0xff] }
 0xa00   :  { %v1871_v31 = vpop.permute.xlu0 %1870 }
 0xa01   :  { %v1873_v5 = vpop.permute.xlu1 %1872 }
 0xa02   :  { %v1874_v18 = vsel %vm269_vm2, %v1871_v31, %v1873_v5  ;;  %v2301_v31 = vld [vmem:[#allocation6 + $0x38] sm:$0xff]  ;;  %v5699_v5 = vld [vmem:[#allocation4 + $0x40] sm:$0xff] }
 0xa03   :  { %v1876_v27 = vmul.f32 %v5039_v16, %v1874_v18 }
 0xa05   :  { %1878 = vrot.lane.b32.xlu0 %v1876_v27, %s5250_s14  ;;  %v5705_v27 = vpack.c.bf16 %v2301_v31, %v2299_v3 }
 0xa57   :  { %v1224_v32 = vpop.permute.xlu0 %1223 }
 0xa58   :  { %v5637_v33 = vadd.f32 %v1224_v32, %v1212_v30  ;;  %v2298_v30 = vld [vmem:[#allocation6 + $0x20] sm:$0xff]  ;;  %v2300_v32 = vld [vmem:[#allocation6 + $0x30] sm:$0xff] }
 0xa5a   :  { %5040 = vtanh.f32 %v5637_v33 }
 0xa64   :  { %v5041_v29 = vpop.eup %5040 }
 0xa65   :  { %1229 = vrot.lane.b32.xlu1 %v5041_v29, %s5250_s14 }
 0xa6b   :  { %v1551_v59 = vpop.permute.xlu1 %1550 }
 0xa6c   :  { %v5642_v60 = vadd.f32 %v1551_v59, %v1539_v55  ;;  %v5711_v55 = vpack.c.bf16 %v2300_v32, %v2298_v30  ;;  %v5715_v59 = vld [vmem:[#allocation6 + $0x48] sm:$0xff] }
 0xa6e   :  { %5042 = vtanh.f32 %v5642_v60 }
 0xa77   :  { %v1879_v1 = vpop.permute.xlu0 %1878 }
 0xa78   :  { %v5043_v48 = vpop.eup %5042  ;;  %v5646_v17 = vadd.f32 %v1879_v1, %v1867_v12 }
 0xa79   :  { %1556 = vrot.lane.b32.xlu0 %v5043_v48, %s5250_s14 }
 0xa7a   :  { %5044 = vtanh.f32 %v5646_v17 }
 0xa84   :  { %v5045_v19 = vpop.eup %5044 }
 0xa85   :  { %1884 = vrot.lane.b32.xlu1 %v5045_v19, %s5250_s14 }
 0xad7   :  { %v1230_v53 = vpop.permute.xlu1 %1229 }
 0xad8   :  { %v1232_v20 = vmul.f32 %v5031_v26, %v1230_v53  ;;  %v5679_v26 = vld [vmem:[#allocation6 + $0x90] sm:$0xff] }
 0xada   :  { %1234 = vrot.lane.b32.xlu0 %v1232_v20, %s5251_s0 }
 0xaeb   :  { %v1557_v21 = vpop.permute.xlu0 %1556 }
 0xaec   :  { %v1559_v2 = vmul.f32 %v5037_v57, %v1557_v21  ;;  %v2294_v57 = vld [vmem:[#allocation6] sm:$0xff] }
 0xaed   :  { %v5703_v18 = vpack.c.bf16 %v2296_v58, %v2294_v57 }
 0xaee   :  { %1654 = vrot.lane.b32.xlu1 %v1559_v2, %s5251_s0 }
 0xaf7   :  { %v1885_v61 = vpop.permute.xlu1 %1884 }
 0xaf8   :  { %v1887_v10 = vmul.f32 %v5039_v16, %v1885_v61  ;;  %v5701_v16 = vpack.c.bf16 %v2297_v56, %v2295_v54 }
 0xafa   :  { %v1980_v11 = vrot.slane %v1887_v10, 6 }
 0xafc   :  { %1981 = vrot.lane.b32.xlu0 %v1980_v11, %s5251_s0  ;;  %v2292_v11 = vld [vmem:[#allocation2 + $0x10] sm:$0x3] }
 0xb4c   :  { %v1235_v14 = vpop.permute.xlu0 %1234 }
 0xb4d   :  { %1237 = vst.msk [vmem:[#allocation3 + $0x2] sm:$0x3] %vm709_vm4, %v1235_v14  ;;  %4518 = vmatmul.mubr.msk.f32.vlgmr.msra.gmra.mrb[8].mxu1 %vm177_vm3, %v1235_v14 }
 0xb4e   :  { %4703 = vmatpush1.bf16.msra.mxu1 %v5491_v62  ;;  %1722 = vmatprep.mubr.f32.mxu1 %v5248_v0  ;;  %v1905_v62 = vld [vmem:[#allocation6 + $0x88] sm:$0xff] }
 0xb4f   :  { %4705 = vmatprep.subr.bf16.mxu1 %v5494_v63  ;;  %v5667_v38 = vpack.c.bf16 %v1905_v62, %v1903_v13  ;;  %v1902_v63 = vld [vmem:[#allocation6 + $0x70] sm:$0xff] }
 0xb52   :  { %4707 = vmatpush1.bf16.msra.mxu1 %v5498_v6  ;;  %v5671_v6 = vpack.c.bf16 %v1904_v39, %v1902_v63 }
 0xb53   :  { %1666 = vmatprep.subr.mxu1 %v5502_v7  ;;  %v5675_v7 = vld [vmem:[#allocation6 + $0x98] sm:$0xff] }
 0xb56   :  { %1667 = vmatpush1.msra.mxu1 %v5506_v8  ;;  %v1889_v8 = vld [vmem:[#allocation4 + $0x8] sm:$0xff] }
 0xb57   :  { %4717 = vmatprep.subr.bf16.mxu1 %v5661_v23  ;;  %v5681_v51 = vpack.c.bf16 %v1891_v41, %v1889_v8 }
 0xb60   :  { %v1655_v40 = vpop.permute.xlu1 %1654 }
 0xb61   :  { %4519 = vmatmul.mubr.msk.f32.vlgmr.msra.gmra.mrb[8].mxu1 %vm177_vm3, %v1655_v40 }
 0xb62   :  { %4719 = vmatpush1.bf16.msra.mxu1 %v5665_v37  ;;  %1972 = vmatprep.mubr.f32.mxu1 %v5248_v0 }
 0xb63   :  { %4721 = vmatprep.subr.bf16.mxu1 %v5667_v38 }
 0xb66   :  { %4723 = vmatpush1.bf16.msra.mxu1 %v5671_v6 }
 0xb67   :  { %1916 = vmatprep.subr.mxu1 %v5675_v7 }
 0xb6a   :  { %1917 = vmatpush1.msra.mxu1 %v5679_v26 }
 0xb6b   :  { %4523 = vmatmul.mubr.msk.f32.vlgmr.msra.gmra.mrb[10].mxu1 %vm177_vm3, %v1655_v40  ;;  %4725 = vmatprep.subr.bf16.mxu1 %v5681_v51 }
 0xb6c   :  { %4727 = vmatpush1.bf16.msra.mxu1 %v5683_v45  ;;  %2049 = vmatprep.mubr.f32.mxu1 %v5248_v0 }
 0xb6d   :  { %4729 = vmatprep.subr.bf16.mxu1 %v5685_v46 }
 0xb6e   :  { %v1982_v29 = vpop.permute.xlu0 %1981 }
 0xb70   :  { %4731 = vmatpush1.bf16.msra.mxu1 %v5691_v50 }
 0xb71   :  { %1993 = vmatprep.subr.mxu1 %v5695_v52 }
 0xb74   :  { %1994 = vmatpush1.msra.mxu1 %v5699_v5 }
 0xb75   :  { %4524 = vmatmul.mubr.msk.f32.vlgmr.msra.gmra.mrb[10].mxu1 %vm177_vm3, %v1982_v29  ;;  %4749 = vmatprep.subr.bf16.mxu1 %v5701_v16 }
 0xb76   :  { %4751 = vmatpush1.bf16.msra.mxu1 %v5703_v18  ;;  %2368 = vmatprep.mubr.f32.mxu1 %v5248_v0 }
 0xb77   :  { %4753 = vmatprep.subr.bf16.mxu1 %v5705_v27 }
 0xb7a   :  { %4755 = vmatpush1.bf16.msra.mxu1 %v5711_v55 }
 0xb7b   :  { %2312 = vmatprep.subr.mxu1 %v5715_v59 }
 0xb7e   :  { %2313 = vmatpush1.msra.mxu1 %v5719_v9 }
 0xb7f   :  { %4529 = vmatmul.mubr.msk.f32.vlgmr.msra.gmra.mrb[12].mxu1 %vm177_vm3, %v1982_v29 }
 0xb80   :  { %2693 = vmatprep.mubr.f32.mxu1 %v5248_v0 }
 0xc34   :  { %v1724_v12 = vpop.f32.mrb[8].mxu1 }
 0xc35   :  { %v1729_v1 = vadd.f32 %v1724_v12, %v5548_v34  ;;  %v1726_v48 = vpop.f32.mrb[9].mxu1 }
 0xc36   :  { %v1730_v19 = vadd.f32 %v1726_v48, %v5551_v35 }
 0xc37   :  { %5046 = vtanh.f32 %v1729_v1  ;;  %v4520_v40 = vmul.f32 -1.442695, %v1729_v1 }
 0xc38   :  { %5048 = vtanh.f32 %v1730_v19 }
 0xc41   :  { %v5047_v53 = vpop.eup %5046 }
 0xc42   :  { %v5049_v20 = vpop.eup %5048  ;;  %1742 = vrot.lane.b32.xlu1 %v5047_v53, %s5249_s13 }
 0xc43   :  { %1744 = vrot.lane.b32.xlu0 %v5049_v20, %s5249_s13 }
 0xc48   :  { %v2051_v21 = vpop.f32.mrb[10].mxu1 }
 0xc49   :  { %v2056_v2 = vadd.f32 %v2051_v21, %v5440_v28  ;;  %v2053_v61 = vpop.f32.mrb[11].mxu1 }
 0xc4a   :  { %v2057_v10 = vadd.f32 %v2053_v61, %v5443_v36 }
 0xc4b   :  { %5050 = vtanh.f32 %v2056_v2  ;;  %v4525_v42 = vmul.f32 -1.442695, %v2056_v2 }
 0xc4c   :  { %5052 = vtanh.f32 %v2057_v10 }
 0xc52   :  { %v2370_v14 = vpop.f32.mrb[12].mxu1 }
 0xc53   :  { %v2375_v15 = vadd.f32 %v2370_v14, %v2292_v11  ;;  %v2372_v25 = vpop.f32.mrb[13].mxu1 }
 0xc54   :  { %v2376_v4 = vadd.f32 %v2372_v25, %v2293_v22  ;;  %v2386_v22 = vrot.slane %v5646_v17, 6 }
 0xc55   :  { %v5051_v13 = vpop.eup %5050  ;;  %5054 = vtanh.f32 %v2375_v15  ;;  %v4530_v24 = vmul.f32 -1.442695, %v2375_v15 }
 0xc56   :  { %v5053_v62 = vpop.eup %5052  ;;  %5056 = vtanh.f32 %v2376_v4  ;;  %2069 = vrot.lane.b32.xlu1 %v5051_v13, %s5249_s13 }
 0xc57   :  { %2071 = vrot.lane.b32.xlu0 %v5053_v62, %s5249_s13  ;;  %5058 = vpow2.f32 %v4520_v40  ;;  %v2098_v62 = vld [vmem:[#allocation6 + $0xa8] sm:$0xff]  ;;  %v2099_v40 = vld [vmem:[#allocation6 + $0xb0] sm:$0xff] }
 0xc5f   :  { %v5055_v63 = vpop.eup %5054 }
 0xc60   :  { %v5057_v39 = vpop.eup %5056  ;;  %2391 = vrot.lane.b32.xlu1 %v5055_v63, %s5249_s13  ;;  %v2100_v63 = vld [vmem:[#allocation6 + $0xb8] sm:$0xff] }
 0xc61   :  { %2393 = vrot.lane.b32.xlu0 %v5057_v39, %s5249_s13  ;;  %v5059_v8 = vpop.eup %5058  ;;  %v2097_v39 = vld [vmem:[#allocation6 + $0xa0] sm:$0xff] }
 0xc62   :  { %v1734_v41 = vadd.f32 1.0, %v5059_v8  ;;  %v2102_v8 = vld [vmem:[#allocation6 + $0xc8] sm:$0xff] }
 0xc64   :  { %5060 = vrcp.f32 %v1734_v41  ;;  %v2104_v41 = vld [vmem:[#allocation6 + $0xd8] sm:$0xff] }
 0xc65   :  { %5062 = vpow2.f32 %v4525_v42  ;;  %v5764_v42 = vpack.c.bf16 %v2099_v40, %v2097_v39  ;;  %v5766_v17 = vpack.c.bf16 %v2104_v41, %v2102_v8 }
 0xc66   :  { %5064 = vpow2.f32 %v4530_v24  ;;  %v2103_v24 = vld [vmem:[#allocation6 + $0xd0] sm:$0xff] }
 0xc6e   :  { %v5734_v47 = vpop.eup %5060 }
 0xc6f   :  { %v5063_v56 = vpop.eup %5062  ;;  %v1739_v21 = vmul.f32 %v5734_v47, %v5637_v33 }
 0xc70   :  { %v2061_v57 = vadd.f32 1.0, %v5063_v56  ;;  %v5065_v58 = vpop.eup %5064 }
 0xc71   :  { %v2380_v3 = vadd.f32 1.0, %v5065_v58  ;;  %v2090_v58 = vld [vmem:[#allocation4 + $0x68] sm:$0xff] }
 0xc72   :  { %5066 = vrcp.f32 %v2061_v57  ;;  %v2088_v57 = vld [vmem:[#allocation4 + $0x58] sm:$0xff] }
 0xc73   :  { %5068 = vrcp.f32 %v2380_v3  ;;  %v5787_v3 = vpack.c.bf16 %v2090_v58, %v2088_v57 }
 0xc7c   :  { %v5739_v32 = vpop.eup %5066 }
 0xc7d   :  { %v5069_v19 = vpop.eup %5068  ;;  %v2066_v11 = vmul.f32 %v5739_v32, %v5642_v60  ;;  %v5762_v60 = vpack.c.bf16 %v2100_v63, %v2098_v62 }
 0xc7e   :  { %v2388_v25 = vmul.f32 %v5069_v19, %v2386_v22 }
 0xc7f   :  { %4733 = vmatprep.subr.bf16.mxu0 %v5762_v60  ;;  %4773 = vmatprep.subr.bf16.mxu1 %v5762_v60 }
 0xc80   :  { %4735 = vmatpush1.bf16.msra.mxu0 %v5764_v42  ;;  %4775 = vmatpush1.bf16.msra.mxu1 %v5764_v42 }
 0xc81   :  { %4737 = vmatprep.subr.bf16.mxu0 %v5766_v17  ;;  %4777 = vmatprep.subr.bf16.mxu1 %v5766_v17 }
 0xcb4   :  { %v1743_v43 = vpop.permute.xlu1 %1742 }
 0xcb5   :  { %v1745_v44 = vpop.permute.xlu0 %1744 }
 0xcb6   :  { %v1746_v49 = vsel %vm269_vm2, %v1743_v43, %v1745_v44  ;;  %v2101_v43 = vld [vmem:[#allocation6 + $0xc0] sm:$0xff] }
 0xcb7   :  { %v1748_v54 = vmul.f32 %v5734_v47, %v1746_v49  ;;  %v5771_v44 = vpack.c.bf16 %v2103_v24, %v2101_v43  ;;  %v5776_v49 = vld [vmem:[#allocation6 + $0xe8] sm:$0xff] }
 0xcb9   :  { %1750 = vrot.lane.b32.xlu1 %v1748_v54, %s5250_s14  ;;  %4739 = vmatpush1.bf16.msra.mxu0 %v5771_v44  ;;  %v5781_v54 = vld [vmem:[#allocation6 + $0xe0] sm:$0xff] }
 0xcba   :  { %4779 = vmatpush1.bf16.msra.mxu1 %v5771_v44  ;;  %2117 = vmatprep.subr.mxu0 %v5776_v49 }
 0xcbb   :  { %2637 = vmatprep.subr.mxu1 %v5776_v49 }
 0xcbd   :  { %2118 = vmatpush1.msra.mxu0 %v5781_v54 }
 0xcbe   :  { %2638 = vmatpush1.msra.mxu1 %v5781_v54  ;;  %4741 = vmatprep.subr.bf16.mxu0 %v5787_v3 }
 0xcbf   :  { %4781 = vmatprep.subr.bf16.mxu1 %v5787_v3 }
 0xcc8   :  { %v2070_v31 = vpop.permute.xlu1 %2069 }
 0xcc9   :  { %v2072_v30 = vpop.permute.xlu0 %2071 }
 0xcca   :  { %v2073_v29 = vsel %vm269_vm2, %v2070_v31, %v2072_v30 }
 0xccb   :  { %v2075_v12 = vmul.f32 %v5739_v32, %v2073_v29 }
 0xccd   :  { %2077 = vrot.lane.b32.xlu0 %v2075_v12, %s5250_s14 }
 0xcd2   :  { %v2392_v1 = vpop.permute.xlu1 %2391 }
 0xcd3   :  { %v2394_v48 = vpop.permute.xlu0 %2393 }
 0xcd4   :  { %v2395_v53 = vsel %vm269_vm2, %v2392_v1, %v2394_v48 }
 0xcd5   :  { %v2397_v20 = vmul.f32 %v5069_v19, %v2395_v53  ;;  %v2087_v53 = vld [vmem:[#allocation4 + $0x50] sm:$0xff] }
 0xcd7   :  { %2399 = vrot.lane.b32.xlu1 %v2397_v20, %s5250_s14  ;;  %v2089_v20 = vld [vmem:[#allocation4 + $0x60] sm:$0xff] }
 0xd2b   :  { %v1751_v2 = vpop.permute.xlu1 %1750 }
 0xd2c   :  { %v5748_v61 = vadd.f32 %v1751_v2, %v1739_v21  ;;  %v2092_v21 = vld [vmem:[#allocation4 + $0x78] sm:$0xff]  ;;  %v2094_v2 = vld [vmem:[#allocation4 + $0x88] sm:$0xff] }
 0xd2e   :  { %5070 = vtanh.f32 %v5748_v61 }
 0xd38   :  { %v5071_v10 = vpop.eup %5070 }
 0xd39   :  { %1756 = vrot.lane.b32.xlu0 %v5071_v10, %s5250_s14  ;;  %v5796_v10 = vpack.c.bf16 %v2089_v20, %v2087_v53 }
 0xd3f   :  { %v2078_v14 = vpop.permute.xlu0 %2077 }
 0xd40   :  { %v5754_v15 = vadd.f32 %v2078_v14, %v2066_v11  ;;  %v5798_v11 = vpack.c.bf16 %v2094_v2, %v2092_v21  ;;  %v2093_v14 = vld [vmem:[#allocation4 + $0x80] sm:$0xff] }
 0xd42   :  { %5072 = vtanh.f32 %v5754_v15 }
 0xd49   :  { %v2400_v33 = vpop.permute.xlu1 %2399 }
 0xd4a   :  { %v5758_v4 = vadd.f32 %v2400_v33, %v2388_v25  ;;  %v5811_v25 = vld [vmem:[#allocation4 + $0x90] sm:$0xff] }
 0xd4c   :  { %v5073_v13 = vpop.eup %5072  ;;  %5074 = vtanh.f32 %v5758_v4 }
 0xd4d   :  { %2083 = vrot.lane.b32.xlu1 %v5073_v13, %s5250_s14 }
 0xd56   :  { %v5075_v56 = vpop.eup %5074 }
 0xd57   :  { %2405 = vrot.lane.b32.xlu0 %v5075_v56, %s5250_s14 }
 0xdab   :  { %v1757_v31 = vpop.permute.xlu0 %1756 }
 0xdac   :  { %v1759_v30 = vmul.f32 %v5734_v47, %v1757_v31  ;;  %v2091_v47 = vld [vmem:[#allocation4 + $0x70] sm:$0xff] }
 0xdae   :  { %1761 = vrot.lane.b32.xlu1 %v1759_v30, %s5251_s0 }
 0xdbf   :  { %v2084_v29 = vpop.permute.xlu1 %2083 }
 0xdc0   :  { %v2086_v12 = vmul.f32 %v5739_v32, %v2084_v29  ;;  %v5803_v32 = vpack.c.bf16 %v2093_v14, %v2091_v47 }
 0xdc2   :  { %2181 = vrot.lane.b32.xlu0 %v2086_v12, %s5251_s0 }
 0xdc9   :  { %v2406_v1 = vpop.permute.xlu0 %2405 }
 0xdca   :  { %v2408_v48 = vmul.f32 %v5069_v19, %v2406_v1  ;;  %v5807_v19 = vld [vmem:[#allocation4 + $0x98] sm:$0xff] }
 0xdcc   :  { %2501 = vrot.lane.b32.xlu1 %v2408_v48, %s5251_s0 }
 0xe20   :  { %v1762_v22 = vpop.permute.xlu1 %1761 }
 0xe21   :  { %1764 = vst.msk [vmem:[#allocation3 + $0x4] sm:$0x3] %vm709_vm4, %v1762_v22  ;;  %4526 = vmatmul.mubr.msk.f32.vlgmr.msra.gmra.mrb[14].mxu0 %vm177_vm3, %v1762_v22 }
 0xe22   :  { %4743 = vmatpush1.bf16.msra.mxu0 %v5796_v10  ;;  %2249 = vmatprep.mubr.f32.mxu0 %v5248_v0 }
 0xe23   :  { %4745 = vmatprep.subr.bf16.mxu0 %v5798_v11 }
 0xe26   :  { %4747 = vmatpush1.bf16.msra.mxu0 %v5803_v32 }
 0xe27   :  { %2193 = vmatprep.subr.mxu0 %v5807_v19 }
 0xe2a   :  { %2194 = vmatpush1.msra.mxu0 %v5811_v25 }
 0xe2b   :  { %4757 = vmatprep.subr.bf16.mxu0 %v5661_v23 }
 0xe34   :  { %v2182_v33 = vpop.permute.xlu0 %2181 }
 0xe35   :  { %4527 = vmatmul.mubr.msk.f32.vlgmr.msra.gmra.mrb[14].mxu0 %vm177_vm3, %v2182_v33 }
 0xe36   :  { %4759 = vmatpush1.bf16.msra.mxu0 %v5665_v37  ;;  %2493 = vmatprep.mubr.f32.mxu0 %v5248_v0 }
 0xe37   :  { %4761 = vmatprep.subr.bf16.mxu0 %v5667_v38 }
 0xe3a   :  { %4763 = vmatpush1.bf16.msra.mxu0 %v5671_v6 }
 0xe3b   :  { %2437 = vmatprep.subr.mxu0 %v5675_v7 }
 0xe3e   :  { %2438 = vmatpush1.msra.mxu0 %v5679_v26  ;;  %v2502_v13 = vpop.permute.xlu1 %2501 }
 0xe3f   :  { %4531 = vmatmul.mubr.msk.f32.vlgmr.msra.gmra.mrb[16].mxu0 %vm177_vm3, %v2182_v33  ;;  %4765 = vmatprep.subr.bf16.mxu0 %v5681_v51 }
 0xe40   :  { %4767 = vmatpush1.bf16.msra.mxu0 %v5683_v45  ;;  %2569 = vmatprep.mubr.f32.mxu0 %v5248_v0 }
 0xe41   :  { %4769 = vmatprep.subr.bf16.mxu0 %v5685_v46 }
 0xe44   :  { %4771 = vmatpush1.bf16.msra.mxu0 %v5691_v50 }
 0xe45   :  { %2513 = vmatprep.subr.mxu0 %v5695_v52 }
 0xe48   :  { %2514 = vmatpush1.msra.mxu0 %v5699_v5 }
 0xe49   :  { %4532 = vmatmul.mubr.msk.f32.vlgmr.msra.gmra.mrb[16].mxu0 %vm177_vm3, %v2502_v13  ;;  %4789 = vmatprep.subr.bf16.mxu0 %v5701_v16 }
 0xe4a   :  { %4791 = vmatpush1.bf16.msra.mxu0 %v5703_v18  ;;  %2888 = vmatprep.mubr.f32.mxu0 %v5248_v0 }
 0xe4b   :  { %4793 = vmatprep.subr.bf16.mxu0 %v5705_v27 }
 0xe4e   :  { %4795 = vmatpush1.bf16.msra.mxu0 %v5711_v55 }
 0xe4f   :  { %2832 = vmatprep.subr.mxu0 %v5715_v59 }
 0xe52   :  { %2833 = vmatpush1.msra.mxu0 %v5719_v9 }
 0xe53   :  { %4537 = vmatmul.mubr.msk.f32.vlgmr.msra.gmra.mrb[18].mxu0 %vm177_vm3, %v2502_v13  ;;  %4813 = vmatprep.subr.bf16.mxu0 %v5762_v60 }
 0xe54   :  { %4815 = vmatpush1.bf16.msra.mxu0 %v5764_v42  ;;  %3220 = vmatprep.mubr.f32.mxu0 %v5248_v0 }
 0xe55   :  { %4817 = vmatprep.subr.bf16.mxu0 %v5766_v17 }
 0xe58   :  { %4819 = vmatpush1.bf16.msra.mxu0 %v5771_v44 }
 0xe59   :  { %3164 = vmatprep.subr.mxu0 %v5776_v49 }
 0xe5c   :  { %3165 = vmatpush1.msra.mxu0 %v5781_v54  ;;  %v2812_v54 = vld [vmem:[#allocation2 + $0x10] sm:$0xc] }
 0xe5d   :  { %4821 = vmatprep.subr.bf16.mxu0 %v5787_v3  ;;  %v2813_v3 = vld [vmem:[#allocation2 + $0x18] sm:$0xc] }
 0xf08   :  { %v2251_v62 = vpop.f32.mrb[14].mxu0 }
 0xf09   :  { %v2256_v63 = vadd.f32 %v2251_v62, %v5548_v34  ;;  %v2253_v39 = vpop.f32.mrb[15].mxu0 }
 0xf0a   :  { %v2257_v60 = vadd.f32 %v2253_v39, %v5551_v35 }
 0xf0b   :  { %5076 = vtanh.f32 %v2256_v63  ;;  %v4528_v1 = vmul.f32 -1.442695, %v2256_v63 }
 0xf0c   :  { %5078 = vtanh.f32 %v2257_v60 }
 0xf15   :  { %v5077_v40 = vpop.eup %5076 }
 0xf16   :  { %v5079_v8 = vpop.eup %5078  ;;  %2269 = vrot.lane.b32.xlu0 %v5077_v40, %s5249_s13 }
 0xf17   :  { %2271 = vrot.lane.b32.xlu1 %v5079_v8, %s5249_s13 }
 0xf1c   :  { %v2571_v41 = vpop.f32.mrb[16].mxu0 }
 0xf1d   :  { %v2576_v42 = vadd.f32 %v2571_v41, %v5440_v28  ;;  %v2573_v17 = vpop.f32.mrb[17].mxu0 }
 0xf1e   :  { %v2577_v43 = vadd.f32 %v2573_v17, %v5443_v36 }
 0xf1f   :  { %5080 = vtanh.f32 %v2576_v42  ;;  %v4533_v20 = vmul.f32 -1.442695, %v2576_v42 }
 0xf20   :  { %5082 = vtanh.f32 %v2577_v43 }
 0xf26   :  { %v2890_v24 = vpop.f32.mrb[18].mxu0 }
 0xf27   :  { %v2897_v44 = vrot.slane %v2890_v24, 6  ;;  %v2892_v49 = vpop.f32.mrb[19].mxu0 }
 0xf28   :  { %v2898_v56 = vrot.slane %v2892_v49, 6 }
 0xf29   :  { %v5081_v57 = vpop.eup %5080  ;;  %v2901_v58 = vadd.f32 %v2897_v44, %v2812_v54 }
 0xf2a   :  { %v5083_v31 = vpop.eup %5082  ;;  %v2902_v30 = vadd.f32 %v2898_v56, %v2813_v3  ;;  %2589 = vrot.lane.b32.xlu0 %v5081_v57, %s5249_s13 }
 0xf2b   :  { %5084 = vtanh.f32 %v2901_v58  ;;  %2591 = vrot.lane.b32.xlu1 %v5083_v31, %s5249_s13  ;;  %v4538_v22 = vmul.f32 -1.442695, %v2901_v58 }
 0xf2c   :  { %5086 = vtanh.f32 %v2902_v30 }
 0xf2d   :  { %5088 = vpow2.f32 %v4528_v1 }
 0xf35   :  { %v5085_v29 = vpop.eup %5084 }
 0xf36   :  { %v5087_v12 = vpop.eup %5086  ;;  %2917 = vrot.lane.b32.xlu0 %v5085_v29, %s5249_s13  ;;  %v2912_v29 = vrot.slane %v5758_v4, 6 }
 0xf37   :  { %2919 = vrot.lane.b32.xlu1 %v5087_v12, %s5249_s13  ;;  %v5089_v48 = vpop.eup %5088 }
 0xf38   :  { %v2261_v53 = vadd.f32 1.0, %v5089_v48 }
 0xf3a   :  { %5090 = vrcp.f32 %v2261_v53 }
 0xf3b   :  { %5092 = vpow2.f32 %v4533_v20 }
 0xf3c   :  { %5094 = vpow2.f32 %v4538_v22 }
 0xf44   :  { %v5091_v47 = vpop.eup %5090 }
 0xf45   :  { %v5093_v13 = vpop.eup %5092  ;;  %v2266_v54 = vmul.f32 %v5091_v47, %v5748_v61 }
 0xf46   :  { %v2581_v62 = vadd.f32 1.0, %v5093_v13  ;;  %v5095_v63 = vpop.eup %5094  ;;  %v3340_v13 = vld [vmem:[#allocation2 + $0x18] sm:$0x30] }
 0xf47   :  { %v2906_v39 = vadd.f32 1.0, %v5095_v63 }
 0xf48   :  { %5096 = vrcp.f32 %v2581_v62 }
 0xf49   :  { %5098 = vrcp.f32 %v2906_v39 }
 0xf52   :  { %v5097_v8 = vpop.eup %5096 }
 0xf53   :  { %v5099_v24 = vpop.eup %5098  ;;  %v2586_v3 = vmul.f32 %v5097_v8, %v5754_v15 }
 0xf54   :  { %v2914_v12 = vmul.f32 %v5099_v24, %v2912_v29 }
 0xf88   :  { %v2270_v21 = vpop.permute.xlu0 %2269 }
 0xf89   :  { %v2272_v2 = vpop.permute.xlu1 %2271 }
 0xf8a   :  { %v2273_v14 = vsel %vm269_vm2, %v2270_v21, %v2272_v2 }
 0xf8b   :  { %v2275_v33 = vmul.f32 %v5091_v47, %v2273_v14 }
 0xf8d   :  { %2277 = vrot.lane.b32.xlu0 %v2275_v33, %s5250_s14 }
 0xf9c   :  { %v2590_v60 = vpop.permute.xlu0 %2589 }
 0xf9d   :  { %v2592_v40 = vpop.permute.xlu1 %2591 }
 0xf9e   :  { %v2593_v41 = vsel %vm269_vm2, %v2590_v60, %v2592_v40 }
 0xf9f   :  { %v2595_v42 = vmul.f32 %v5097_v8, %v2593_v41 }
 0xfa1   :  { %2597 = vrot.lane.b32.xlu1 %v2595_v42, %s5250_s14 }
 0xfa8   :  { %v2918_v17 = vpop.permute.xlu0 %2917 }
 0xfa9   :  { %v2920_v43 = vpop.permute.xlu1 %2919 }
 0xfaa   :  { %v2921_v44 = vsel %vm269_vm2, %v2918_v17, %v2920_v43 }
 0xfab   :  { %v2923_v49 = vmul.f32 %v5099_v24, %v2921_v44 }
 0xfad   :  { %2925 = vrot.lane.b32.xlu0 %v2923_v49, %s5250_s14 }
 0xfff   :  { %v2278_v56 = vpop.permute.xlu0 %2277 }
0x1000   :  { %v5864_v57 = vadd.f32 %v2278_v56, %v2266_v54 }
0x1002   :  { %5100 = vtanh.f32 %v5864_v57 }
0x100c   :  { %v5101_v58 = vpop.eup %5100 }
0x100d   :  { %2283 = vrot.lane.b32.xlu1 %v5101_v58, %s5250_s14 }
0x1013   :  { %v2598_v31 = vpop.permute.xlu1 %2597 }
0x1014   :  { %v5869_v30 = vadd.f32 %v2598_v31, %v2586_v3 }
0x1016   :  { %5102 = vtanh.f32 %v5869_v30 }
0x101f   :  { %v2926_v1 = vpop.permute.xlu0 %2925 }
0x1020   :  { %v5103_v61 = vpop.eup %5102  ;;  %v5873_v48 = vadd.f32 %v2926_v1, %v2914_v12 }
0x1021   :  { %2603 = vrot.lane.b32.xlu0 %v5103_v61, %s5250_s14 }
0x1022   :  { %5104 = vtanh.f32 %v5873_v48 }
0x102c   :  { %v5105_v53 = vpop.eup %5104 }
0x102d   :  { %2931 = vrot.lane.b32.xlu1 %v5105_v53, %s5250_s14 }
0x107f   :  { %v2284_v15 = vpop.permute.xlu1 %2283 }
0x1080   :  { %v2286_v20 = vmul.f32 %v5091_v47, %v2284_v15 }
0x1082   :  { %2288 = vrot.lane.b32.xlu0 %v2286_v20, %s5251_s0 }
0x1093   :  { %v2604_v21 = vpop.permute.xlu0 %2603 }
0x1094   :  { %v2606_v2 = vmul.f32 %v5097_v8, %v2604_v21 }
0x1096   :  { %2701 = vrot.lane.b32.xlu1 %v2606_v2, %s5251_s0 }
0x109f   :  { %v2932_v4 = vpop.permute.xlu1 %2931 }
0x10a0   :  { %v2934_v14 = vmul.f32 %v5099_v24, %v2932_v4 }
0x10a2   :  { %v3027_v22 = vrot.slane %v2934_v14, 2 }
0x10a4   :  { %3028 = vrot.lane.b32.xlu0 %v3027_v22, %s5251_s0 }
0x10f4   :  { %v2289_v33 = vpop.permute.xlu0 %2288 }
0x10f5   :  { %2291 = vst.msk [vmem:[#allocation3 + $0x6] sm:$0x3] %vm709_vm4, %v2289_v33  ;;  %4534 = vmatmul.mubr.msk.f32.vlgmr.msra.gmra.mrb[14].mxu1 %vm177_vm3, %v2289_v33 }
0x10f6   :  { %4783 = vmatpush1.bf16.msra.mxu1 %v5796_v10  ;;  %2769 = vmatprep.mubr.f32.mxu1 %v5248_v0 }
0x10f7   :  { %4785 = vmatprep.subr.bf16.mxu1 %v5798_v11 }
0x10fa   :  { %4787 = vmatpush1.bf16.msra.mxu1 %v5803_v32 }
0x10fb   :  { %2713 = vmatprep.subr.mxu1 %v5807_v19 }
0x10fe   :  { %2714 = vmatpush1.msra.mxu1 %v5811_v25 }
0x10ff   :  { %4797 = vmatprep.subr.bf16.mxu1 %v5661_v23 }
0x1108   :  { %v2702_v47 = vpop.permute.xlu1 %2701 }
0x1109   :  { %4535 = vmatmul.mubr.msk.f32.vlgmr.msra.gmra.mrb[14].mxu1 %vm177_vm3, %v2702_v47 }
0x110a   :  { %4799 = vmatpush1.bf16.msra.mxu1 %v5665_v37  ;;  %3019 = vmatprep.mubr.f32.mxu1 %v5248_v0 }
0x110b   :  { %4801 = vmatprep.subr.bf16.mxu1 %v5667_v38 }
0x110e   :  { %4803 = vmatpush1.bf16.msra.mxu1 %v5671_v6 }
0x110f   :  { %2963 = vmatprep.subr.mxu1 %v5675_v7 }
0x1112   :  { %2964 = vmatpush1.msra.mxu1 %v5679_v26 }
0x1113   :  { %4539 = vmatmul.mubr.msk.f32.vlgmr.msra.gmra.mrb[16].mxu1 %vm177_vm3, %v2702_v47  ;;  %4805 = vmatprep.subr.bf16.mxu1 %v5681_v51 }
0x1114   :  { %4807 = vmatpush1.bf16.msra.mxu1 %v5683_v45  ;;  %3096 = vmatprep.mubr.f32.mxu1 %v5248_v0 }
0x1115   :  { %4809 = vmatprep.subr.bf16.mxu1 %v5685_v46 }
0x1116   :  { %v3029_v23 = vpop.permute.xlu0 %3028 }
0x1118   :  { %4811 = vmatpush1.bf16.msra.mxu1 %v5691_v50 }
0x1119   :  { %3040 = vmatprep.subr.mxu1 %v5695_v52 }
0x111c   :  { %3041 = vmatpush1.msra.mxu1 %v5699_v5 }
0x111d   :  { %4540 = vmatmul.mubr.msk.f32.vlgmr.msra.gmra.mrb[16].mxu1 %vm177_vm3, %v3029_v23  ;;  %4829 = vmatprep.subr.bf16.mxu1 %v5701_v16 }
0x111e   :  { %4831 = vmatpush1.bf16.msra.mxu1 %v5703_v18  ;;  %3415 = vmatprep.mubr.f32.mxu1 %v5248_v0 }
0x111f   :  { %4833 = vmatprep.subr.bf16.mxu1 %v5705_v27  ;;  %v3339_v27 = vld [vmem:[#allocation2 + $0x10] sm:$0x30] }
0x1122   :  { %4835 = vmatpush1.bf16.msra.mxu1 %v5711_v55 }
0x1123   :  { %3359 = vmatprep.subr.mxu1 %v5715_v59 }
0x1126   :  { %3360 = vmatpush1.msra.mxu1 %v5719_v9 }
0x1127   :  { %4545 = vmatmul.mubr.msk.f32.vlgmr.msra.gmra.mrb[18].mxu1 %vm177_vm3, %v3029_v23 }
0x1128   :  { %3747 = vmatprep.mubr.f32.mxu1 %v5248_v0 }
0x11dc   :  { %v2771_v37 = vpop.f32.mrb[14].mxu1 }
0x11dd   :  { %v2776_v38 = vadd.f32 %v2771_v37, %v5548_v34  ;;  %v2773_v6 = vpop.f32.mrb[15].mxu1 }
0x11de   :  { %v2777_v7 = vadd.f32 %v2773_v6, %v5551_v35  ;;  %v3439_v6 = vrot.slane %v5873_v48, 6 }
0x11df   :  { %5106 = vtanh.f32 %v2776_v38  ;;  %v4536_v40 = vmul.f32 -1.442695, %v2776_v38 }
0x11e0   :  { %5108 = vtanh.f32 %v2777_v7 }
0x11e9   :  { %v5107_v26 = vpop.eup %5106 }
0x11ea   :  { %v5109_v51 = vpop.eup %5108  ;;  %2789 = vrot.lane.b32.xlu1 %v5107_v26, %s5249_s13 }
0x11eb   :  { %2791 = vrot.lane.b32.xlu0 %v5109_v51, %s5249_s13 }
0x11f0   :  { %v3098_v45 = vpop.f32.mrb[16].mxu1 }
0x11f1   :  { %v3103_v46 = vadd.f32 %v3098_v45, %v5440_v28  ;;  %v3100_v50 = vpop.f32.mrb[17].mxu1 }
0x11f2   :  { %v3104_v52 = vadd.f32 %v3100_v50, %v5443_v36 }
0x11f3   :  { %5110 = vtanh.f32 %v3103_v46  ;;  %v4541_v42 = vmul.f32 -1.442695, %v3103_v46 }
0x11f4   :  { %5112 = vtanh.f32 %v3104_v52 }
0x11fa   :  { %v3417_v5 = vpop.f32.mrb[18].mxu1 }
0x11fb   :  { %v3424_v16 = vrot.slane %v3417_v5, 4  ;;  %v3419_v18 = vpop.f32.mrb[19].mxu1 }
0x11fc   :  { %v3425_v55 = vrot.slane %v3419_v18, 4 }
0x11fd   :  { %v5111_v59 = vpop.eup %5110  ;;  %v3428_v9 = vadd.f32 %v3424_v16, %v3339_v27  ;;  %v3473_v27 = vld [vmem:[#allocation6 + $0x58] sm:$0xff] }
0x11fe   :  { %v5113_v62 = vpop.eup %5112  ;;  %v3429_v63 = vadd.f32 %v3425_v55, %v3340_v13  ;;  %3116 = vrot.lane.b32.xlu1 %v5111_v59, %s5249_s13  ;;  %v3475_v55 = vld [vmem:[#allocation6 + $0x68] sm:$0xff]  ;;  %v3474_v13 = vld [vmem:[#allocation6 + $0x60] sm:$0xff] }
0x11ff   :  { %5114 = vtanh.f32 %v3428_v9  ;;  %3118 = vrot.lane.b32.xlu0 %v5113_v62, %s5249_s13  ;;  %v4546_v49 = vmul.f32 -1.442695, %v3428_v9  ;;  %v5956_v59 = vpack.c.bf16 %v3475_v55, %v3473_v27  ;;  %v3472_v9 = vld [vmem:[#allocation6 + $0x50] sm:$0xff]  ;;  %v3477_v62 = vld [vmem:[#allocation6 + $0x78] sm:$0xff]  ;;  %v3866_v55 = vld [vmem:[#allocation2 + $0x10] sm:$0xc0] }
0x1200   :  { %5116 = vtanh.f32 %v3429_v63  ;;  %v5960_v63 = vpack.c.bf16 %v3474_v13, %v3472_v9 }
0x1201   :  { %5118 = vpow2.f32 %v4536_v40 }
0x1209   :  { %v5115_v39 = vpop.eup %5114 }
0x120a   :  { %v5117_v60 = vpop.eup %5116  ;;  %3444 = vrot.lane.b32.xlu1 %v5115_v39, %s5249_s13 }
0x120b   :  { %3446 = vrot.lane.b32.xlu0 %v5117_v60, %s5249_s13  ;;  %v5119_v8 = vpop.eup %5118  ;;  %v3478_v60 = vld [vmem:[#allocation6 + $0x80] sm:$0xff] }
0x120c   :  { %v2781_v41 = vadd.f32 1.0, %v5119_v8  ;;  %v3465_v8 = vld [vmem:[#allocation4 + $0x18] sm:$0xff] }
0x120e   :  { %5120 = vrcp.f32 %v2781_v41  ;;  %v3462_v41 = vld [vmem:[#allocation4] sm:$0xff] }
0x120f   :  { %5122 = vpow2.f32 %v4541_v42  ;;  %v3464_v42 = vld [vmem:[#allocation4 + $0x10] sm:$0xff] }
0x1210   :  { %5124 = vpow2.f32 %v4546_v49  ;;  %v5978_v49 = vpack.c.bf16 %v3464_v42, %v3462_v41 }
0x1218   :  { %v5121_v24 = vpop.eup %5120 }
0x1219   :  { %v5123_v56 = vpop.eup %5122  ;;  %v2786_v14 = vmul.f32 %v5121_v24, %v5864_v57 }
0x121a   :  { %v3108_v58 = vadd.f32 1.0, %v5123_v56  ;;  %v5125_v3 = vpop.eup %5124  ;;  %v3466_v56 = vld [vmem:[#allocation4 + $0x20] sm:$0xff] }
0x121b   :  { %v3433_v31 = vadd.f32 1.0, %v5125_v3 }
0x121c   :  { %5126 = vrcp.f32 %v3108_v58  ;;  %v3468_v58 = vld [vmem:[#allocation4 + $0x30] sm:$0xff] }
0x121d   :  { %5128 = vrcp.f32 %v3433_v31  ;;  %v5986_v3 = vpack.c.bf16 %v3468_v58, %v3466_v56  ;;  %v5990_v31 = vld [vmem:[#allocation4 + $0x48] sm:$0xff] }
0x1226   :  { %v5127_v1 = vpop.eup %5126 }
0x1227   :  { %v5129_v21 = vpop.eup %5128  ;;  %v3113_v23 = vmul.f32 %v5127_v1, %v5869_v30 }
0x1228   :  { %v3441_v7 = vmul.f32 %v5129_v21, %v3439_v6  ;;  %v3876_v6 = vld [vmem:[#allocation6 + $0x40] sm:$0xff] }
0x125c   :  { %v2790_v17 = vpop.permute.xlu1 %2789 }
0x125d   :  { %v2792_v43 = vpop.permute.xlu0 %2791 }
0x125e   :  { %v2793_v44 = vsel %vm269_vm2, %v2790_v17, %v2792_v43  ;;  %v3467_v17 = vld [vmem:[#allocation4 + $0x28] sm:$0xff]  ;;  %v3469_v43 = vld [vmem:[#allocation4 + $0x38] sm:$0xff] }
0x125f   :  { %v2795_v54 = vmul.f32 %v5121_v24, %v2793_v44 }
0x1261   :  { %2797 = vrot.lane.b32.xlu1 %v2795_v54, %s5250_s14  ;;  %v5980_v54 = vpack.c.bf16 %v3469_v43, %v3467_v17 }
0x1270   :  { %v3117_v29 = vpop.permute.xlu1 %3116 }
0x1271   :  { %v3119_v12 = vpop.permute.xlu0 %3118 }
0x1272   :  { %v3120_v61 = vsel %vm269_vm2, %v3117_v29, %v3119_v12  ;;  %v3869_v29 = vld [vmem:[#allocation6 + $0x8] sm:$0xff]  ;;  %v3871_v12 = vld [vmem:[#allocation6 + $0x18] sm:$0xff] }
0x1273   :  { %v3122_v53 = vmul.f32 %v5127_v1, %v3120_v61  ;;  %v3870_v61 = vld [vmem:[#allocation6 + $0x10] sm:$0xff] }
0x1275   :  { %3124 = vrot.lane.b32.xlu0 %v3122_v53, %s5250_s14  ;;  %v3873_v53 = vld [vmem:[#allocation6 + $0x28] sm:$0xff] }
0x127c   :  { %v3445_v15 = vpop.permute.xlu1 %3444 }
0x127d   :  { %v3447_v20 = vpop.permute.xlu0 %3446 }
0x127e   :  { %v3448_v2 = vsel %vm269_vm2, %v3445_v15, %v3447_v20  ;;  %v3875_v15 = vld [vmem:[#allocation6 + $0x38] sm:$0xff]  ;;  %v5994_v20 = vld [vmem:[#allocation4 + $0x40] sm:$0xff] }
0x127f   :  { %v3450_v4 = vmul.f32 %v5129_v21, %v3448_v2 }
0x1281   :  { %3452 = vrot.lane.b32.xlu1 %v3450_v4, %s5250_s14  ;;  %v4872_v4 = vpack.c.bf16 %v3875_v15, %v3873_v53 }
0x12d3   :  { %v2798_v22 = vpop.permute.xlu1 %2797 }
0x12d4   :  { %v5932_v33 = vadd.f32 %v2798_v22, %v2786_v14  ;;  %v3872_v14 = vld [vmem:[#allocation6 + $0x20] sm:$0xff]  ;;  %v3874_v22 = vld [vmem:[#allocation6 + $0x30] sm:$0xff] }
0x12d6   :  { %5130 = vtanh.f32 %v5932_v33 }
0x12e0   :  { %v5131_v47 = vpop.eup %5130 }
0x12e1   :  { %2803 = vrot.lane.b32.xlu0 %v5131_v47, %s5250_s14 }
0x12e7   :  { %v3125_v37 = vpop.permute.xlu0 %3124 }
0x12e8   :  { %v5937_v38 = vadd.f32 %v3125_v37, %v3113_v23  ;;  %v4874_v23 = vpack.c.bf16 %v3874_v22, %v3872_v14  ;;  %v3877_v37 = vld [vmem:[#allocation6 + $0x48] sm:$0xff] }
0x12ea   :  { %5132 = vtanh.f32 %v5937_v38 }
0x12f3   :  { %v3453_v26 = vpop.permute.xlu1 %3452 }
0x12f4   :  { %v5133_v57 = vpop.eup %5132  ;;  %v5941_v51 = vadd.f32 %v3453_v26, %v3441_v7 }
0x12f5   :  { %3130 = vrot.lane.b32.xlu1 %v5133_v57, %s5250_s14 }
0x12f6   :  { %5134 = vtanh.f32 %v5941_v51 }
0x1300   :  { %v5135_v45 = vpop.eup %5134 }
0x1301   :  { %3458 = vrot.lane.b32.xlu0 %v5135_v45, %s5250_s14 }
0x1353   :  { %v2804_v30 = vpop.permute.xlu0 %2803 }
0x1354   :  { %v2806_v46 = vmul.f32 %v5121_v24, %v2804_v30  ;;  %v5974_v24 = vld [vmem:[#allocation6 + $0x90] sm:$0xff] }
0x1356   :  { %2808 = vrot.lane.b32.xlu1 %v2806_v46, %s5251_s0 }
0x1367   :  { %v3131_v50 = vpop.permute.xlu1 %3130 }
0x1368   :  { %v3133_v52 = vmul.f32 %v5127_v1, %v3131_v50  ;;  %v3868_v1 = vld [vmem:[#allocation6] sm:$0xff] }
0x1369   :  { %v4870_v2 = vpack.c.bf16 %v3870_v61, %v3868_v1 }
0x136a   :  { %3228 = vrot.lane.b32.xlu0 %v3133_v52, %s5251_s0 }
0x1373   :  { %v3459_v48 = vpop.permute.xlu0 %3458 }
0x1374   :  { %v3461_v5 = vmul.f32 %v5129_v21, %v3459_v48  ;;  %v4868_v21 = vpack.c.bf16 %v3871_v12, %v3869_v29 }
0x1376   :  { %v3554_v16 = vrot.slane %v3461_v5, 4 }
0x1378   :  { %3555 = vrot.lane.b32.xlu1 %v3554_v16, %s5251_s0 }
0x13c8   :  { %v2809_v18 = vpop.permute.xlu1 %2808 }
0x13c9   :  { %2811 = vst.msk [vmem:[#allocation3 + $0x8] sm:$0x3] %vm709_vm4, %v2809_v18  ;;  %4542 = vmatmul.mubr.msk.f32.vlgmr.msra.gmra.mrb[20].mxu0 %vm177_vm3, %v2809_v18 }
0x13ca   :  { %4823 = vmatpush1.bf16.msra.mxu0 %v5796_v10  ;;  %3296 = vmatprep.mubr.f32.mxu0 %v5248_v0  ;;  %v3479_v10 = vld [vmem:[#allocation6 + $0x88] sm:$0xff] }
0x13cb   :  { %4825 = vmatprep.subr.bf16.mxu0 %v5798_v11  ;;  %v5962_v39 = vpack.c.bf16 %v3479_v10, %v3477_v62  ;;  %v3476_v11 = vld [vmem:[#allocation6 + $0x70] sm:$0xff]  ;;  %v3867_v10 = vld [vmem:[#allocation2 + $0x18] sm:$0xc0] }
0x13ce   :  { %4827 = vmatpush1.bf16.msra.mxu0 %v5803_v32  ;;  %v5966_v32 = vpack.c.bf16 %v3478_v60, %v3476_v11 }
0x13cf   :  { %3240 = vmatprep.subr.mxu0 %v5807_v19  ;;  %v5970_v19 = vld [vmem:[#allocation6 + $0x98] sm:$0xff] }
0x13d2   :  { %3241 = vmatpush1.msra.mxu0 %v5811_v25  ;;  %v3463_v25 = vld [vmem:[#allocation4 + $0x8] sm:$0xff] }
0x13d3   :  { %4837 = vmatprep.subr.bf16.mxu0 %v5956_v59  ;;  %v5976_v44 = vpack.c.bf16 %v3465_v8, %v3463_v25 }
0x13dc   :  { %v3229_v40 = vpop.permute.xlu0 %3228 }
0x13dd   :  { %4543 = vmatmul.mubr.msk.f32.vlgmr.msra.gmra.mrb[20].mxu0 %vm177_vm3, %v3229_v40 }
0x13de   :  { %4839 = vmatpush1.bf16.msra.mxu0 %v5960_v63  ;;  %3546 = vmatprep.mubr.f32.mxu0 %v5248_v0 }
0x13df   :  { %4841 = vmatprep.subr.bf16.mxu0 %v5962_v39 }
0x13e2   :  { %4843 = vmatpush1.bf16.msra.mxu0 %v5966_v32 }
0x13e3   :  { %3490 = vmatprep.subr.mxu0 %v5970_v19 }
0x13e6   :  { %3491 = vmatpush1.msra.mxu0 %v5974_v24 }
0x13e7   :  { %4547 = vmatmul.mubr.msk.f32.vlgmr.msra.gmra.mrb[22].mxu0 %vm177_vm3, %v3229_v40  ;;  %4845 = vmatprep.subr.bf16.mxu0 %v5976_v44 }
0x13e8   :  { %4847 = vmatpush1.bf16.msra.mxu0 %v5978_v49  ;;  %3623 = vmatprep.mubr.f32.mxu0 %v5248_v0 }
0x13e9   :  { %4849 = vmatprep.subr.bf16.mxu0 %v5980_v54 }
0x13ea   :  { %v3556_v47 = vpop.permute.xlu1 %3555 }
0x13ec   :  { %4851 = vmatpush1.bf16.msra.mxu0 %v5986_v3 }
0x13ed   :  { %3567 = vmatprep.subr.mxu0 %v5990_v31 }
0x13f0   :  { %3568 = vmatpush1.msra.mxu0 %v5994_v20 }
0x13f1   :  { %4548 = vmatmul.mubr.msk.f32.vlgmr.msra.gmra.mrb[22].mxu0 %vm177_vm3, %v3556_v47  ;;  %4869 = vmatprep.subr.bf16.mxu0 %v4868_v21 }
0x13f2   :  { %4871 = vmatpush1.bf16.msra.mxu0 %v4870_v2  ;;  %3942 = vmatprep.mubr.f32.mxu0 %v5248_v0 }
0x13f3   :  { %4873 = vmatprep.subr.bf16.mxu0 %v4872_v4 }
0x13f6   :  { %4875 = vmatpush1.bf16.msra.mxu0 %v4874_v23 }
0x13f7   :  { %3886 = vmatprep.subr.mxu0 %v3877_v37 }
0x13fa   :  { %3887 = vmatpush1.msra.mxu0 %v3876_v6 }
0x13fb   :  { %4553 = vmatmul.mubr.msk.f32.vlgmr.msra.gmra.mrb[24].mxu0 %vm177_vm3, %v3556_v47 }
0x13fc   :  { %4274 = vmatprep.mubr.f32.mxu0 %v5248_v0 }
0x14b0   :  { %v3298_v7 = vpop.f32.mrb[20].mxu0 }
0x14b1   :  { %v3303_v26 = vadd.f32 %v3298_v7, %v5548_v34  ;;  %v3300_v57 = vpop.f32.mrb[21].mxu0 }
0x14b2   :  { %v3304_v45 = vadd.f32 %v3300_v57, %v5551_v35 }
0x14b3   :  { %5136 = vtanh.f32 %v3303_v26  ;;  %v4544_v8 = vmul.f32 -1.442695, %v3303_v26 }
0x14b4   :  { %5138 = vtanh.f32 %v3304_v45 }
0x14bd   :  { %v5137_v30 = vpop.eup %5136 }
0x14be   :  { %v5139_v46 = vpop.eup %5138  ;;  %3316 = vrot.lane.b32.xlu0 %v5137_v30, %s5249_s13 }
0x14bf   :  { %3318 = vrot.lane.b32.xlu1 %v5139_v46, %s5249_s13 }
0x14c4   :  { %v3625_v50 = vpop.f32.mrb[22].mxu0 }
0x14c5   :  { %v3630_v52 = vadd.f32 %v3625_v50, %v5440_v28  ;;  %v3627_v48 = vpop.f32.mrb[23].mxu0 }
0x14c6   :  { %v3631_v5 = vadd.f32 %v3627_v48, %v5443_v36 }
0x14c7   :  { %5140 = vtanh.f32 %v3630_v52  ;;  %v4549_v17 = vmul.f32 -1.442695, %v3630_v52 }
0x14c8   :  { %5142 = vtanh.f32 %v3631_v5  ;;  %v3966_v5 = vrot.slane %v5941_v51, 6 }
0x14ce   :  { %v3944_v16 = vpop.f32.mrb[24].mxu0 }
0x14cf   :  { %v3951_v18 = vrot.slane %v3944_v16, 2  ;;  %v3946_v27 = vpop.f32.mrb[25].mxu0 }
0x14d0   :  { %v3952_v9 = vrot.slane %v3946_v27, 2 }
0x14d1   :  { %v5141_v13 = vpop.eup %5140  ;;  %v3955_v62 = vadd.f32 %v3951_v18, %v3866_v55  ;;  %v3672_v55 = vld [vmem:[#allocation6 + $0xa8] sm:$0xff] }
0x14d2   :  { %v5143_v11 = vpop.eup %5142  ;;  %v3956_v60 = vadd.f32 %v3952_v9, %v3867_v10  ;;  %3643 = vrot.lane.b32.xlu0 %v5141_v13, %s5249_s13  ;;  %v3674_v9 = vld [vmem:[#allocation6 + $0xb8] sm:$0xff]  ;;  %v3671_v13 = vld [vmem:[#allocation6 + $0xa0] sm:$0xff]  ;;  %v3673_v10 = vld [vmem:[#allocation6 + $0xb0] sm:$0xff] }
0x14d3   :  { %5144 = vtanh.f32 %v3955_v62  ;;  %3645 = vrot.lane.b32.xlu1 %v5143_v11, %s5249_s13  ;;  %v4554_v12 = vmul.f32 -1.442695, %v3955_v62  ;;  %v4852_v62 = vpack.c.bf16 %v3674_v9, %v3672_v55  ;;  %v3678_v11 = vld [vmem:[#allocation6 + $0xd8] sm:$0xff] }
0x14d4   :  { %5146 = vtanh.f32 %v3956_v60  ;;  %v4854_v60 = vpack.c.bf16 %v3673_v10, %v3671_v13 }
0x14d5   :  { %5148 = vpow2.f32 %v4544_v8  ;;  %v3677_v8 = vld [vmem:[#allocation6 + $0xd0] sm:$0xff]  ;;  %4853 = vmatprep.subr.bf16.mxu1 %v4852_v62  ;;  %4893 = vmatprep.subr.bf16.mxu0 %v4852_v62 }
0x14d6   :  { %4855 = vmatpush1.bf16.msra.mxu1 %v4854_v60  ;;  %4895 = vmatpush1.bf16.msra.mxu0 %v4854_v60 }
0x14dd   :  { %v5145_v40 = vpop.eup %5144 }
0x14de   :  { %v5147_v25 = vpop.eup %5146  ;;  %3971 = vrot.lane.b32.xlu0 %v5145_v40, %s5249_s13 }
0x14df   :  { %3973 = vrot.lane.b32.xlu1 %v5147_v25, %s5249_s13  ;;  %v5149_v41 = vpop.eup %5148  ;;  %v3675_v25 = vld [vmem:[#allocation6 + $0xc0] sm:$0xff] }
0x14e0   :  { %v3308_v42 = vadd.f32 1.0, %v5149_v41  ;;  %v4858_v51 = vpack.c.bf16 %v3677_v8, %v3675_v25  ;;  %v3680_v41 = vld [vmem:[#allocation6 + $0xe8] sm:$0xff] }
0x14e2   :  { %5150 = vrcp.f32 %v3308_v42 }
0x14e3   :  { %5152 = vpow2.f32 %v4549_v17  ;;  %v3679_v17 = vld [vmem:[#allocation6 + $0xe0] sm:$0xff] }
0x14e4   :  { %5154 = vpow2.f32 %v4554_v12 }
0x14ec   :  { %v6011_v58 = vpop.eup %5150 }
0x14ed   :  { %v5153_v61 = vpop.eup %5152  ;;  %v3313_v57 = vmul.f32 %v6011_v58, %v5932_v33 }
0x14ee   :  { %v3635_v53 = vadd.f32 1.0, %v5153_v61  ;;  %v5155_v15 = vpop.eup %5154 }
0x14ef   :  { %v3960_v21 = vadd.f32 1.0, %v5155_v15 }
0x14f0   :  { %5156 = vrcp.f32 %v3635_v53 }
0x14f1   :  { %5158 = vrcp.f32 %v3960_v21 }
0x14fa   :  { %v6016_v14 = vpop.eup %5156 }
0x14fb   :  { %v5159_v6 = vpop.eup %5158  ;;  %v3640_v50 = vmul.f32 %v6016_v14, %v5937_v38  ;;  %v3676_v38 = vld [vmem:[#allocation6 + $0xc8] sm:$0xff] }
0x14fc   :  { %v3968_v16 = vmul.f32 %v5159_v6, %v3966_v5  ;;  %v4856_v40 = vpack.c.bf16 %v3678_v11, %v3676_v38 }
0x14fe   :  { %4857 = vmatprep.subr.bf16.mxu1 %v4856_v40  ;;  %4897 = vmatprep.subr.bf16.mxu0 %v4856_v40 }
0x14ff   :  { %4859 = vmatpush1.bf16.msra.mxu1 %v4858_v51  ;;  %4899 = vmatpush1.bf16.msra.mxu0 %v4858_v51 }
0x1500   :  { %3691 = vmatprep.subr.mxu1 %v3680_v41  ;;  %4218 = vmatprep.subr.mxu0 %v3680_v41 }
0x1503   :  { %3692 = vmatpush1.msra.mxu1 %v3679_v17  ;;  %4219 = vmatpush1.msra.mxu0 %v3679_v17 }
0x1530   :  { %v3317_v43 = vpop.permute.xlu0 %3316 }
0x1531   :  { %v3319_v56 = vpop.permute.xlu1 %3318 }
0x1532   :  { %v3320_v29 = vsel %vm269_vm2, %v3317_v43, %v3319_v56  ;;  %v3662_v43 = vld [vmem:[#allocation4 + $0x58] sm:$0xff]  ;;  %v3664_v56 = vld [vmem:[#allocation4 + $0x68] sm:$0xff] }
0x1533   :  { %v3322_v1 = vmul.f32 %v6011_v58, %v3320_v29  ;;  %v4860_v29 = vpack.c.bf16 %v3664_v56, %v3662_v43 }
0x1535   :  { %3324 = vrot.lane.b32.xlu0 %v3322_v1, %s5250_s14  ;;  %4861 = vmatprep.subr.bf16.mxu1 %v4860_v29 }
0x1536   :  { %4901 = vmatprep.subr.bf16.mxu0 %v4860_v29 }
0x1544   :  { %v3644_v2 = vpop.permute.xlu0 %3643 }
0x1545   :  { %v3646_v4 = vpop.permute.xlu1 %3645 }
0x1546   :  { %v3647_v22 = vsel %vm269_vm2, %v3644_v2, %v3646_v4  ;;  %v3661_v4 = vld [vmem:[#allocation4 + $0x50] sm:$0xff] }
0x1547   :  { %v3649_v47 = vmul.f32 %v6016_v14, %v3647_v22  ;;  %v3663_v22 = vld [vmem:[#allocation4 + $0x60] sm:$0xff] }
0x1549   :  { %3651 = vrot.lane.b32.xlu1 %v3649_v47, %s5250_s14  ;;  %v3666_v47 = vld [vmem:[#allocation4 + $0x78] sm:$0xff] }
0x1550   :  { %v3972_v23 = vpop.permute.xlu0 %3971 }
0x1551   :  { %v3974_v37 = vpop.permute.xlu1 %3973 }
0x1552   :  { %v3975_v7 = vsel %vm269_vm2, %v3972_v23, %v3974_v37  ;;  %v3668_v23 = vld [vmem:[#allocation4 + $0x88] sm:$0xff]  ;;  %v6042_v37 = vpack.c.bf16 %v3663_v22, %v3661_v4 }
0x1553   :  { %v3977_v26 = vmul.f32 %v5159_v6, %v3975_v7  ;;  %v6044_v7 = vpack.c.bf16 %v3668_v23, %v3666_v47 }
0x1555   :  { %3979 = vrot.lane.b32.xlu0 %v3977_v26, %s5250_s14  ;;  %v3667_v26 = vld [vmem:[#allocation4 + $0x80] sm:$0xff] }
0x15a7   :  { %v3325_v45 = vpop.permute.xlu0 %3324 }
0x15a8   :  { %v6025_v30 = vadd.f32 %v3325_v45, %v3313_v57  ;;  %v6057_v45 = vld [vmem:[#allocation4 + $0x90] sm:$0xff] }
0x15aa   :  { %5160 = vtanh.f32 %v6025_v30 }
0x15b4   :  { %v5161_v46 = vpop.eup %5160 }
0x15b5   :  { %3330 = vrot.lane.b32.xlu1 %v5161_v46, %s5250_s14 }
0x15bb   :  { %v3652_v52 = vpop.permute.xlu1 %3651 }
0x15bc   :  { %v6031_v48 = vadd.f32 %v3652_v52, %v3640_v50 }
0x15be   :  { %5162 = vtanh.f32 %v6031_v48 }
0x15c7   :  { %v3980_v33 = vpop.permute.xlu0 %3979 }
0x15c8   :  { %v5163_v18 = vpop.eup %5162  ;;  %v3982_v27 = vadd.f32 %v3980_v33, %v3968_v16 }
0x15c9   :  { %3657 = vrot.lane.b32.xlu0 %v5163_v18, %s5250_s14 }
0x15ca   :  { %5164 = vtanh.f32 %v3982_v27 }
0x15d4   :  { %v5165_v42 = vpop.eup %5164 }
0x15d5   :  { %3985 = vrot.lane.b32.xlu1 %v5165_v42, %s5250_s14 }
0x1627   :  { %v3331_v12 = vpop.permute.xlu1 %3330 }
0x1628   :  { %v3333_v1 = vmul.f32 %v6011_v58, %v3331_v12  ;;  %v3665_v58 = vld [vmem:[#allocation4 + $0x70] sm:$0xff] }
0x162a   :  { %3335 = vrot.lane.b32.xlu0 %v3333_v1, %s5251_s0 }
0x163b   :  { %v3658_v61 = vpop.permute.xlu0 %3657 }
0x163c   :  { %v3660_v53 = vmul.f32 %v6016_v14, %v3658_v61  ;;  %v6049_v14 = vpack.c.bf16 %v3667_v26, %v3665_v58 }
0x163e   :  { %3755 = vrot.lane.b32.xlu1 %v3660_v53, %s5251_s0 }
0x1647   :  { %v3986_v15 = vpop.permute.xlu1 %3985 }
0x1648   :  { %v3988_v21 = vmul.f32 %v5159_v6, %v3986_v15  ;;  %v6053_v6 = vld [vmem:[#allocation4 + $0x98] sm:$0xff] }
0x164a   :  { %v4081_v2 = vrot.slane %v3988_v21, 6 }
0x164c   :  { %4082 = vrot.lane.b32.xlu0 %v4081_v2, %s5251_s0 }
0x169c   :  { %v3336_v57 = vpop.permute.xlu0 %3335 }
0x169d   :  { %3338 = vst.msk [vmem:[#allocation3 + $0xa] sm:$0x3] %vm709_vm4, %v3336_v57  ;;  %4550 = vmatmul.mubr.msk.f32.vlgmr.msra.gmra.mrb[20].mxu1 %vm177_vm3, %v3336_v57 }
0x169e   :  { %4863 = vmatpush1.bf16.msra.mxu1 %v6042_v37  ;;  %3823 = vmatprep.mubr.f32.mxu1 %v5248_v0 }
0x169f   :  { %4865 = vmatprep.subr.bf16.mxu1 %v6044_v7 }
0x16a2   :  { %4867 = vmatpush1.bf16.msra.mxu1 %v6049_v14 }
0x16a3   :  { %3767 = vmatprep.subr.mxu1 %v6053_v6 }
0x16a6   :  { %3768 = vmatpush1.msra.mxu1 %v6057_v45 }
0x16a7   :  { %4877 = vmatprep.subr.bf16.mxu1 %v5956_v59 }
0x16b0   :  { %v3756_v46 = vpop.permute.xlu1 %3755 }
0x16b1   :  { %4551 = vmatmul.mubr.msk.f32.vlgmr.msra.gmra.mrb[20].mxu1 %vm177_vm3, %v3756_v46 }
0x16b2   :  { %4879 = vmatpush1.bf16.msra.mxu1 %v5960_v63  ;;  %4073 = vmatprep.mubr.f32.mxu1 %v5248_v0  ;;  %v4393_v63 = vld [vmem:[#allocation3] sm:$0xff] }
0x16b3   :  { %4881 = vmatprep.subr.bf16.mxu1 %v5962_v39 }
0x16b6   :  { %4883 = vmatpush1.bf16.msra.mxu1 %v5966_v32 }
0x16b7   :  { %4017 = vmatprep.subr.mxu1 %v5970_v19 }
0x16ba   :  { %4018 = vmatpush1.msra.mxu1 %v5974_v24 }
0x16bb   :  { %4555 = vmatmul.mubr.msk.f32.vlgmr.msra.gmra.mrb[22].mxu1 %vm177_vm3, %v3756_v46  ;;  %4885 = vmatprep.subr.bf16.mxu1 %v5976_v44 }
0x16bc   :  { %4887 = vmatpush1.bf16.msra.mxu1 %v5978_v49  ;;  %4150 = vmatprep.mubr.f32.mxu1 %v5248_v0 }
0x16bd   :  { %4889 = vmatprep.subr.bf16.mxu1 %v5980_v54 }
0x16be   :  { %v4083_v59 = vpop.permute.xlu0 %4082 }
0x16c0   :  { %4891 = vmatpush1.bf16.msra.mxu1 %v5986_v3 }
0x16c1   :  { %4094 = vmatprep.subr.mxu1 %v5990_v31 }
0x16c4   :  { %4095 = vmatpush1.msra.mxu1 %v5994_v20 }
0x16c5   :  { %4556 = vmatmul.mubr.msk.f32.vlgmr.msra.gmra.mrb[22].mxu1 %vm177_vm3, %v4083_v59 }
0x16c6   :  { %4581 = vmatprep.mubr.msk.f32.mxu1 %vm177_vm3, %v4393_v63  ;;  %v4397_v63 = vld [vmem:[%s6146_s5 + $0x10] sm:$0xff] }
0x1784   :  { %v3825_v39 = vpop.f32.mrb[20].mxu1 }
0x1785   :  { %v3830_v32 = vadd.f32 %v3825_v39, %v5548_v34  ;;  %v3827_v19 = vpop.f32.mrb[21].mxu1  ;;  %v4398_v39 = vld [vmem:[%s6146_s5 + $0x18] sm:$0xff] }
0x1786   :  { %v3831_v24 = vadd.f32 %v3827_v19, %v5551_v35  ;;  %v4399_v19 = vld [vmem:[%s6146_s5 + $0x20] sm:$0xff] }
0x1787   :  { %5166 = vtanh.f32 %v3830_v32  ;;  %v4552_v5 = vmul.f32 -1.442695, %v3830_v32  ;;  %v4912_v32 = vpack.c.bf16 %v4398_v39, %v4397_v63 }
0x1788   :  { %5168 = vtanh.f32 %v3831_v24 }
0x1791   :  { %v5167_v44 = vpop.eup %5166 }
0x1792   :  { %v5169_v49 = vpop.eup %5168  ;;  %3843 = vrot.lane.b32.xlu1 %v5167_v44, %s5249_s13 }
0x1793   :  { %3845 = vrot.lane.b32.xlu0 %v5169_v49, %s5249_s13 }
0x1798   :  { %v4152_v54 = vpop.f32.mrb[22].mxu1 }
0x1799   :  { %v4157_v3 = vadd.f32 %v4152_v54, %v5440_v28  ;;  %v4154_v31 = vpop.f32.mrb[23].mxu1 }
0x179a   :  { %v4158_v20 = vadd.f32 %v4154_v31, %v5443_v36 }
0x179b   :  { %5170 = vtanh.f32 %v4157_v3  ;;  %v4557_v18 = vmul.f32 -1.442695, %v4157_v3  ;;  %v4561_v3 = vld [vmem:[%s6147_s6] ss:$0 sm:$0xff] }
0x179c   :  { %5172 = vtanh.f32 %v4158_v20 }
0x179d   :  { %5174 = vpow2.f32 %v4552_v5 }
0x17a5   :  { %v5171_v50 = vpop.eup %5170 }
0x17a6   :  { %v5173_v52 = vpop.eup %5172  ;;  %4170 = vrot.lane.b32.xlu1 %v5171_v50, %s5249_s13 }
0x17a7   :  { %4172 = vrot.lane.b32.xlu0 %v5173_v52, %s5249_s13  ;;  %v5175_v16 = vpop.eup %5174 }
0x17a8   :  { %v3835_v33 = vadd.f32 1.0, %v5175_v16 }
0x17aa   :  { %5176 = vrcp.f32 %v3835_v33 }
0x17ab   :  { %5178 = vpow2.f32 %v4557_v18 }
0x17b4   :  { %v5177_v55 = vpop.eup %5176 }
0x17b5   :  { %v5179_v13 = vpop.eup %5178  ;;  %v3840_v25 = vmul.f32 %v5177_v55, %v6025_v30 }
0x17b6   :  { %v4162_v62 = vadd.f32 1.0, %v5179_v13 }
0x17b8   :  { %5180 = vrcp.f32 %v4162_v62 }
0x17c2   :  { %v5181_v11 = vpop.eup %5180 }
0x17c3   :  { %v4167_v42 = vmul.f32 %v5181_v11, %v6031_v48 }
0x1804   :  { %v3844_v27 = vpop.permute.xlu1 %3843 }
0x1805   :  { %v3846_v28 = vpop.permute.xlu0 %3845 }
0x1806   :  { %v3847_v36 = vsel %vm269_vm2, %v3844_v27, %v3846_v28 }
0x1807   :  { %v3849_v9 = vmul.f32 %v5177_v55, %v3847_v36 }
0x1809   :  { %3851 = vrot.lane.b32.xlu1 %v3849_v9, %s5250_s14 }
0x1818   :  { %v4171_v10 = vpop.permute.xlu1 %4170 }
0x1819   :  { %v4173_v38 = vpop.permute.xlu0 %4172 }
0x181a   :  { %v4174_v60 = vsel %vm269_vm2, %v4171_v10, %v4173_v38 }
0x181b   :  { %v4176_v40 = vmul.f32 %v5181_v11, %v4174_v60 }
0x181d   :  { %4178 = vrot.lane.b32.xlu0 %v4176_v40, %s5250_s14 }
0x187b   :  { %v3852_v8 = vpop.permute.xlu1 %3851 }
0x187c   :  { %v3854_v51 = vadd.f32 %v3852_v8, %v3840_v25 }
0x187e   :  { %5182 = vtanh.f32 %v3854_v51 }
0x1888   :  { %v5183_v41 = vpop.eup %5182 }
0x1889   :  { %3857 = vrot.lane.b32.xlu1 %v5183_v41, %s5250_s14 }
0x188f   :  { %v4179_v17 = vpop.permute.xlu0 %4178 }
0x1890   :  { %v4181_v43 = vadd.f32 %v4179_v17, %v4167_v42 }
0x1892   :  { %5184 = vtanh.f32 %v4181_v43 }
0x189c   :  { %v5185_v56 = vpop.eup %5184 }
0x189d   :  { %4184 = vrot.lane.b32.xlu0 %v5185_v56, %s5250_s14 }
0x18fb   :  { %v3858_v29 = vpop.permute.xlu1 %3857 }
0x18fc   :  { %v3860_v12 = vmul.f32 %v5177_v55, %v3858_v29 }
0x18fe   :  { %3862 = vrot.lane.b32.xlu1 %v3860_v12, %s5251_s0 }
0x190f   :  { %v4185_v1 = vpop.permute.xlu0 %4184 }
0x1910   :  { %v4187_v30 = vmul.f32 %v5181_v11, %v4185_v1 }
0x1912   :  { %4282 = vrot.lane.b32.xlu0 %v4187_v30, %s5251_s0 }
0x1970   :  { %v3863_v61 = vpop.permute.xlu1 %3862 }
0x1971   :  { %3865 = vst.msk [vmem:[#allocation3 + $0xc] sm:$0x3] %vm709_vm4, %v3863_v61  ;;  %4558 = vmatmul.mubr.msk.f32.vlgmr.msra.gmra.mrb[26].mxu0 %vm177_vm3, %v3863_v61 }
0x1972   :  { %4903 = vmatpush1.bf16.msra.mxu0 %v6042_v37  ;;  %4350 = vmatprep.mubr.f32.mxu0 %v5248_v0 }
0x1973   :  { %4905 = vmatprep.subr.bf16.mxu0 %v6044_v7 }
0x1976   :  { %4907 = vmatpush1.bf16.msra.mxu0 %v6049_v14 }
0x1977   :  { %4294 = vmatprep.subr.mxu0 %v6053_v6  ;;  %v4395_v6 = vld [vmem:[%s6146_s5] sm:$0xff] }
0x197a   :  { %4295 = vmatpush1.msra.mxu0 %v6057_v45  ;;  %v4396_v45 = vld [vmem:[%s6146_s5 + $0x8] sm:$0xff] }
0x197b   :  { %v4908_v46 = vpack.c.bf16 %v4396_v45, %v4395_v6 }
0x197d   :  { %4909 = vmatprep.subr.bf16.mxu1 %v4908_v46 }
0x197e   :  { %4911 = vmatpush3.bf16.msra.mxu1 %v4908_v46 }
0x197f   :  { %4913 = vmatprep.subr.bf16.mxu1 %v4912_v32 }
0x1982   :  { %4915 = vmatpush3.bf16.msra.mxu1 %v4912_v32 }
0x1983   :  { %4579 = vmatprep.subr.mxu1 %v4399_v19 }
0x1984   :  { %v4283_v48 = vpop.permute.xlu0 %4282 }
0x1985   :  { %4559 = vmatmul.mubr.msk.f32.vlgmr.msra.gmra.mrb[26].mxu0 %vm177_vm3, %v4283_v48 }
0x1986   :  { %4580 = vmatpush3.msra.mxu1 %v4399_v19 }
0x1a58   :  { %v4352_v53 = vpop.f32.mrb[26].mxu0 }
0x1a59   :  { %v4357_v15 = vadd.f32 %v4352_v53, %v5548_v34  ;;  %v4354_v21 = vpop.f32.mrb[27].mxu0 }
0x1a5a   :  { %v4358_v2 = vadd.f32 %v4354_v21, %v5551_v35 }
0x1a5b   :  { %5186 = vtanh.f32 %v4357_v15  ;;  %v4560_v22 = vmul.f32 -1.442695, %v4357_v15 }
0x1a5c   :  { %5188 = vtanh.f32 %v4358_v2 }
0x1a5d   :  { %5190 = vpow2.f32 %v4560_v22 }
0x1a65   :  { %v5187_v0 = vpop.eup %5186 }
0x1a66   :  { %v5189_v4 = vpop.eup %5188  ;;  %4370 = vrot.lane.b32.xlu1 %v5187_v0, %s5249_s13 }
0x1a67   :  { %4372 = vrot.lane.b32.xlu0 %v5189_v4, %s5249_s13  ;;  %v5191_v47 = vpop.eup %5190 }
0x1a68   :  { %v4362_v23 = vadd.f32 1.0, %v5191_v47 }
0x1a6a   :  { %5192 = vrcp.f32 %v4362_v23 }
0x1a74   :  { %v5193_v58 = vpop.eup %5192 }
0x1a75   :  { %v4367_v35 = vmul.f32 %v5193_v58, %v3854_v51 }
0x1ad8   :  { %v4371_v37 = vpop.permute.xlu1 %4370 }
0x1ad9   :  { %v4373_v7 = vpop.permute.xlu0 %4372 }
0x1ada   :  { %v4374_v34 = vsel %vm269_vm2, %v4371_v37, %v4373_v7 }
0x1adb   :  { %v4376_v26 = vmul.f32 %v5193_v58, %v4374_v34 }
0x1add   :  { %4378 = vrot.lane.b32.xlu1 %v4376_v26, %s5250_s14 }
0x1b4f   :  { %v4379_v57 = vpop.permute.xlu1 %4378 }
0x1b50   :  { %v4381_v14 = vadd.f32 %v4379_v57, %v4367_v35 }
0x1b52   :  { %5194 = vtanh.f32 %v4381_v14 }
0x1b5c   :  { %v5195_v59 = vpop.eup %5194 }
0x1b5d   :  { %4384 = vrot.lane.b32.xlu0 %v5195_v59, %s5250_s14 }
0x1bcf   :  { %v4385_v24 = vpop.permute.xlu0 %4384 }
0x1bd0   :  { %v4387_v44 = vmul.f32 %v5193_v58, %v4385_v24 }
0x1bd2   :  { %4389 = vrot.lane.b32.xlu1 %v4387_v44, %s5251_s0 }
0x1c44   :  { %v4390_v49 = vpop.permute.xlu1 %4389 }
0x1c45   :  { %4392 = vst.msk [vmem:[#allocation3 + $0xe] sm:$0x3] %vm709_vm4, %v4390_v49 }
0x1c4c   :  { %v4394_v54 = vld [vmem:[#allocation3 + $0x8] sm:$0xff] }
0x1c4d   :  { %4582 = vmatmul.mubr.msk.f32.vlgmr.msra.gmra.mrb[24].mxu1 %vm177_vm3, %v4394_v54 }
0x1d20   :  { %v4583_v31 = vpop.f32.mrb[24].mxu1 }
0x1d21   :  { %v4485_v20 = vadd.f32 %v4583_v31, %v4561_v3  ;;  %v4479_v50 = vpop.f32.mrb[25].mxu1 }
0x1d22   :  { %v4480_v52 = vadd.f32 %v4561_v3, %v4479_v50 }
0x1d23   :  { %4489 = vst.msk [vmem:[%s6148_s7 + $0x8] sm:$0xff] %vm269_vm2, %v4485_v20 }
0x1d24   :  { %4488 = vst.msk [vmem:[%s6148_s7] sm:$0xff] %vm269_vm2, %v4480_v52 }
0x1d25   :  { %4494 = vsyncpa [#allocation5], 1 }
0x1d26   :  { %4495 = vsyncpa [#allocation7], 1 }

</bundles_post_ra>
